<compile_context>
chip_gen: v7x
topology: tpu7x:2x2x1
jax: 0.10.0
libtpu: 0.0.40
codegen_flags: <defaults>
</compile_context>

<pallas_src>
import math
from functools import partial

import jax
import jax.numpy as jnp
from jax.experimental import pallas as pl
from jax.experimental.pallas import tpu as pltpu

LANE = 128
_M_TARGET = 512      # target matmul M (= TH * Wo) per grid step
_M_MIN = 256         # keep the MXU M dimension healthy when a divisor allows it
_N_TILE_MAX = 1024   # max output-column tile

_BUFFERED_STATE = {"ok": None}   # does this jax build accept pl.Buffered(1)?
_TPU_VMEM_CAP = [None]


def _round_up(x, m):
    return ((x + m - 1) // m) * m


def _fpad(c):
    """Slab lane width for c real channels: round_up(3*c, 128) (packed blade-major)."""
    return _round_up(3 * max(int(c), 1), LANE)


def _vmem_cap():
    if _TPU_VMEM_CAP[0] is None:
        cap = 64 * 1024 * 1024
        try:
            cap = int(getattr(pltpu.get_tpu_info(), "vmem_capacity_bytes", cap))
        except Exception:
            pass
        _TPU_VMEM_CAP[0] = cap
    return _TPU_VMEM_CAP[0]


def _vmem_budget():
    cap = _vmem_cap()
    return min(cap - (16 << 20), int(0.72 * cap))


# ---------------------------------------------------------------------------
# Fused conv (+ optional input activation, + optional residual) Pallas kernel
# ---------------------------------------------------------------------------
def _conv_kernel(*refs, k, TH, Wo, act, has_res, c_real):
    """One grid step: TH output rows x Wo cols x TN output columns for one image.

    refs = (x, w, bias[, gate_w, gate_b][, res], out)
      x    : (1, Hp, Wp, F)     bf16 -- full padded image of this batch element
      w    : (k, k*F, TN)       bf16 -- per-kh channel-mixing weights (K = k*F)
      bias : (1, TN)            f32
      res  : (1, TH, Wo, TN)    bf16 -- optional residual, added in the epilogue
      out  : (1, TH, Wo, TN)    bf16
    """
    x_ref, w_ref, b_ref = refs[0], refs[1], refs[2]
    o_ref = refs[-1]
    res_ref = refs[-2] if has_res else None
    F = x_ref.shape[-1]
    Wp = x_ref.shape[2]
    TN = o_ref.shape[-1]
    rows = TH + k - 1

    row_start = pl.program_id(2) * TH
    if TH % 8 == 0:
        row_start = pl.multiple_of(row_start, 8)
    xwin = x_ref[0, pl.ds(row_start, rows), :, :]                 # (rows, Wp, F) bf16

    if act is not None:
        # Fused activation of the conv *input* (the activation precedes the conv).
        xflat = xwin.reshape(rows * Wp, F)
        if act == "vlin":
            gw_ref, gb_ref = refs[3], refs[4]
            g = jax.nn.sigmoid(
                jnp.dot(xflat, gw_ref[...], preferred_element_type=jnp.float32)
                + gb_ref[...])
            # gate weight already emits the blade-broadcast gate (width F); gate in bf16.
            xflat = xflat * g.astype(jnp.bfloat16)
        else:
            C = c_real
            xs = xflat.astype(jnp.float32)
            s = xs[:, 0:C] + xs[:, C:2 * C] + xs[:, 2 * C:3 * C]
            if act == "vmean":
                s = s * (1.0 / 3.0)
            g = jax.nn.sigmoid(s)
            g3 = jnp.concatenate([g, g, g], axis=-1)
            if 3 * C < F:
                g3 = jnp.concatenate(
                    [g3, jnp.zeros((g3.shape[0], F - 3 * C), g3.dtype)], axis=-1)
            xflat = (xs * g3).astype(jnp.bfloat16)
        xwin = xflat.reshape(rows, Wp, F)

    # Width-shifted windows, lane-concatenated once per grid step -> K = k*F per kh.
    if k == 1:
        xshift = xwin[:, 0:Wo, :]
    else:
        xshift = jnp.concatenate(
            [xwin[:, kw:kw + Wo, :] for kw in range(k)], axis=-1)  # (rows, Wo, k*F)

    acc = jnp.zeros((TH * Wo, TN), jnp.float32)
    for kh in range(k):
        win = xshift[kh:kh + TH].reshape(TH * Wo, k * F)
        acc = acc + jnp.dot(win, w_ref[kh], preferred_element_type=jnp.float32)
    out = acc + b_ref[...]
    if has_res:
        out = out + res_ref[...].reshape(TH * Wo, TN).astype(jnp.float32)
    o_ref[...] = out.reshape(1, TH, Wo, TN).astype(o_ref.dtype)


def _pick_row_tile(Ho, Wo):
    divs = [t for t in range(1, Ho + 1) if Ho % t == 0]
    fit = [t for t in divs if t * Wo <= _M_TARGET]
    best = max(fit) if fit else 1
    if best * Wo < _M_MIN:
        bigger = [t for t in divs if _M_MIN <= t * Wo <= 2 * _M_TARGET]
        if bigger:
            best = min(bigger)
    return best


def _fused_conv(xp, w, bias, gate, act, k, Ho, Wo, residual=None, c_in=None):
    """Stride-1 conv of padded input xp (B, Hp, Wp, F) with weights (k, k*F, Np).

    Returns (B, Ho, Wo, Np) bf16. `act` in {None,'vlin','vsum','vmean'} is applied to
    the input inside the kernel; for 'vlin', gate = (wg (F,F) bf16, bg (1,F) f32).
    `residual` (B, Ho, Wo, Np) bf16 is added in the kernel epilogue when provided.
    """
    B, Hp, Wp, F = xp.shape
    kk, kF, Np = w.shape
    assert kk == k and kF == k * F
    has_res = residual is not None
    TH = _pick_row_tile(Ho, Wo)
    rows = TH + k - 1
    budget = _vmem_budget()
    cap = _vmem_cap()

    def est(tn):
        e = Hp * Wp * F * 2                       # resident input image (single buffer)
        e += 2 * k * k * F * tn * 2               # weight block (double buffered)
        e += 2 * TH * Wo * tn * 2                 # output block
        e += 2 * tn * 4                           # bias
        if has_res:
            e += 2 * TH * Wo * tn * 2
        if act == "vlin":
            e += F * F * 2 + F * 4                # gate weight + bias
        e += rows * Wo * k * F * 2                # lane-concat window
        e += TH * Wo * tn * 4                     # f32 accumulator
        if act is not None:
            e += rows * Wp * F * 4                # activation temporaries
        return e + (2 << 20)

    cands = [t for t in range(LANE, min(Np, _N_TILE_MAX) + 1, LANE) if Np % t == 0]
    fitting = [t for t in cands if est(t) <= budget]
    TN = max(fitting) if fitting else min(cands)
    grid = (B, Np // TN, Ho // TH)
    n_tiles = Np // TN

    args = [xp, w, bias]
    if act == "vlin":
        args += [gate[0], gate[1]]
    if has_res:
        args += [residual]

    vlim = int(max(32 << 20, min(cap - (4 << 20), est(TN) + (16 << 20))))

    flops = 2 * B * Ho * Wo * k * k * F * Np
    if act == "vlin":
        flops += 2 * B * Hp * Wp * F * F * n_tiles
    transc = B * Hp * Wp * F * n_tiles if act is not None else 0
    bytes_accessed = 2 * (xp.size + B * w.size + B * Ho * Wo * Np) + bias.size * 4
    if has_res:
        bytes_accessed += residual.size * 2

    def build(single_buffer_resident):
        if single_buffer_resident:
            x_spec = pl.BlockSpec((1, Hp, Wp, F), lambda b, n, r: (b, 0, 0, 0),
                                  pipeline_mode=pl.Buffered(1))
        else:
            x_spec = pl.BlockSpec((1, Hp, Wp, F), lambda b, n, r: (b, 0, 0, 0))
        in_specs = [x_spec,
                    pl.BlockSpec((k, k * F, TN), lambda b, n, r: (0, 0, n)),
                    pl.BlockSpec((1, TN), lambda b, n, r: (0, n))]
        if act == "vlin":
            if single_buffer_resident:
                gw_spec = pl.BlockSpec((F, F), lambda b, n, r: (0, 0),
                                       pipeline_mode=pl.Buffered(1))
            else:
                gw_spec = pl.BlockSpec((F, F), lambda b, n, r: (0, 0))
            in_specs += [gw_spec, pl.BlockSpec((1, F), lambda b, n, r: (0, 0))]
        if has_res:
            in_specs += [pl.BlockSpec((1, TH, Wo, TN), lambda b, n, r: (b, r, 0, n))]
        return pl.pallas_call(
            partial(_conv_kernel, k=k, TH=TH, Wo=Wo, act=act,
                    has_res=has_res, c_real=c_in),
            out_shape=jax.ShapeDtypeStruct((B, Ho, Wo, Np), jnp.bfloat16),
            grid=grid,
            in_specs=in_specs,
            out_specs=pl.BlockSpec((1, TH, Wo, TN), lambda b, n, r: (b, r, 0, n)),
            compiler_params=pltpu.CompilerParams(
                dimension_semantics=("parallel", "parallel", "parallel"),
                vmem_limit_bytes=vlim),
            cost_estimate=pl.CostEstimate(
                flops=int(flops), transcendentals=int(transc),
                bytes_accessed=int(bytes_accessed)),
        )(*args)

    if _BUFFERED_STATE["ok"] is False:
        return build(False)
    try:
        out = build(True)
        _BUFFERED_STATE["ok"] = True
        return out
    except Exception:
        _BUFFERED_STATE["ok"] = False
        return build(False)


# ---------------------------------------------------------------------------
# G3 algebra / layout helpers
# ---------------------------------------------------------------------------
def _blade_matrix(q):
    """q = (s, b1, b2, b3) even multivector -> 3x3 matrix M with M @ v = s*v + b x v.
    Returns (3_out_blade, 3_in_blade, *q.shape[1:])."""
    s, b1, b2, b3 = q[0], q[1], q[2], q[3]
    row0 = jnp.stack([s, -b3, b2], axis=0)
    row1 = jnp.stack([b3, s, -b1], axis=0)
    row2 = jnp.stack([-b2, b1, s], axis=0)
    return jnp.stack([row0, row1, row2], axis=0)


def _spatial_pad(x, p):
    """Zero-pad spatially by p; pad the width up to a multiple of 16 (bf16 sublane
    pack) -- extra columns are never used as window anchors and stay zero."""
    B, H, W, F = x.shape
    Wt = _round_up(W + 2 * p, 16)
    return jnp.pad(x, ((0, 0), (p, p), (p, Wt - W - p), (0, 0)))


def _concat_channels(x, cx, s, cs):
    """Channel concat (== torch.cat dim=1) of two internal blade-major packed slabs."""
    cc = cx + cs
    Fc = _fpad(cc)
    parts = []
    for blade in range(3):
        parts.append(x[..., blade * cx: blade * cx + cx])
        parts.append(s[..., blade * cs: blade * cs + cs])
    out = jnp.concatenate(parts, axis=-1)
    if Fc > 3 * cc:
        out = jnp.pad(out, ((0, 0), (0, 0), (0, 0), (0, Fc - 3 * cc)))
    return out
    # TODO(synk): fuse this concat into the consuming conv by splitting its K dim.


# ---------------------------------------------------------------------------
# Modules (mirroring the PyTorch hierarchy; deterministic init)
# ---------------------------------------------------------------------------
class _KeyGen:
    def __init__(self, key):
        self._key = key

    def __call__(self):
        self._key, sub = jax.random.split(self._key)
        return sub


class Identity:
    def __call__(self, x):
        return x


class CliffordG3SumVSiLU:
    pass


class CliffordG3MeanVSiLU:
    pass


class CliffordG3LinearVSiLU:
    """Vector-SiLU with a learned linear gate: x * sigmoid(lin(x)).  The gate weight is
    stored pre-broadcast over the three output blades so the kernel does a single
    lane-dense matmul and a bf16 multiply (no in-kernel lane relayout)."""

    def __init__(self, kg, channels):
        C = channels
        F = _fpad(C)
        std = 1.0 / math.sqrt(3 * C)
        w = std * jax.random.normal(kg(), (C, C, 3), jnp.float32)    # (c_out, c_in, blade)
        w = jnp.transpose(w, (2, 1, 0)).reshape(3 * C, C)            # (blade_in*c_in, c_out)
        w = jnp.pad(w, ((0, F - 3 * C), (0, 0)))                     # (F, C)
        w = jnp.concatenate([w, w, w], axis=1)                       # broadcast over out blades
        w = jnp.pad(w, ((0, 0), (0, F - 3 * C)))                     # (F, F)
        self.wg = w.astype(jnp.bfloat16)
        bg = 0.01 * jax.random.normal(kg(), (C,), jnp.float32)
        bg = jnp.tile(bg, 3)
        self.bg = jnp.pad(bg, (0, F - 3 * C)).reshape(1, F)
        self.channels = C


def get_activation(kg, activation, channels):
    if activation == "vsum":
        return CliffordG3SumVSiLU()
    elif activation == "vmean":
        return CliffordG3MeanVSiLU()
    elif activation == "vlin":
        return CliffordG3LinearVSiLU(kg, channels)
    else:
        raise NotImplementedError(f"Activation {activation} not implemented")


def _act_kind(act):
    if act is None:
        return None, None
    if isinstance(act, CliffordG3LinearVSiLU):
        return "vlin", (act.wg, act.bg)
    if isinstance(act, CliffordG3SumVSiLU):
        return "vsum", None
    if isinstance(act, CliffordG3MeanVSiLU):
        return "vmean", None
    raise NotImplementedError(type(act))


class CliffordG3Conv2d:
    """G3 Clifford conv: per-tap even multivector acting on vector features.
    The per-tap channel-mixing matrix is precomputed at init (packed, bf16) and
    stored as (k, k*F_in, F_out) for the per-kh K-concat kernel."""

    def __init__(self, kg, in_channels, out_channels, kernel_size=1, stride=1,
                 padding=0, bias=False):
        self.in_channels, self.out_channels = in_channels, out_channels
        self.k, self.stride, self.padding = kernel_size, stride, padding
        self.fin, self.fout = _fpad(in_channels), _fpad(out_channels)
        k = kernel_size
        fan_in = 3 * in_channels * k * k
        std = 1.0 / math.sqrt(fan_in)
        q = std * jax.random.normal(
            kg(), (4, out_channels, in_channels, k, k), jnp.float32)
        M = _blade_matrix(q)                                  # (bo, bi, co, ci, kh, kw)
        core = jnp.transpose(M, (4, 5, 1, 3, 0, 2))           # (kh, kw, bi, ci, bo, co)
        core = core.reshape(k, k, 3 * in_channels, 3 * out_channels)
        core = jnp.pad(core, ((0, 0), (0, 0),
                              (0, self.fin - 3 * in_channels),
                              (0, self.fout - 3 * out_channels)))
        self.w = core.reshape(k, k * self.fin, self.fout).astype(jnp.bfloat16)
        if bias:
            b = 0.01 * jax.random.normal(kg(), (3, out_channels), jnp.float32).reshape(-1)
        else:
            b = jnp.zeros((3 * out_channels,), jnp.float32)
        self.b = jnp.pad(b, (0, self.fout - 3 * out_channels)).reshape(1, self.fout)

    def __call__(self, x, act=None, residual=None):
        B, H, W, _ = x.shape
        k, p, s = self.k, self.padding, self.stride
        assert residual is None or s == 1
        Ho, Wo = H + 2 * p - k + 1, W + 2 * p - k + 1          # stride-1 output size
        xp = _spatial_pad(x, p)
        kind, gate = _act_kind(act)
        out = _fused_conv(xp, self.w, self.b, gate, kind, k, Ho, Wo,
                          residual=residual, c_in=self.in_channels)
        if s == 1:
            return out
        # TODO(synk): strided convs (Downsample only) are computed at stride 1 and
        # subsampled; a phase-decomposed kernel would avoid the s^2x extra MXU work.
        return out[:, ::s, ::s, :]


class CliffordG3ConvTranspose2d:
    """G3 ConvTranspose2d (4x4, stride 2, padding 1), lowered to a single stride-1
    3x3 conv over the 1-padded input producing the four sub-pixel phases as extra
    output column groups, followed by an XLA pixel shuffle."""

    def __init__(self, kg, in_channels, out_channels, kernel_size, stride, padding):
        assert kernel_size == 4 and stride == 2 and padding == 1
        self.in_channels, self.out_channels = in_channels, out_channels
        self.fin, self.fout = _fpad(in_channels), _fpad(out_channels)
        fan_in = 3 * in_channels * kernel_size * kernel_size
        std = 1.0 / math.sqrt(fan_in)
        q = std * jax.random.normal(
            kg(), (4, in_channels, out_channels, kernel_size, kernel_size), jnp.float32)
        M = _blade_matrix(q)                                  # (bo, bi, ci, co, ky, kx)
        W3 = jnp.zeros((3, 3, self.fin, 2, 2, self.fout), jnp.float32)
        for ty in range(3):
            for tx in range(3):
                for a in range(2):
                    for b in range(2):
                        ky, kx = 3 + a - 2 * ty, 3 + b - 2 * tx
                        if 0 <= ky < 4 and 0 <= kx < 4:
                            blk = jnp.transpose(M[:, :, :, :, ky, kx], (1, 2, 0, 3))
                            blk = blk.reshape(3 * in_channels, 3 * out_channels)
                            W3 = W3.at[ty, tx, :3 * in_channels, a, b,
                                       :3 * out_channels].set(blk)
        # TODO(synk): ~55% of these tap blocks are structurally zero; a phase-split
        # kernel would skip that MXU work.
        self.w = (W3.reshape(3, 3, self.fin, 4 * self.fout)
                  .reshape(3, 3 * self.fin, 4 * self.fout).astype(jnp.bfloat16))
        self.b = jnp.zeros((1, 4 * self.fout), jnp.float32)
        # TODO(synk): kept bias-free (reference may carry a bias term).

    def __call__(self, x, act=None):
        B, H, W, _ = x.shape
        N = self.fout
        xp = _spatial_pad(x, 1)
        kind, gate = _act_kind(act)
        out = _fused_conv(xp, self.w, self.b, gate, kind, 3, H, W,
                          c_in=self.in_channels)               # (B, H, W, 4N)
        out = out.reshape(B, H, W, 2, 2, N)
        out = jnp.transpose(out, (0, 1, 3, 2, 4, 5)).reshape(B, 2 * H, 2 * W, N)
        # TODO(synk): write the pixel shuffle directly from the kernel to avoid this
        # extra HBM round trip of the upsampled tensor.
        return out


class CliffordG3BasicBlock2d:
    expansion = 1

    def __init__(self, kg, in_channels, out_channels, kernel_size=3, stride=1, padding=1,
                 activation="vlin", norm=True, num_groups=1, prenorm=True):
        self.conv1 = CliffordG3Conv2d(kg, in_channels, out_channels, kernel_size,
                                      stride, padding, bias=True)
        self.conv2 = CliffordG3Conv2d(kg, out_channels, out_channels, kernel_size,
                                      stride, padding, bias=True)
        # norm=False in this UNet configuration -> Identity (matches the reference)
        self.norm1 = Identity()
        self.norm2 = Identity()
        if in_channels != out_channels:
            self.shortcut = CliffordG3Conv2d(kg, in_channels, out_channels, kernel_size=1)
        else:
            self.shortcut = Identity()
        self.act1 = get_activation(kg, activation, in_channels)
        self.act2 = get_activation(kg, activation, out_channels)
        self.prenorm = prenorm
        self.out_channels = out_channels

    def __call__(self, x):
        # Norm layers are Identity, so pre-/post-norm orderings coincide; each
        # activation is fused into the prologue of the conv that consumes it, and the
        # residual add is fused into the epilogue of conv2.
        out = self.conv1(x, act=self.act1)
        sc = x if isinstance(self.shortcut, Identity) else self.shortcut(x)
        return self.conv2(out, act=self.act2, residual=sc)


class CliffordG3DownBlock:
    def __init__(self, kg, in_channels, out_channels, activation, norm=False,
                 prenorm=True, num_groups=1):
        self.block = CliffordG3BasicBlock2d(kg, in_channels, out_channels, activation=activation,
                                            norm=norm, prenorm=prenorm, num_groups=num_groups)
        self.out_channels = out_channels

    def __call__(self, x):
        return self.block(x)


class CliffordG3Downsample:
    def __init__(self, kg, n_channels):
        self.conv = CliffordG3Conv2d(kg, n_channels, n_channels, kernel_size=3,
                                     stride=2, padding=1)
        self.out_channels = n_channels

    def __call__(self, x):
        return self.conv(x)


class CliffordG3MiddleBlock:
    def __init__(self, kg, n_channels, activation, norm=False, prenorm=True, num_groups=1):
        self.res1 = CliffordG3BasicBlock2d(kg, n_channels, n_channels, activation=activation,
                                           norm=norm, prenorm=prenorm, num_groups=num_groups)
        self.res2 = CliffordG3BasicBlock2d(kg, n_channels, n_channels, activation=activation,
                                           norm=norm, prenorm=prenorm, num_groups=num_groups)
        self.out_channels = n_channels

    def __call__(self, x):
        return self.res2(self.res1(x))


class CliffordG3UpBlock:
    def __init__(self, kg, in_channels, out_channels, activation, norm=False,
                 prenorm=True, num_groups=1):
        self.res = CliffordG3BasicBlock2d(kg, in_channels + out_channels, out_channels,
                                          activation=activation, norm=norm,
                                          prenorm=prenorm, num_groups=num_groups)
        self.out_channels = out_channels

    def __call__(self, x):
        return self.res(x)


class CliffordUpsample:
    def __init__(self, kg, n_channels):
        self.conv = CliffordG3ConvTranspose2d(kg, n_channels, n_channels, 4, 2, 1)
        self.out_channels = n_channels

    def __call__(self, x):
        return self.conv(x)


class CliffordG3UNet2d:
    def __init__(self, key, in_channels, out_channels, hidden_channels, activation="vlin",
                 norm=False, ch_mults=(1, 2, 2, 2), n_blocks=2, prenorm=True, num_groups=1):
        assert not norm  # TODO(synk): CliffordG3GroupNorm path not implemented (default norm=False)
        kg = _KeyGen(key)
        self.out_channels = out_channels
        self.hidden_channels = hidden_channels
        n_res = len(ch_mults)
        self.conv1 = CliffordG3Conv2d(kg, in_channels, hidden_channels, kernel_size=3, padding=1)
        down = []
        out_c = in_c = hidden_channels
        for i in range(n_res):
            out_c = in_c * ch_mults[i]
            for _ in range(n_blocks):
                down.append(CliffordG3DownBlock(kg, in_c, out_c, activation=activation,
                                                norm=norm, prenorm=prenorm, num_groups=num_groups))
                in_c = out_c
            if i < n_res - 1:
                down.append(CliffordG3Downsample(kg, in_c))
        self.down = down
        self.middle = CliffordG3MiddleBlock(kg, out_c, activation=activation,
                                            norm=norm, prenorm=prenorm)
        up = []
        in_c = out_c
        for i in reversed(range(n_res)):
            out_c = in_c
            for _ in range(n_blocks):
                up.append(CliffordG3UpBlock(kg, in_c, out_c, activation=activation,
                                            norm=norm, prenorm=prenorm, num_groups=num_groups))
            out_c = in_c // ch_mults[i]
            up.append(CliffordG3UpBlock(kg, in_c, out_c, activation=activation,
                                        norm=norm, prenorm=prenorm))
            in_c = out_c
            if i > 0:
                up.append(CliffordUpsample(kg, in_c))
        self.up = up
        self.activation = get_activation(kg, activation, out_c)
        self.norm = Identity()
        self.conv2 = CliffordG3Conv2d(kg, in_c, self.out_channels, kernel_size=3, padding=1)

    def __call__(self, x):
        # x: (B, C, H, W, 3) -- PyTorch reference layout.
        assert x.ndim == 5
        B, C, H, W, _ = x.shape
        xi = jnp.transpose(x, (0, 2, 3, 4, 1)).reshape(B, H, W, 3 * C)  # blade-major
        F0 = _fpad(C)
        xi = jnp.pad(xi, ((0, 0), (0, 0), (0, 0), (0, F0 - 3 * C))).astype(jnp.bfloat16)

        xcur = self.conv1(xi)
        c = self.hidden_channels
        h = [(xcur, c)]
        for m in self.down:
            xcur = m(xcur)
            c = m.out_channels
            h.append((xcur, c))
        xcur = self.middle(xcur)
        for m in self.up:
            if isinstance(m, CliffordUpsample):
                xcur = m(xcur)
            else:
                skip, cs = h.pop()
                xcur = _concat_channels(xcur, c, skip, cs)     # == torch.cat(dim=1)
                xcur = m(xcur)
                c = m.out_channels
        # final norm is Identity; the final activation is fused into conv2.
        xcur = self.conv2(xcur, act=self.activation)
        co = self.out_channels
        out = xcur[..., :3 * co].astype(jnp.float32).reshape(B, H, W, 3, co)
        return jnp.transpose(out, (0, 4, 1, 2, 3))             # (B, C_out, H, W, 3)


if __name__ == "__main__":
    key = jax.random.PRNGKey(0)
    pkey, xkey = jax.random.split(key)

    B, Cin, Cout, H, W, hidden = 2, 2, 2, 16, 16, 4
    model = CliffordG3UNet2d(pkey, in_channels=Cin, out_channels=Cout,
                             hidden_channels=hidden, activation="vlin",
                             norm=False, ch_mults=(1, 2), n_blocks=2)

    x = jax.random.normal(xkey, (B, Cin, H, W, 3), jnp.float32)  # (B, C, H, W, 3)
    out = model(x)
    out = jax.block_until_ready(out)

    assert out.shape == (B, Cout, H, W, 3), out.shape
    assert bool(jnp.all(jnp.isfinite(out)))
    print("KERNEL_OK")
</pallas_src>

<mosaic_0001>
module attributes {stable_mosaic.version = 11 : i64} {
  func.func @_conv_kernel(%arg0: i32, %arg1: i32, %arg2: i32, %arg3: memref<1x18x32x128xbf16, #tpu.memory_space<vmem>>, %arg4: memref<3x384x128xbf16, #tpu.memory_space<vmem>>, %arg5: memref<1x128xf32, #tpu.memory_space<vmem>>, %arg6: memref<1x16x16x128xbf16, #tpu.memory_space<vmem>>) attributes {dimension_semantics = [#tpu.dimension_semantics<parallel>, #tpu.dimension_semantics<parallel>, #tpu.dimension_semantics<parallel>], iteration_bounds = array<i64: 2, 1, 1>, scalar_prefetch = 0 : i64, scratch_operands = 0 : i64, tpu.core_type = #tpu.core_type<tc>, window_params = [{pipeline_mode = #tpu.pipeline_mode<synchronous>, transform_indices = @transform_0, window_bounds = array<i64: 1, 18, 32, 128>}, {transform_indices = @transform_1, window_bounds = array<i64: 3, 384, 128>}, {transform_indices = @transform_2, window_bounds = array<i64: 1, 128>}, {transform_indices = @transform_3, window_bounds = array<i64: 1, 16, 16, 128>}]} {
    %c16_i32 = arith.constant 16 : i32
    %0 = arith.muli %arg2, %c16_i32 : i32
    %1 = tpu.assume_multiple %0, 8 : i32
    %c0 = arith.constant 0 : index
    %2 = arith.index_cast %1 : i32 to index
    %c0_0 = arith.constant 0 : index
    %c0_1 = arith.constant 0 : index
    %3 = vector.load %arg3[%c0, %2, %c0_0, %c0_1] : memref<1x18x32x128xbf16, #tpu.memory_space<vmem>>, vector<1x18x32x128xbf16>
    %4 = vector.shape_cast %3 : vector<1x18x32x128xbf16> to vector<18x32x128xbf16>
    %5 = vector.extract_strided_slice %4 {offsets = [0, 0, 0], sizes = [18, 16, 128], strides = [1, 1, 1]} : vector<18x32x128xbf16> to vector<18x16x128xbf16>
    %6 = vector.extract_strided_slice %4 {offsets = [0, 1, 0], sizes = [18, 16, 128], strides = [1, 1, 1]} : vector<18x32x128xbf16> to vector<18x16x128xbf16>
    %7 = vector.extract_strided_slice %4 {offsets = [0, 2, 0], sizes = [18, 16, 128], strides = [1, 1, 1]} : vector<18x32x128xbf16> to vector<18x16x128xbf16>
    %8 = tpu.concatenate %5, %6, %7 in 2 : vector<18x16x128xbf16>, vector<18x16x128xbf16>, vector<18x16x128xbf16> -> vector<18x16x384xbf16>
    %cst = arith.constant 0.000000e+00 : f32
    %9 = vector.broadcast %cst : f32 to vector<256x128xf32>
    %10 = vector.extract_strided_slice %8 {offsets = [0, 0, 0], sizes = [16, 16, 384], strides = [1, 1, 1]} : vector<18x16x384xbf16> to vector<16x16x384xbf16>
    %11 = vector.shape_cast %10 : vector<16x16x384xbf16> to vector<256x384xbf16>
    %c0_2 = arith.constant 0 : index
    %c0_3 = arith.constant 0 : index
    %c0_4 = arith.constant 0 : index
    %12 = vector.load %arg4[%c0_2, %c0_3, %c0_4] : memref<3x384x128xbf16, #tpu.memory_space<vmem>>, vector<1x384x128xbf16>
    %13 = vector.shape_cast %12 : vector<1x384x128xbf16> to vector<384x128xbf16>
    %cst_5 = arith.constant dense<0.000000e+00> : vector<256x128xf32>
    %14 = tpu.matmul %11, %13, %cst_5 {dimension_numbers = #tpu.dot_dimension_numbers<[1], [0], [0], [1], [0, 0, 1, 1], [], []>} : vector<256x384xbf16>, vector<384x128xbf16>, vector<256x128xf32> -> vector<256x128xf32>
    %15 = arith.addf %9, %14 : vector<256x128xf32>
    %16 = vector.extract_strided_slice %8 {offsets = [1, 0, 0], sizes = [16, 16, 384], strides = [1, 1, 1]} : vector<18x16x384xbf16> to vector<16x16x384xbf16>
    %17 = vector.shape_cast %16 : vector<16x16x384xbf16> to vector<256x384xbf16>
    %c1 = arith.constant 1 : index
    %c0_6 = arith.constant 0 : index
    %c0_7 = arith.constant 0 : index
    %18 = vector.load %arg4[%c1, %c0_6, %c0_7] : memref<3x384x128xbf16, #tpu.memory_space<vmem>>, vector<1x384x128xbf16>
    %19 = vector.shape_cast %18 : vector<1x384x128xbf16> to vector<384x128xbf16>
    %cst_8 = arith.constant dense<0.000000e+00> : vector<256x128xf32>
    %20 = tpu.matmul %17, %19, %cst_8 {dimension_numbers = #tpu.dot_dimension_numbers<[1], [0], [0], [1], [0, 0, 1, 1], [], []>} : vector<256x384xbf16>, vector<384x128xbf16>, vector<256x128xf32> -> vector<256x128xf32>
    %21 = arith.addf %15, %20 : vector<256x128xf32>
    %22 = vector.extract_strided_slice %8 {offsets = [2, 0, 0], sizes = [16, 16, 384], strides = [1, 1, 1]} : vector<18x16x384xbf16> to vector<16x16x384xbf16>
    %23 = vector.shape_cast %22 : vector<16x16x384xbf16> to vector<256x384xbf16>
    %c2 = arith.constant 2 : index
    %c0_9 = arith.constant 0 : index
    %c0_10 = arith.constant 0 : index
    %24 = vector.load %arg4[%c2, %c0_9, %c0_10] : memref<3x384x128xbf16, #tpu.memory_space<vmem>>, vector<1x384x128xbf16>
    %25 = vector.shape_cast %24 : vector<1x384x128xbf16> to vector<384x128xbf16>
    %cst_11 = arith.constant dense<0.000000e+00> : vector<256x128xf32>
    %26 = tpu.matmul %23, %25, %cst_11 {dimension_numbers = #tpu.dot_dimension_numbers<[1], [0], [0], [1], [0, 0, 1, 1], [], []>} : vector<256x384xbf16>, vector<384x128xbf16>, vector<256x128xf32> -> vector<256x128xf32>
    %27 = arith.addf %21, %26 : vector<256x128xf32>
    %c0_12 = arith.constant 0 : index
    %c0_13 = arith.constant 0 : index
    %28 = vector.load %arg5[%c0_12, %c0_13] : memref<1x128xf32, #tpu.memory_space<vmem>>, vector<1x128xf32>
    %29 = vector.broadcast %28 : vector<1x128xf32> to vector<256x128xf32>
    %30 = arith.addf %27, %29 : vector<256x128xf32>
    %31 = vector.shape_cast %30 : vector<256x128xf32> to vector<1x16x16x128xf32>
    %32 = arith.truncf %31 : vector<1x16x16x128xf32> to vector<1x16x16x128xbf16>
    %c0_14 = arith.constant 0 : index
    %c0_15 = arith.constant 0 : index
    %c0_16 = arith.constant 0 : index
    %c0_17 = arith.constant 0 : index
    %33 = vector.load %arg6[%c0_14, %c0_15, %c0_16, %c0_17] : memref<1x16x16x128xbf16, #tpu.memory_space<vmem>>, vector<1x16x16x128xbf16>
    tpu.vector_store %arg6[%c0_14, %c0_15, %c0_16, %c0_17], %32 {strides = array<i32>} : memref<1x16x16x128xbf16, #tpu.memory_space<vmem>>, vector<1x16x16x128xbf16>,
    return
  }
  func.func @transform_0(%arg0: i32, %arg1: i32, %arg2: i32) -> (i32, i32, i32, i32) {
    %c0_i32 = arith.constant 0 : i32
    %c0_i32_0 = arith.constant 0 : i32
    %c0_i32_1 = arith.constant 0 : i32
    %c0_i32_2 = arith.constant 0 : i32
    return %arg0, %c0_i32, %c0_i32_0, %c0_i32_1 : i32, i32, i32, i32
  }
  func.func @transform_1(%arg0: i32, %arg1: i32, %arg2: i32) -> (i32, i32, i32) {
    %c0_i32 = arith.constant 0 : i32
    %c0_i32_0 = arith.constant 0 : i32
    %c0_i32_1 = arith.constant 0 : i32
    return %c0_i32, %c0_i32_0, %arg1 : i32, i32, i32
  }
  func.func @transform_2(%arg0: i32, %arg1: i32, %arg2: i32) -> (i32, i32) {
    %c0_i32 = arith.constant 0 : i32
    %c0_i32_0 = arith.constant 0 : i32
    return %c0_i32, %arg1 : i32, i32
  }
  func.func @transform_3(%arg0: i32, %arg1: i32, %arg2: i32) -> (i32, i32, i32, i32) {
    %c0_i32 = arith.constant 0 : i32
    %c0_i32_0 = arith.constant 0 : i32
    return %arg0, %arg2, %c0_i32, %arg1 : i32, i32, i32, i32
  }
}

module attributes {stable_mosaic.version = 11 : i64} {
  func.func @_conv_kernel(%arg0: i32, %arg1: i32, %arg2: i32, %arg3: memref<1x18x32x128xbf16, #tpu.memory_space<vmem>>, %arg4: memref<3x384x128xbf16, #tpu.memory_space<vmem>>, %arg5: memref<1x128xf32, #tpu.memory_space<vmem>>, %arg6: memref<1x16x16x128xbf16, #tpu.memory_space<vmem>>) attributes {dimension_semantics = [#tpu.dimension_semantics<parallel>, #tpu.dimension_semantics<parallel>, #tpu.dimension_semantics<parallel>], iteration_bounds = array<i64: 2, 1, 1>, scalar_prefetch = 0 : i64, scratch_operands = 0 : i64, tpu.core_type = #tpu.core_type<tc>, window_params = [{transform_indices = @transform_0, window_bounds = array<i64: 1, 18, 32, 128>}, {transform_indices = @transform_1, window_bounds = array<i64: 3, 384, 128>}, {transform_indices = @transform_2, window_bounds = array<i64: 1, 128>}, {transform_indices = @transform_3, window_bounds = array<i64: 1, 16, 16, 128>}]} {
    %c16_i32 = arith.constant 16 : i32
    %0 = arith.muli %arg2, %c16_i32 : i32
    %1 = tpu.assume_multiple %0, 8 : i32
    %c0 = arith.constant 0 : index
    %2 = arith.index_cast %1 : i32 to index
    %c0_0 = arith.constant 0 : index
    %c0_1 = arith.constant 0 : index
    %3 = vector.load %arg3[%c0, %2, %c0_0, %c0_1] : memref<1x18x32x128xbf16, #tpu.memory_space<vmem>>, vector<1x18x32x128xbf16>
    %4 = vector.shape_cast %3 : vector<1x18x32x128xbf16> to vector<18x32x128xbf16>
    %5 = vector.extract_strided_slice %4 {offsets = [0, 0, 0], sizes = [18, 16, 128], strides = [1, 1, 1]} : vector<18x32x128xbf16> to vector<18x16x128xbf16>
    %6 = vector.extract_strided_slice %4 {offsets = [0, 1, 0], sizes = [18, 16, 128], strides = [1, 1, 1]} : vector<18x32x128xbf16> to vector<18x16x128xbf16>
    %7 = vector.extract_strided_slice %4 {offsets = [0, 2, 0], sizes = [18, 16, 128], strides = [1, 1, 1]} : vector<18x32x128xbf16> to vector<18x16x128xbf16>
    %8 = tpu.concatenate %5, %6, %7 in 2 : vector<18x16x128xbf16>, vector<18x16x128xbf16>, vector<18x16x128xbf16> -> vector<18x16x384xbf16>
    %cst = arith.constant 0.000000e+00 : f32
    %9 = vector.broadcast %cst : f32 to vector<256x128xf32>
    %10 = vector.extract_strided_slice %8 {offsets = [0, 0, 0], sizes = [16, 16, 384], strides = [1, 1, 1]} : vector<18x16x384xbf16> to vector<16x16x384xbf16>
    %11 = vector.shape_cast %10 : vector<16x16x384xbf16> to vector<256x384xbf16>
    %c0_2 = arith.constant 0 : index
    %c0_3 = arith.constant 0 : index
    %c0_4 = arith.constant 0 : index
    %12 = vector.load %arg4[%c0_2, %c0_3, %c0_4] : memref<3x384x128xbf16, #tpu.memory_space<vmem>>, vector<1x384x128xbf16>
    %13 = vector.shape_cast %12 : vector<1x384x128xbf16> to vector<384x128xbf16>
    %cst_5 = arith.constant dense<0.000000e+00> : vector<256x128xf32>
    %14 = tpu.matmul %11, %13, %cst_5 {dimension_numbers = #tpu.dot_dimension_numbers<[1], [0], [0], [1], [0, 0, 1, 1], [], []>} : vector<256x384xbf16>, vector<384x128xbf16>, vector<256x128xf32> -> vector<256x128xf32>
    %15 = arith.addf %9, %14 : vector<256x128xf32>
    %16 = vector.extract_strided_slice %8 {offsets = [1, 0, 0], sizes = [16, 16, 384], strides = [1, 1, 1]} : vector<18x16x384xbf16> to vector<16x16x384xbf16>
    %17 = vector.shape_cast %16 : vector<16x16x384xbf16> to vector<256x384xbf16>
    %c1 = arith.constant 1 : index
    %c0_6 = arith.constant 0 : index
    %c0_7 = arith.constant 0 : index
    %18 = vector.load %arg4[%c1, %c0_6, %c0_7] : memref<3x384x128xbf16, #tpu.memory_space<vmem>>, vector<1x384x128xbf16>
    %19 = vector.shape_cast %18 : vector<1x384x128xbf16> to vector<384x128xbf16>
    %cst_8 = arith.constant dense<0.000000e+00> : vector<256x128xf32>
    %20 = tpu.matmul %17, %19, %cst_8 {dimension_numbers = #tpu.dot_dimension_numbers<[1], [0], [0], [1], [0, 0, 1, 1], [], []>} : vector<256x384xbf16>, vector<384x128xbf16>, vector<256x128xf32> -> vector<256x128xf32>
    %21 = arith.addf %15, %20 : vector<256x128xf32>
    %22 = vector.extract_strided_slice %8 {offsets = [2, 0, 0], sizes = [16, 16, 384], strides = [1, 1, 1]} : vector<18x16x384xbf16> to vector<16x16x384xbf16>
    %23 = vector.shape_cast %22 : vector<16x16x384xbf16> to vector<256x384xbf16>
    %c2 = arith.constant 2 : index
    %c0_9 = arith.constant 0 : index
    %c0_10 = arith.constant 0 : index
    %24 = vector.load %arg4[%c2, %c0_9, %c0_10] : memref<3x384x128xbf16, #tpu.memory_space<vmem>>, vector<1x384x128xbf16>
    %25 = vector.shape_cast %24 : vector<1x384x128xbf16> to vector<384x128xbf16>
    %cst_11 = arith.constant dense<0.000000e+00> : vector<256x128xf32>
    %26 = tpu.matmul %23, %25, %cst_11 {dimension_numbers = #tpu.dot_dimension_numbers<[1], [0], [0], [1], [0, 0, 1, 1], [], []>} : vector<256x384xbf16>, vector<384x128xbf16>, vector<256x128xf32> -> vector<256x128xf32>
    %27 = arith.addf %21, %26 : vector<256x128xf32>
    %c0_12 = arith.constant 0 : index
    %c0_13 = arith.constant 0 : index
    %28 = vector.load %arg5[%c0_12, %c0_13] : memref<1x128xf32, #tpu.memory_space<vmem>>, vector<1x128xf32>
    %29 = vector.broadcast %28 : vector<1x128xf32> to vector<256x128xf32>
    %30 = arith.addf %27, %29 : vector<256x128xf32>
    %31 = vector.shape_cast %30 : vector<256x128xf32> to vector<1x16x16x128xf32>
    %32 = arith.truncf %31 : vector<1x16x16x128xf32> to vector<1x16x16x128xbf16>
    %c0_14 = arith.constant 0 : index
    %c0_15 = arith.constant 0 : index
    %c0_16 = arith.constant 0 : index
    %c0_17 = arith.constant 0 : index
    %33 = vector.load %arg6[%c0_14, %c0_15, %c0_16, %c0_17] : memref<1x16x16x128xbf16, #tpu.memory_space<vmem>>, vector<1x16x16x128xbf16>
    tpu.vector_store %arg6[%c0_14, %c0_15, %c0_16, %c0_17], %32 {strides = array<i32>} : memref<1x16x16x128xbf16, #tpu.memory_space<vmem>>, vector<1x16x16x128xbf16>,
    return
  }
  func.func @transform_0(%arg0: i32, %arg1: i32, %arg2: i32) -> (i32, i32, i32, i32) {
    %c0_i32 = arith.constant 0 : i32
    %c0_i32_0 = arith.constant 0 : i32
    %c0_i32_1 = arith.constant 0 : i32
    %c0_i32_2 = arith.constant 0 : i32
    return %arg0, %c0_i32, %c0_i32_0, %c0_i32_1 : i32, i32, i32, i32
  }
  func.func @transform_1(%arg0: i32, %arg1: i32, %arg2: i32) -> (i32, i32, i32) {
    %c0_i32 = arith.constant 0 : i32
    %c0_i32_0 = arith.constant 0 : i32
    %c0_i32_1 = arith.constant 0 : i32
    return %c0_i32, %c0_i32_0, %arg1 : i32, i32, i32
  }
  func.func @transform_2(%arg0: i32, %arg1: i32, %arg2: i32) -> (i32, i32) {
    %c0_i32 = arith.constant 0 : i32
    %c0_i32_0 = arith.constant 0 : i32
    return %c0_i32, %arg1 : i32, i32
  }
  func.func @transform_3(%arg0: i32, %arg1: i32, %arg2: i32) -> (i32, i32, i32, i32) {
    %c0_i32 = arith.constant 0 : i32
    %c0_i32_0 = arith.constant 0 : i32
    return %arg0, %arg2, %c0_i32, %arg1 : i32, i32, i32, i32
  }
}

</mosaic_0001>

<bundles_post_ra>
// kernel: tpu_custom_call.1
= control target key start
LH: loop header
LB: loop body
LE: loop exit
PB: predicated region body
PF: predicated region fallthrough
CT: control target
= control target key end

     0   :  { %8 = vsyncpa [#allocation3], 0  ;;  %s5010_s0 = inlined_call_operand.hbm [shape: bf16[2,18,32,128], index: 0, kind: input, shape index: {}]   ;;  %s5011_s1 = inlined_call_operand.hbm [shape: bf16[3,384,128], index: 1, kind: input, shape index: {}]   ;;  %s5012_s2 = inlined_call_operand.vmem [shape: f32[1,128], index: 2, kind: input, shape index: {}]   ;;  %s5013_s3 = inlined_call_operand.hbm [shape: bf16[2,16,16,128], index: 3, kind: output, shape index: {}]  }
   0x1   :  { %9 = vsyncpa [#allocation6], 0 }
   0x2   :  { %10 = vsyncpa [#allocation4], 0 }
   0x3   :  { %12 = vsyncpa [#allocation4 + $0x1], 0  ;;  %s4036_s12 = smov 0   ;;  %s4038_s13 = smov 0  }
   0x4   :  { %s4040_s14 = smov 0   ;;  %s4042_s15 = smov 0  }
   0x5   :  { %s4044_s16 = smov 0   ;;  %s4046_s17 = smov 0  }
   0x6 LB: > { %s2659_s18 = sadd.s32 4294967295, %s4007_s17   ;;  %s2660_s19 = sadd.s32 4294967294, %s4007_s17   ;;  %s4007_s17 = sphi %s4046_s17, %s18_s17   ;;  %s4003_s16 = sphi %s4044_s16, %s5040_s16   ;;  %s3999_s15 = sphi %s4042_s15, %s5039_s15   ;;  %s3995_s14 = sphi %s4040_s14, %s5038_s14   ;;  %s3991_s13 = sphi %s4038_s13, %s5037_s13   ;;  %s3987_s12 = sphi %s4036_s12, %s5036_s12  }
   0x7   : > { %s37_s20 = sadd.s32 1, %s4003_s16  ;;  %s44_s21 = sadd.s32 1, %s3995_s14 }
   0x8   : > { %p39_p0 = scmp.ge.s32.totalorder %s37_s20, 2  ;;  %p57_p1 = scmp.ne.s32.totalorder %s3991_s13, %s3987_s12 }
   0x9   : > { %p4072_p2 = scmp.eq.s32.totalorder %s2659_s18, 0  ;;  %p136_p3 = scmp.ne.s32.totalorder %s3995_s14, %s3991_s13 }
   0xa   : > { %s5042_s20 = smov (%p39_p0, %s37_s20), 0  ;;  %p137_p5 = scmp.eq.s32.totalorder %s2659_s18, 1 }
   0xb   : > { %s5021_s22 = scalar_select %p4072_p2, 1, 0 }
   0xc   : > { %p4082_p4 = por %p4072_p2, %p57_p1  ;;  %s41_s24 = ssub.s32 %s4003_s16, %s5042_s20 }
   0xd   : > { %p143_p6 = scmp.eq.s32.totalorder %s2660_s19, 1  ;;  %p42_p7 = scmp.eq.s32.totalorder %s41_s24, 0 }
   0xe   : > { %s5022_s23 = scalar_select %p4082_p4, 1, 0 }
   0xf   : > { %p4088_p8 = por %p137_p5, %p136_p3  ;;  %p4092_p9 = por %p143_p6, %p57_p1 }
  0x10   : > { %p2661_p10 = scmp.ge.s32.totalorder %s4007_s17, 1  ;;  %p150_p11 = scmp.lt.s32.totalorder %s4007_s17, 3 }
  0x11   : > { %s5023_s25 = scalar_select %p4088_p8, 1, 0 }
  0x12   : > { %s5024_s26 = scalar_select %p4092_p9, 1, 0 }
  0x13   : > { %s4098_s27 = scalar_select %p42_p7, %s3995_s14, %s44_s21  }
  0x14   : > { %s3670_s28 = smul.u32 4608, %s3999_s15  ;;  %p4102_p12 = pnand %p2661_p10, %p150_p11 }
  0x15   : > { %s4009_s6 = smov [#allocation2]   ;;  %s4010_s9 = smov [#allocation5]  }
  0x16   : > { %s5025_s29 = scalar_select %p4102_p12, 1, 0 }
  0x17   : > { %s4109_s5 = scalar_lea.hbm %s5010_s0, %s3670_s28  ;;  %s165_s7 = sshll.u32 %s4009_s6, 4  ;;  %s4113_s7 = int_to_ptr.vmem [resolvable:$true] %s165_s7 }
  0x18   : > { %p3679_p13 = pneg %p4102_p12  ;;  %s180_s10 = sshll.u32 %s4010_s9, 4  ;;  %s4127_s10 = int_to_ptr.vmem [resolvable:$true] %s180_s10 }
  0x19   : > { %s3863_s18 = scalar_lea.hbm %s4109_s5, 4608  ;;  %s3868_s24 = scalar_lea.hbm %s5010_s0, 9216 }
  0x1a   : > { %p4117_p0 = pnand %p3679_p13, %p4082_p4  ;;  %p4123_p1 = pnand %p3679_p13, %p4072_p2 }
  0x1b   : > { %p3864_p3 = scmp.ne.s32.totalorder %s4109_s5, %s3863_s18  ;;  %p3869_p10 = scmp.lt.u32.totalorder %s4109_s5, %s5010_s0 }
  0x1c   : > { %s5027_s11 = scalar_select %p4123_p1, 1, 0 }
  0x1d   : > { %p3865_p5 = pneg %p4117_p0  ;;  %p3870_p11 = scmp.lt.u32.totalorder %s3868_s24, %s3863_s18 }
  0x1e   : > { %p3872_p9 = scmp.lt.u32.totalorder %s3863_s18, %s4109_s5 }
  0x1f   : > { %p3866_p6 = pnand %p3865_p5, %p3864_p3  ;;  %p3871_p13 = por %p3870_p11, %p3869_p10 }
  0x21   : > { %p3867_p7 = pneg %p3866_p6  ;;  %p3873_p8 = por %p3872_p9, %p3871_p13 }
  0x23   : > { %p3874_p2 = pnand %p3873_p8, %p3867_p7 }
  0x25   : > { %3877 = shalt.err (!%p3874_p2)
}
  0x26   : > { %s3878_s4 = scalar_lea.vmem %s4113_s7, 4608  ;;  %p3886_p12 = scmp.lt.s32.totalorder %s4113_s7, %s4113_s7 }
  0x27   : > { %p3879_p3 = scmp.ne.s32.totalorder %s4113_s7, %s3878_s4  ;;  %p3887_p1 = scmp.lt.s32.totalorder %s3878_s4, %s3878_s4 }
  0x29   : > { %p3881_p6 = pnand %p3879_p3, %p3865_p5  ;;  %p3888_p10 = por %p3887_p1, %p3886_p12 }
  0x2b   : > { %p3882_p4 = pneg %p3881_p6 }
  0x2d   : > { %p3889_p11 = pnand %p3888_p10, %p3882_p4 }
  0x2f   : > { %3892 = shalt.err (!%p3889_p11)
}
  0x30   : > { %s4011_s6 = smov 64   ;;  %s4012_s9 = smov 4  }
  0x31   : > { %3682 = dma.hbm_to_vmem [thread:$0]  (!%p4117_p0), %s4109_s5, 4608, %s4113_s7, [#allocation3], %s4011_s6, %s4011_s6, %s4012_s9  }
  0x32   : > { %s3893_s21 = scalar_lea.hbm %s5011_s1, 9216  ;;  %p5028_p8 = scmp.ne.s32.totalorder %s5027_s11, 0 }
  0x33   : > { %p3894_p2 = scmp.ne.s32.totalorder %s5011_s1, %s3893_s21  ;;  %p3900_p1 = scmp.lt.u32.totalorder %s3893_s21, %s5011_s1 }
  0x34   : > { %p3895_p9 = pneg %p5028_p8 }
  0x36   : > { %p3896_p4 = pnand %p3895_p9, %p3894_p2 }
  0x38   : > { %p3897_p12 = pneg %p3896_p4 }
  0x3a   : > { %p3902_p5 = pnand %p3900_p1, %p3897_p12 }
  0x3c   : > { %3905 = shalt.err (!%p3902_p5)
}
  0x3d   : > { %s3906_s5 = scalar_lea.vmem %s4127_s10, 9216  ;;  %p3914_p3 = scmp.lt.s32.totalorder %s4127_s10, %s4127_s10 }
  0x3e   : > { %p3907_p0 = scmp.ne.s32.totalorder %s4127_s10, %s3906_s5  ;;  %p3915_p6 = scmp.lt.s32.totalorder %s3906_s5, %s3906_s5 }
  0x40   : > { %p3909_p7 = pnand %p3907_p0, %p3895_p9  ;;  %p3916_p10 = por %p3915_p6, %p3914_p3 }
  0x42   : > { %p3910_p13 = pneg %p3909_p7 }
  0x44   : > { %p3917_p11 = pnand %p3916_p10, %p3910_p13 }
  0x46   : > { %3920 = shalt.err (!%p3917_p11)
}
  0x47   : > { %3685 = dma.hbm_to_vmem [thread:$0]  (!%p5028_p8), %s5011_s1, 9216, %s4127_s10, [#allocation6], %s4011_s6, %s4011_s6, %s4012_s9  }
  0x48   : > { %p5029_p2 = scmp.ne.s32.totalorder %s5025_s29, 0 }
  0x4a   : > { %202 = sbr.rel (%p5029_p2) target bundleno = 641 (0x281), region = 32 }
  0x51   : > { %p5030_p4 = scmp.ne.s32.totalorder %s5022_s23, 0 }
  0x53   : > { %3974 = dma.done.wait (%p5030_p4), [#allocation3], 4608  }
  0x54   : > { %3976 = vsyncadd (%p5030_p4), [#allocation3], 4294962688  ;;  %p5031_p9 = scmp.ne.s32.totalorder %s5021_s22, 0 }
  0x56   : > { %3978 = dma.done.wait (%p5031_p9), [#allocation6], 9216  }
  0x57   : > { %3980 = vsyncadd (%p5031_p9), [#allocation6], 4294958080  ;;  %v3747_v0 = vld [vmem:[#allocation5 + $0x100] sm:$0xff]   ;;  %v3750_v3 = vld [vmem:[#allocation5 + $0x108] sm:$0xff]   ;;  %vm453_vm0 = vsmask.f32 7424 }
  0x58   : > { %v4186_v1 = vld [vmem:[#allocation5 + $0x140] sm:$0xff]   ;;  %2942 = vmatprep.subr.bf16.mxu0 %v3747_v0  ;;  %v4190_v4 = vld [vmem:[#allocation5 + $0x148] sm:$0xff]   ;;  %v3753_v6 = vld [vmem:[#allocation5 + $0x110] sm:$0xff]   ;;  %vm688_vm1 = vcmask 1046528   ;;  %s225_s22 = sand.u32 1, %s3991_s13   ;;  %s2846_s6 = sshll.u32 %s3999_s15, 11 }
  0x59   : > { %v3749_v2 = vld [vmem:[#allocation5 + $0xc0] sm:$0xff]   ;;  %3494 = vmatprep.subr.bf16.mxu1 %v4186_v1  ;;  %v3752_v5 = vld [vmem:[#allocation5 + $0xc8] sm:$0xff]   ;;  %v4193_v7 = vld [vmem:[#allocation5 + $0x150] sm:$0xff]   ;;  %s2667_s10 = sshll.u32 %s225_s22, 7  ;;  %s4957_s21 = scalar_lea.hbm %s5013_s3, %s2846_s6 }
  0x5a   : > { %2943 = vmatpush3.bf16.msra.mxu0 %v3749_v2  ;;  %3502 = vmatpush3.bf16.msra.mxu1 %v4186_v1  ;;  %v3755_v8 = vld [vmem:[#allocation5 + $0xd0] sm:$0xff]   ;;  %v3756_v9 = vld [vmem:[#allocation5 + $0x118] sm:$0xff]   ;;  %v3759_v12 = vld [vmem:[#allocation5 + $0x120] sm:$0xff]   ;;  %s4870_s11 = scalar_lea.vmem [#allocation7], %s2667_s10  ;;  %s4964_s15 = scalar_lea.sflag [#allocation4], %s225_s22 }
  0x5b   : > { %2944 = vmatprep.subr.bf16.mxu0 %v3750_v3  ;;  %3495 = vmatprep.subr.bf16.mxu1 %v4190_v4  ;;  %v4197_v10 = vld [vmem:[#allocation5 + $0x158] sm:$0xff]   ;;  %v4201_v13 = vld [vmem:[#allocation5 + $0x160] sm:$0xff]   ;;  %v3762_v15 = vld [vmem:[#allocation5 + $0x128] sm:$0xff]   ;;  %s2554_s9 = sshll.u32 %s4870_s11, 4  ;;  %p5034_p12 = scmp.ne.s32.totalorder %s5023_s25, 0  ;;  %s4959_s9 = int_to_ptr.vmem [resolvable:$true] %s2554_s9 }
  0x5c   : > { %v3758_v11 = vld [vmem:[#allocation5 + $0xd8] sm:$0xff]   ;;  %v3761_v14 = vld [vmem:[#allocation5 + $0xe0] sm:$0xff]   ;;  %v4205_v16 = vld [vmem:[#allocation5 + $0x168] sm:$0xff]   ;;  %s3921_s24 = scalar_lea.vmem %s4959_s9, 2048  ;;  %s4013_s28 = smov [#allocation7]  }
  0x5d   : > { %v3764_v17 = vld [vmem:[#allocation5 + $0xe8] sm:$0xff]   ;;  %v3765_v18 = vld [vmem:[#allocation5 + $0x130] sm:$0xff]   ;;  %v3768_v21 = vld [vmem:[#allocation5 + $0x138] sm:$0xff]   ;;  %p3922_p8 = scmp.ne.s32.totalorder %s4959_s9, %s3921_s24  ;;  %s3925_s30 = sshll.u32 %s4013_s28, 4  ;;  %s3926_s30 = int_to_ptr.vmem [resolvable:$false] %s3925_s30 }
  0x5e   : > { %2945 = vmatpush3.bf16.msra.mxu0 %v3752_v5  ;;  %3503 = vmatpush3.bf16.msra.mxu1 %v4190_v4  ;;  %v4209_v19 = vld [vmem:[#allocation5 + $0x170] sm:$0xff]   ;;  %v4211_v22 = vld [vmem:[#allocation5 + $0x178] sm:$0xff]   ;;  %v4226_v31 = vld [vmem:[#allocation2 + $0xa0] sm:$0xff]   ;;  %s3927_s4 = scalar_lea.vmem %s3926_s30, 4096  ;;  %p3928_p0 = scmp.lt.s32.totalorder %s4959_s9, %s3926_s30 }
  0x5f   : > { %2946 = vmatprep.subr.bf16.mxu0 %v3753_v6  ;;  %3496 = vmatprep.subr.bf16.mxu1 %v4193_v7  ;;  %v3767_v20 = vld [vmem:[#allocation5 + $0xf0] sm:$0xff]   ;;  %v4217_v24 = vld [vmem:[#allocation2 + $0x18] ss:$0 sps:$4 sm:$0xff]   ;;  %v3777_v33 = vld [vmem:[#allocation5 + $0x40] sm:$0xff]   ;;  %v719_v37 = vrot.slane %v4226_v31, 1  ;;  %p3923_p1 = pnand %p3922_p8, %p5034_p12  ;;  %p3929_p7 = scmp.lt.s32.totalorder %s3927_s4, %s3921_s24 }
  0x60   : > { %v4215_v23 = vld [vmem:[#allocation2 + $0x10] sm:$0xff]   ;;  %v3770_v25 = vld [vmem:[#allocation5 + $0xf8] sm:$0xff]   ;;  %v474_v29 = vshll.u32 %v4217_v24, 16  ;;  %v4233_v38 = vld [vmem:[#allocation2 + $0xa8] ss:$0 sps:$4 sm:$0xff]  }
  0x61   : > { %v4219_v26 = vld [vmem:[#allocation2 + $0x90] sm:$0xff]   ;;  %v467_v27 = vshrl.u32 %v4215_v23, 16  ;;  %v469_v28 = vshll.u32 %v4215_v23, 16  ;;  %v4224_v30 = vld [vmem:[#allocation2 + $0x98] ss:$0 sps:$4 sm:$0xff]   ;;  %v720_v41 = vrot.slane %v4233_v38, 1  ;;  %p3924_p5 = pneg %p3923_p1  ;;  %p3930_p13 = por %p3929_p7, %p3928_p0 }
  0x62   : > { %2947 = vmatpush3.bf16.msra.mxu0 %v3755_v8  ;;  %3504 = vmatpush3.bf16.msra.mxu1 %v4193_v7  ;;  %v716_v32 = vrot.slane %v4219_v26, 1  ;;  %v476_v35 = vrot.slane %v474_v29, 1  ;;  %v717_v36 = vrot.slane %v4224_v30, 1  ;;  %v3778_v42 = vld [vmem:[#allocation5] sm:$0xff]   ;;  %v3779_v44 = vld [vmem:[#allocation5 + $0x48] sm:$0xff]   ;;  %v4256_v49 = vld [vmem:[#allocation2 + $0xb0] sm:$0xff]  }
  0x63   : > { %2948 = vmatprep.subr.bf16.mxu0 %v3756_v9  ;;  %3497 = vmatprep.subr.bf16.mxu1 %v4197_v10  ;;  %v471_v34 = vrot.slane %v469_v28, 1  ;;  %v4247_v45 = vsel %vm688_vm1, %v719_v37, %v720_v41  ;;  %v3780_v46 = vld [vmem:[#allocation5 + $0x8] sm:$0xff]   ;;  %v4251_v47 = vld [vmem:[#allocation2 + $0x20] sm:$0xff]   ;;  %v4261_v53 = vld [vmem:[#allocation2 + $0xb8] ss:$0 sps:$4 sm:$0xff]   ;;  %v722_v55 = vrot.slane %v4256_v49, 1  ;;  %p3931_p3 = pnand %p3930_p13, %p3924_p5 }
  0x64   : > { %v4236_v40 = vsel %vm688_vm1, %v716_v32, %v717_v36  ;;  %v4253_v48 = vld [vmem:[#allocation2 + $0x28] ss:$0 sps:$4 sm:$0xff]   ;;  %v479_v50 = vshrl.u32 %v4251_v47, 16  ;;  %v481_v51 = vshll.u32 %v4251_v47, 16  ;;  %v4263_v54 = vld [vmem:[#allocation2 + $0xc0] sm:$0xff]   ;;  %v3787_v56 = vld [vmem:[#allocation5 + $0x50] sm:$0xff]  }
  0x65   : > { %v472_v39 = vor.u32 %v471_v34, %v467_v27  ;;  %3382 = vmatprep.mubr.bf16.mxu1 %v4236_v40  ;;  %v486_v52 = vshll.u32 %v4253_v48, 16  ;;  %v723_v59 = vrot.slane %v4261_v53, 1  ;;  %v725_v60 = vrot.slane %v4263_v54, 1  ;;  %v4269_v61 = vld [vmem:[#allocation2 + $0xc8] ss:$0 sps:$4 sm:$0xff]   ;;  %v3788_v0 = vld [vmem:[#allocation5 + $0x10] sm:$0xff]  }
  0x66   : > { %2949 = vmatpush3.bf16.msra.mxu0 %v3758_v11  ;;  %3505 = vmatpush3.bf16.msra.mxu1 %v4197_v10  ;;  %v483_v57 = vrot.slane %v481_v51, 1  ;;  %v3789_v2 = vld [vmem:[#allocation5 + $0x58] sm:$0xff]   ;;  %v4287_v6 = vld [vmem:[#allocation2 + $0x30] sm:$0xff]   ;;  %v4305_v28 = vld [vmem:[#allocation2 + $0xe8] ss:$0 sps:$4 sm:$0xff]  }
  0x67   : > { %2950 = vmatprep.subr.bf16.mxu0 %v3759_v12  ;;  %3498 = vmatprep.subr.bf16.mxu1 %v4201_v13  ;;  %v4241_v43 = vsel %vm453_vm0, %v472_v39, %v476_v35  ;;  %v488_v58 = vrot.slane %v486_v52, 1  ;;  %v4273_v63 = vsel %vm688_vm1, %v722_v55, %v723_v59  ;;  %v3790_v5 = vld [vmem:[#allocation5 + $0x18] sm:$0xff]   ;;  %v4291_v9 = vld [vmem:[#allocation2 + $0xd0] sm:$0xff]   ;;  %v491_v11 = vshrl.u32 %v4287_v6, 16  ;;  %v3799_v35 = vld [vmem:[#allocation5 + $0x68] sm:$0xff]  }
  0x68   : > { %1034 = vmatprep.mubr.bf16.mxu0 %v4241_v43  ;;  %v484_v62 = vor.u32 %v483_v57, %v479_v50  ;;  %v4289_v8 = vld [vmem:[#allocation2 + $0x38] ss:$0 sps:$4 sm:$0xff]   ;;  %v493_v12 = vshll.u32 %v4287_v6, 16  ;;  %v732_v34 = vrot.slane %v4305_v28, 1  ;;  %v3800_v37 = vld [vmem:[#allocation5 + $0x28] sm:$0xff]   ;;  %v4323_v39 = vld [vmem:[#allocation2 + $0x40] sm:$0xff]  }
  0x69   : > { %v4325_v41 = vld [vmem:[#allocation2 + $0x48] ss:$0 sps:$4 sm:$0xff]   ;;  %v4333_v51 = vld [vmem:[#allocation2 + $0xf8] ss:$0 sps:$4 sm:$0xff]   ;;  %v4335_v52 = vld [vmem:[#allocation2 + $0x100] sm:$0xff]  }
  0x6a   : > { %2951 = vmatpush3.bf16.msra.mxu0 %v3761_v14  ;;  %3506 = vmatpush3.bf16.msra.mxu1 %v4201_v13  ;;  %v4279_v3 = vsel %vm453_vm0, %v484_v62, %v488_v58  ;;  %v498_v14 = vshll.u32 %v4289_v8, 16  ;;  %v510_v50 = vshll.u32 %v4325_v41, 16  ;;  %v737_v59 = vrot.slane %v4335_v52, 1 }
  0x6b   : > { %2952 = vmatprep.subr.bf16.mxu0 %v3762_v15  ;;  %3499 = vmatprep.subr.bf16.mxu1 %v4205_v16  ;;  %v4297_v15 = vld [vmem:[#allocation2 + $0xd8] ss:$0 sps:$4 sm:$0xff]  }
  0x6c   : > { %v512_v58 = vrot.slane %v510_v50, 1  ;;  %v4377_v50 = vld [vmem:[#allocation2 + $0x70] sm:$0xff]  }
  0x6e   : > { %2953 = vmatpush3.bf16.msra.mxu0 %v3764_v17  ;;  %3507 = vmatpush3.bf16.msra.mxu1 %v4205_v16  ;;  %v4299_v17 = vld [vmem:[#allocation2 + $0xe0] sm:$0xff]  }
  0x6f   : > { %2954 = vmatprep.subr.bf16.mxu0 %v3765_v18  ;;  %3500 = vmatprep.subr.bf16.mxu1 %v4209_v19  ;;  %v728_v18 = vrot.slane %v4291_v9, 1  ;;  %v731_v27 = vrot.slane %v4299_v17, 1 }
  0x72   : > { %2955 = vmatpush3.bf16.msra.mxu0 %v3767_v20  ;;  %3508 = vmatpush3.bf16.msra.mxu1 %v4209_v19  ;;  %v3797_v20 = vld [vmem:[#allocation5 + $0x60] sm:$0xff]  }
  0x73   : > { %2956 = vmatprep.subr.bf16.mxu0 %v3768_v21  ;;  %3501 = vmatprep.subr.bf16.mxu1 %v4211_v22  ;;  %v495_v21 = vrot.slane %v493_v12, 1  ;;  %v3810_v12 = vld [vmem:[#allocation5 + $0x38] sm:$0xff]  }
  0x75   : > { %v496_v29 = vor.u32 %v495_v21, %v491_v11 }
  0x76   : > { %2957 = vmatpush3.bf16.msra.mxu0 %v3770_v25  ;;  %3509 = vmatpush3.bf16.msra.mxu1 %v4211_v22  ;;  %v500_v25 = vrot.slane %v498_v14, 1  ;;  %v4359_v14 = vld [vmem:[#allocation2 + $0x50] sm:$0xff]  }
  0x77   : > { %3350 = vmatprep.subr.bf16.mxu0 %v4186_v1  ;;  %3078 = vmatprep.subr.bf16.mxu1 %v3777_v33  ;;  %v3798_v33 = vld [vmem:[#allocation5 + $0x20] sm:$0xff]   ;;  %v515_v21 = vshrl.u32 %v4359_v14, 16 }
  0x78   : > { %v4315_v36 = vsel %vm453_vm0, %v496_v29, %v500_v25  ;;  %v517_v25 = vshll.u32 %v4359_v14, 16  ;;  %v3815_v29 = vld [vmem:[#allocation5 + $0x80] sm:$0xff]  }
  0x79   : > { %1035 = vmatmul.mubr.bf16.vlgmr.msra.gmra.mrb[0].mxu0 %v4215_v23  ;;  %3383 = vmatmul.mubr.bf16.vlgmr.msra.gmra.mrb[0].mxu1 %v4247_v45 }
  0x7a   : > { %3351 = vmatpush3.bf16.msra.mxu0 %v4186_v1  ;;  %3079 = vmatpush3.bf16.msra.mxu1 %v3778_v42  ;;  %v726_v1 = vrot.slane %v4269_v61, 1  ;;  %v4327_v42 = vld [vmem:[#allocation2 + $0xf0] sm:$0xff]  }
  0x7b   : > { %3080 = vmatprep.subr.bf16.mxu1 %v3779_v44  ;;  %3352 = vmatprep.subr.bf16.mxu0 %v4190_v4  ;;  %v503_v44 = vshrl.u32 %v4323_v39, 16  ;;  %v734_v55 = vrot.slane %v4327_v42, 1 }
  0x7c   : > { %3386 = vmatprep.mubr.bf16.mxu1 %v4273_v63  ;;  %1042 = vmatprep.mubr.bf16.mxu0 %v4279_v3 }
  0x7e   : > { %3081 = vmatpush3.bf16.msra.mxu1 %v3780_v46  ;;  %3353 = vmatpush3.bf16.msra.mxu0 %v4190_v4  ;;  %v4283_v4 = vsel %vm688_vm1, %v725_v60, %v726_v1  ;;  %v505_v46 = vshll.u32 %v4323_v39, 16  ;;  %v4341_v60 = vld [vmem:[#allocation2 + $0x108] ss:$0 sps:$4 sm:$0xff]   ;;  %v3808_v1 = vld [vmem:[#allocation5 + $0x30] sm:$0xff]  }
  0x7f   : > { %3082 = vmatprep.subr.bf16.mxu1 %v3787_v56  ;;  %3354 = vmatprep.subr.bf16.mxu0 %v4193_v7  ;;  %v3807_v56 = vld [vmem:[#allocation5 + $0x70] sm:$0xff]  }
  0x80   : > { %v507_v57 = vrot.slane %v505_v46, 1 }
  0x81   : > { %1043 = vmatmul.mubr.bf16.gmra.mrb[4].mxu0 %v4251_v47  ;;  %3387 = vmatmul.mubr.bf16.gmra.mrb[4].mxu1 %v4283_v4 }
  0x82   : > { %3083 = vmatpush3.bf16.msra.mxu1 %v3788_v0  ;;  %3355 = vmatpush3.bf16.msra.mxu0 %v4193_v7  ;;  %v729_v7 = vrot.slane %v4297_v15, 1  ;;  %v508_v62 = vor.u32 %v507_v57, %v503_v44  ;;  %v4375_v44 = vld [vmem:[#allocation2 + $0x60] sm:$0xff]   ;;  %v4380_v57 = vld [vmem:[#allocation2 + $0x68] ss:$0 sps:$4 sm:$0xff]  }
  0x83   : > { %3084 = vmatprep.subr.bf16.mxu1 %v3789_v2  ;;  %3356 = vmatprep.subr.bf16.mxu0 %v4197_v10  ;;  %v738_v2 = vrot.slane %v4341_v60, 1 }
  0x84   : > { %v4309_v32 = vsel %vm688_vm1, %v728_v18, %v729_v7  ;;  %1050 = vmatprep.mubr.bf16.mxu0 %v4315_v36  ;;  %v4351_v11 = vsel %vm453_vm0, %v508_v62, %v512_v58  ;;  %v4361_v18 = vld [vmem:[#allocation2 + $0x58] ss:$0 sps:$4 sm:$0xff]   ;;  %v527_v58 = vshrl.u32 %v4375_v44, 16 }
  0x85   : > { %3390 = vmatprep.mubr.bf16.mxu1 %v4309_v32  ;;  %v522_v7 = vshll.u32 %v4361_v18, 16 }
  0x86   : > { %3085 = vmatpush3.bf16.msra.mxu1 %v3790_v5  ;;  %3357 = vmatpush3.bf16.msra.mxu0 %v4197_v10  ;;  %v4319_v10 = vsel %vm688_vm1, %v731_v27, %v732_v34  ;;  %v3809_v5 = vld [vmem:[#allocation5 + $0x78] sm:$0xff]   ;;  %v4369_v27 = vld [vmem:[#allocation2 + $0x8] ss:$0 sps:$4 sm:$0xff]  }
  0x87   : > { %3086 = vmatprep.subr.bf16.mxu1 %v3797_v20  ;;  %3358 = vmatprep.subr.bf16.mxu0 %v4201_v13  ;;  %v4363_v20 = vld [vmem:[#allocation2] sm:$0xff]  }
  0x88   : > { %v457_v34 = vshll.u32 %v4363_v20, 16 }
  0x89   : > { %1051 = vmatmul.mubr.bf16.gmra.mrb[8].mxu0 %v4287_v6  ;;  %3391 = vmatmul.mubr.bf16.gmra.mrb[8].mxu1 %v4319_v10 }
  0x8a   : > { %3087 = vmatpush3.bf16.msra.mxu1 %v3798_v33  ;;  %3359 = vmatpush3.bf16.msra.mxu0 %v4201_v13  ;;  %v735_v13 = vrot.slane %v4333_v51, 1  ;;  %v455_v33 = vshrl.u32 %v4363_v20, 16  ;;  %v459_v46 = vrot.slane %v457_v34, 1 }
  0x8b   : > { %3088 = vmatprep.subr.bf16.mxu1 %v3799_v35  ;;  %3360 = vmatprep.subr.bf16.mxu0 %v4205_v16  ;;  %v519_v35 = vrot.slane %v517_v25, 1  ;;  %v4390_v25 = vld [vmem:[#allocation2 + $0x80] sm:$0xff]  }
  0x8c   : > { %v4345_v0 = vsel %vm688_vm1, %v734_v55, %v735_v13  ;;  %1058 = vmatprep.mubr.bf16.mxu0 %v4351_v11  ;;  %v529_v13 = vshll.u32 %v4375_v44, 16 }
  0x8d   : > { %3394 = vmatprep.mubr.bf16.mxu1 %v4345_v0  ;;  %v520_v55 = vor.u32 %v519_v35, %v515_v21  ;;  %v539_v21 = vshrl.u32 %v4377_v50, 16 }
  0x8e   : > { %3089 = vmatpush3.bf16.msra.mxu1 %v3800_v37  ;;  %3361 = vmatpush3.bf16.msra.mxu0 %v4205_v16  ;;  %v4355_v16 = vsel %vm688_vm1, %v737_v59, %v738_v2  ;;  %v524_v37 = vrot.slane %v522_v7, 1  ;;  %v460_v59 = vor.u32 %v459_v46, %v455_v33  ;;  %v534_v2 = vshll.u32 %v4380_v57, 16 }
  0x8f   : > { %3090 = vmatprep.subr.bf16.mxu1 %v3807_v56  ;;  %3362 = vmatprep.subr.bf16.mxu0 %v4209_v19  ;;  %v541_v7 = vshll.u32 %v4377_v50, 16 }
  0x90   : > { %v4385_v62 = vsel %vm453_vm0, %v520_v55, %v524_v37  ;;  %v536_v34 = vrot.slane %v534_v2, 1 }
  0x91   : > { %1059 = vmatmul.mubr.bf16.gmra.mrb[12].mxu0 %v4323_v39  ;;  %3395 = vmatmul.mubr.bf16.gmra.mrb[12].mxu1 %v4355_v16  ;;  %v543_v37 = vrot.slane %v541_v7, 1 }
  0x92   : > { %3091 = vmatpush3.bf16.msra.mxu1 %v3808_v1  ;;  %3363 = vmatpush3.bf16.msra.mxu0 %v4209_v19  ;;  %v462_v19 = vshll.u32 %v4369_v27, 16  ;;  %v531_v1 = vrot.slane %v529_v13, 1  ;;  %v3823_v13 = vld [vmem:[#allocation5 + $0x90] sm:$0xff]  }
  0x93   : > { %3092 = vmatprep.subr.bf16.mxu1 %v3809_v5  ;;  %3364 = vmatprep.subr.bf16.mxu0 %v4211_v22  ;;  %v4388_v5 = vld [vmem:[#allocation2 + $0x78] ss:$0 sps:$4 sm:$0xff]  }
  0x94   : > { %v464_v56 = vrot.slane %v462_v19, 1  ;;  %1066 = vmatprep.mubr.bf16.mxu0 %v4385_v62  ;;  %v532_v33 = vor.u32 %v531_v1, %v527_v58  ;;  %v546_v35 = vshll.u32 %v4388_v5, 16  ;;  %v4399_v19 = vld [vmem:[#allocation2 + $0x88] ss:$0 sps:$4 sm:$0xff]   ;;  %v544_v58 = vor.u32 %v543_v37, %v539_v21 }
  0x95   : > { %v551_v1 = vshrl.u32 %v4390_v25, 16  ;;  %v558_v2 = vshll.u32 %v4399_v19, 16  ;;  %v563_v37 = vshrl.u32 %v4219_v26, 16 }
  0x96   : > { %3093 = vmatpush3.bf16.msra.mxu1 %v3810_v12  ;;  %3365 = vmatpush3.bf16.msra.mxu0 %v4211_v22  ;;  %v3820_v12 = vld [vmem:[#allocation5 + $0x88] sm:$0xff]   ;;  %v465_v22 = vsel %vm453_vm0, %v460_v59, %v464_v56  ;;  %v4402_v46 = vsel %vm453_vm0, %v532_v33, %v536_v34  ;;  %v548_v55 = vrot.slane %v546_v35, 1  ;;  %v553_v56 = vshll.u32 %v4390_v25, 16  ;;  %v3825_v33 = vld [vmem:[#allocation5 + $0xa0] sm:$0xff]  }
  0x97   : > { %3398 = vmatprep.subr.bf16.mxu1 %v3815_v29  ;;  %1500 = vmatprep.mubr.bf16.mxu1 %v465_v22  ;;  %v3824_v22 = vld [vmem:[#allocation5 + $0x98] sm:$0xff]   ;;  %v560_v7 = vrot.slane %v558_v2, 1  ;;  %v692_v34 = vrot.slane %v4215_v23, 1  ;;  %v693_v35 = vrot.slane %v4217_v24, 1  ;;  %v582_v2 = vshll.u32 %v4233_v38, 16 }
  0x98   : > { %v4408_v59 = vsel %vm453_vm0, %v544_v58, %v548_v55  ;;  %v570_v58 = vshll.u32 %v4224_v30, 16  ;;  %v3829_v30 = vld [vmem:[#allocation5 + $0xb0] sm:$0xff]  }
  0x99   : > { %1067 = vmatmul.mubr.bf16.gmra.mrb[16].mxu0 %v4359_v14  ;;  %1501 = vmatmul.mubr.bf16.vlgmr.msra.gmra.mrb[16].mxu1 %v4363_v20 }
  0x9a   : > { %3399 = vmatpush3.bf16.msra.mxu1 %v3815_v29  ;;  %1508 = vmatprep.mubr.bf16.mxu1 %v4241_v43  ;;  %v555_v29 = vrot.slane %v553_v56, 1  ;;  %v3827_v43 = vld [vmem:[#allocation5 + $0x1c0] sm:$0xff]   ;;  %v572_v24 = vrot.slane %v570_v58, 1 }
  0x9b   : > { %1074 = vmatprep.mubr.bf16.mxu0 %v4402_v46  ;;  %3400 = vmatprep.subr.bf16.mxu1 %v3820_v12  ;;  %v4448_v58 = vld [vmem:[#allocation5 + $0x200] sm:$0xff]  }
  0x9c   : > { %v556_v21 = vor.u32 %v555_v29, %v551_v1  ;;  %3214 = vmatprep.subr.bf16.mxu0 %v3827_v43  ;;  %v4425_v1 = vsel %vm688_vm1, %v692_v34, %v693_v35  ;;  %v577_v29 = vshll.u32 %v4226_v31, 16  ;;  %v575_v43 = vshrl.u32 %v4226_v31, 16 }
  0x9d   : > { %v589_v34 = vshll.u32 %v4256_v49, 16  ;;  %v690_v35 = vrot.slane %v4369_v27, 1 }
  0x9e   : > { %3401 = vmatpush3.bf16.msra.mxu1 %v3820_v12  ;;  %v565_v12 = vshll.u32 %v4219_v26, 16  ;;  %v4421_v55 = vsel %vm453_vm0, %v556_v21, %v560_v7  ;;  %v579_v21 = vrot.slane %v577_v29, 1  ;;  %v3838_v7 = vld [vmem:[#allocation5 + $0xb8] sm:$0xff]  }
  0x9f   : > { %3402 = vmatprep.subr.bf16.mxu1 %v3823_v13 }
  0xa0   : > { %v567_v56 = vrot.slane %v565_v12, 1  ;;  %v584_v12 = vrot.slane %v582_v2, 1  ;;  %v580_v38 = vor.u32 %v579_v21, %v575_v43  ;;  %v606_v43 = vshll.u32 %v4269_v61, 16 }
  0xa1   : > { %1075 = vmatmul.mubr.bf16.gmra.mrb[20].mxu0 %v4375_v44  ;;  %1509 = vmatmul.mubr.bf16.gmra.mrb[20].mxu1 %v4215_v23  ;;  %v618_v61 = vshll.u32 %v4297_v15, 16  ;;  %v630_v15 = vshll.u32 %v4305_v28, 16  ;;  %v642_v28 = vshll.u32 %v4333_v51, 16  ;;  %v654_v51 = vshll.u32 %v4341_v60, 16 }
  0xa2   : > { %1082 = vmatprep.mubr.bf16.mxu0 %v4408_v59  ;;  %1516 = vmatprep.mubr.bf16.mxu1 %v4279_v3  ;;  %v568_v23 = vor.u32 %v567_v56, %v563_v37  ;;  %v594_v56 = vshll.u32 %v4261_v53, 16  ;;  %v601_v53 = vshll.u32 %v4263_v54, 16  ;;  %v696_v60 = vrot.slane %v4253_v48, 1  ;;  %v3831_v48 = vld [vmem:[#allocation5 + $0x188] sm:$0xff]  }
  0xa3   : > { %3403 = vmatpush3.bf16.msra.mxu1 %v3823_v13  ;;  %v3826_v13 = vld [vmem:[#allocation5 + $0xa8] sm:$0xff]  }
  0xa4   : > { %3404 = vmatprep.subr.bf16.mxu1 %v3824_v22  ;;  %v596_v27 = vrot.slane %v594_v56, 1  ;;  %v603_v2 = vrot.slane %v601_v53, 1  ;;  %v620_v56 = vrot.slane %v618_v61, 1 }
  0xa7   : > { %3405 = vmatpush3.bf16.msra.mxu1 %v3824_v22  ;;  %v4434_v22 = vsel %vm453_vm0, %v568_v23, %v572_v24  ;;  %v591_v23 = vrot.slane %v589_v34, 1 }
  0xa8   : > { %3406 = vmatprep.subr.bf16.mxu1 %v3825_v33 }
  0xa9   : > { %1083 = vmatmul.mubr.bf16.gmra.mrb[24].mxu0 %v4377_v50  ;;  %1517 = vmatmul.mubr.bf16.gmra.mrb[24].mxu1 %v4251_v47 }
  0xaa   : > { %1090 = vmatprep.mubr.bf16.mxu0 %v4421_v55  ;;  %1524 = vmatprep.mubr.bf16.mxu1 %v4315_v36 }
  0xab   : > { %3407 = vmatpush3.bf16.msra.mxu1 %v3825_v33  ;;  %v689_v33 = vrot.slane %v4363_v20, 1  ;;  %v587_v20 = vshrl.u32 %v4256_v49, 16 }
  0xac   : > { %3408 = vmatprep.subr.bf16.mxu1 %v3826_v13 }
  0xad   : > { %v4445_v37 = vsel %vm688_vm1, %v689_v33, %v690_v35  ;;  %v592_v24 = vor.u32 %v591_v23, %v587_v20  ;;  %v625_v20 = vshll.u32 %v4299_v17, 16 }
  0xaf   : > { %3409 = vmatpush3.bf16.msra.mxu1 %v3826_v13  ;;  %v4451_v13 = vsel %vm453_vm0, %v580_v38, %v584_v12  ;;  %v4461_v29 = vsel %vm453_vm0, %v592_v24, %v596_v27  ;;  %v613_v12 = vshll.u32 %v4291_v9, 16  ;;  %v611_v38 = vshrl.u32 %v4291_v9, 16 }
  0xb0   : > { %3410 = vmatprep.subr.bf16.mxu1 %v3829_v30  ;;  %v623_v27 = vshrl.u32 %v4299_v17, 16  ;;  %v627_v53 = vrot.slane %v625_v20, 1 }
  0xb1   : > { %1091 = vmatmul.mubr.bf16.gmra.mrb[28].mxu0 %v4390_v25  ;;  %1525 = vmatmul.mubr.bf16.gmra.mrb[28].mxu1 %v4287_v6  ;;  %v615_v34 = vrot.slane %v613_v12, 1 }
  0xb2   : > { %1098 = vmatprep.mubr.bf16.mxu0 %v4434_v22  ;;  %1532 = vmatprep.mubr.bf16.mxu1 %v4351_v11  ;;  %v628_v24 = vor.u32 %v627_v53, %v623_v27  ;;  %v656_v27 = vrot.slane %v654_v51, 1  ;;  %v710_v51 = vrot.slane %v4377_v50, 1 }
  0xb3   : > { %3411 = vmatpush3.bf16.msra.mxu1 %v3829_v30  ;;  %v599_v30 = vshrl.u32 %v4263_v54, 16  ;;  %v616_v35 = vor.u32 %v615_v34, %v611_v38  ;;  %v644_v38 = vrot.slane %v642_v28, 1  ;;  %v649_v34 = vshll.u32 %v4335_v52, 16 }
  0xb4   : > { %3412 = vmatprep.subr.bf16.mxu1 %v3838_v7  ;;  %v705_v28 = vrot.slane %v4361_v18, 1  ;;  %v708_v18 = vrot.slane %v4380_v57, 1  ;;  %v3840_v57 = vld [vmem:[#allocation5 + $0x1a8] sm:$0xff]  }
  0xb5   : > { %v604_v21 = vor.u32 %v603_v2, %v599_v30  ;;  %v4481_v23 = vsel %vm453_vm0, %v616_v35, %v620_v56  ;;  %v632_v30 = vrot.slane %v630_v15, 1  ;;  %v637_v2 = vshll.u32 %v4327_v42, 16 }
  0xb6   : > { %v647_v35 = vshrl.u32 %v4335_v52, 16  ;;  %v651_v56 = vrot.slane %v649_v34, 1  ;;  %v698_v15 = vrot.slane %v4287_v6, 1 }
  0xb7   : > { %3413 = vmatpush3.bf16.msra.mxu1 %v3838_v7  ;;  %v608_v7 = vrot.slane %v606_v43, 1  ;;  %v4491_v43 = vsel %vm453_vm0, %v628_v24, %v632_v30  ;;  %v3828_v30 = vld [vmem:[#allocation5 + $0x180] sm:$0xff]  }
  0xb8   : > { %3446 = vmatprep.subr.bf16.mxu1 %v4448_v58  ;;  %v652_v20 = vor.u32 %v651_v56, %v647_v35  ;;  %v707_v35 = vrot.slane %v4375_v44, 1  ;;  %v3836_v56 = vld [vmem:[#allocation5 + $0x1e0] sm:$0xff]  }
  0xb9   : > { %1099 = vmatmul.mubr.bf16.gmra.mrb[32].mxu0 %v4219_v26  ;;  %1533 = vmatmul.mubr.bf16.gmra.mrb[32].mxu1 %v4323_v39  ;;  %v4471_v33 = vsel %vm453_vm0, %v604_v21, %v608_v7  ;;  %v635_v21 = vshrl.u32 %v4327_v42, 16  ;;  %v639_v7 = vrot.slane %v637_v2, 1  ;;  %v3830_v2 = vld [vmem:[#allocation5 + $0x1c8] sm:$0xff]  }
  0xba   : > { %1106 = vmatprep.mubr.bf16.mxu0 %v4451_v13  ;;  %1540 = vmatprep.mubr.bf16.mxu1 %v4385_v62  ;;  %v4510_v53 = vsel %vm453_vm0, %v652_v20, %v656_v27  ;;  %v711_v20 = vrot.slane %v4388_v5, 1  ;;  %v4553_v27 = vsel %vm688_vm1, %v707_v35, %v708_v18  ;;  %v714_v5 = vrot.slane %v4399_v19, 1  ;;  %v3846_v19 = vld [vmem:[#allocation5 + $0x208] sm:$0xff]  }
  0xbb   : > { %v640_v12 = vor.u32 %v639_v7, %v635_v21  ;;  %v702_v21 = vrot.slane %v4325_v41, 1  ;;  %v704_v7 = vrot.slane %v4359_v14, 1  ;;  %v3835_v41 = vld [vmem:[#allocation5 + $0x198] sm:$0xff]  }
  0xbd   : > { %v4501_v61 = vsel %vm453_vm0, %v640_v12, %v644_v38  ;;  %v3834_v38 = vld [vmem:[#allocation5 + $0x1d8] sm:$0xff]   ;;  %v4542_v34 = vsel %vm688_vm1, %v704_v7, %v705_v28 }
  0xc1   : > { %1107 = vmatmul.mubr.bf16.gmra.mrb[36].mxu0 %v4226_v31  ;;  %1541 = vmatmul.mubr.bf16.gmra.mrb[36].mxu1 %v4359_v14 }
  0xc2   : > { %1114 = vmatprep.mubr.bf16.mxu0 %v4461_v29  ;;  %1548 = vmatprep.mubr.bf16.mxu1 %v4402_v46 }
  0xc9   : > { %1115 = vmatmul.mubr.bf16.gmra.mrb[40].mxu0 %v4256_v49  ;;  %1549 = vmatmul.mubr.bf16.gmra.mrb[40].mxu1 %v4375_v44 }
  0xca   : > { %1122 = vmatprep.mubr.bf16.mxu0 %v4471_v33  ;;  %1556 = vmatprep.mubr.bf16.mxu1 %v4408_v59 }
  0xd1   : > { %1123 = vmatmul.mubr.bf16.gmra.mrb[44].mxu0 %v4263_v54  ;;  %1557 = vmatmul.mubr.bf16.gmra.mrb[44].mxu1 %v4377_v50 }
  0xd2   : > { %1130 = vmatprep.mubr.bf16.mxu0 %v4481_v23  ;;  %1564 = vmatprep.mubr.bf16.mxu1 %v4421_v55 }
  0xd9   : > { %1131 = vmatmul.mubr.bf16.gmra.mrb[48].mxu0 %v4291_v9  ;;  %1565 = vmatmul.mubr.bf16.gmra.mrb[48].mxu1 %v4390_v25 }
  0xda   : > { %1138 = vmatprep.mubr.bf16.mxu0 %v4491_v43  ;;  %1572 = vmatprep.mubr.bf16.mxu1 %v4434_v22 }
  0xe1   : > { %1139 = vmatmul.mubr.bf16.gmra.mrb[52].mxu0 %v4299_v17  ;;  %1573 = vmatmul.mubr.bf16.gmra.mrb[52].mxu1 %v4219_v26  ;;  %v695_v26 = vrot.slane %v4251_v47, 1 }
  0xe2   : > { %1146 = vmatprep.mubr.bf16.mxu0 %v4501_v61  ;;  %1580 = vmatprep.mubr.bf16.mxu1 %v4451_v13 }
  0xe3   : > { %v4525_v24 = vsel %vm688_vm1, %v695_v26, %v696_v60  ;;  %v3839_v26 = vld [vmem:[#allocation5 + $0x1e8] sm:$0xff]   ;;  %v4556_v60 = vsel %vm688_vm1, %v710_v51, %v711_v20 }
  0xe9   : > { %1147 = vmatmul.mubr.bf16.gmra.mrb[56].mxu0 %v4327_v42  ;;  %1581 = vmatmul.mubr.bf16.gmra.mrb[56].mxu1 %v4226_v31  ;;  %v699_v31 = vrot.slane %v4289_v8, 1  ;;  %v3832_v8 = vld [vmem:[#allocation5 + $0x1d0] sm:$0xff]  }
  0xea   : > { %1154 = vmatprep.mubr.bf16.mxu0 %v4510_v53  ;;  %1588 = vmatprep.mubr.bf16.mxu1 %v4461_v29 }
  0xf1   : > { %1155 = vmatmul.mubr.bf16.gmra.mrb[60].mxu0 %v4335_v52  ;;  %1589 = vmatmul.mubr.bf16.gmra.mrb[60].mxu1 %v4256_v49  ;;  %v4528_v52 = vsel %vm688_vm1, %v698_v15, %v699_v31  ;;  %v701_v49 = vrot.slane %v4323_v39, 1  ;;  %v713_v15 = vrot.slane %v4390_v25, 1  ;;  %v3841_v31 = vld [vmem:[#allocation5 + $0x1f0] sm:$0xff]  }
  0xf2   : > { %3366 = vmatprep.mubr.bf16.mxu0 %v4425_v1  ;;  %1596 = vmatprep.mubr.bf16.mxu1 %v4471_v33 }
  0xf3   : > { %v4539_v12 = vsel %vm688_vm1, %v701_v49, %v702_v21  ;;  %v3848_v49 = vld [vmem:[#allocation5 + $0x218] sm:$0xff]  }
  0xf9   : > { %3367 = vmatmul.mubr.bf16.vlgmr.msra.gmra.mrb[64].mxu0 %v4525_v24  ;;  %1597 = vmatmul.mubr.bf16.gmra.mrb[64].mxu1 %v4263_v54  ;;  %v3833_v54 = vld [vmem:[#allocation5 + $0x190] sm:$0xff]  }
  0xfa   : > { %3215 = vmatpush3.bf16.msra.mxu0 %v3828_v30  ;;  %3370 = vmatprep.mubr.bf16.mxu0 %v4528_v52  ;;  %v4565_v30 = vsel %vm688_vm1, %v713_v15, %v714_v5 }
  0xfb   : > { %3216 = vmatprep.subr.bf16.mxu0 %v3830_v2  ;;  %1604 = vmatprep.mubr.bf16.mxu1 %v4481_v23  ;;  %v3842_v2 = vld [vmem:[#allocation5 + $0x1b0] sm:$0xff]  }
  0xfe   : > { %3217 = vmatpush3.bf16.msra.mxu0 %v3831_v48  ;;  %v3843_v48 = vld [vmem:[#allocation5 + $0x1f8] sm:$0xff]  }
  0xff   : > { %3218 = vmatprep.subr.bf16.mxu0 %v3832_v8 }
 0x101   : > { %3371 = vmatmul.mubr.bf16.gmra.mrb[68].mxu0 %v4539_v12  ;;  %1605 = vmatmul.mubr.bf16.gmra.mrb[68].mxu1 %v4291_v9  ;;  %v3837_v9 = vld [vmem:[#allocation5 + $0x1a0] sm:$0xff]  }
 0x102   : > { %3219 = vmatpush3.bf16.msra.mxu0 %v3833_v54  ;;  %3374 = vmatprep.mubr.bf16.mxu0 %v4542_v34 }
 0x103   : > { %3220 = vmatprep.subr.bf16.mxu0 %v3834_v38  ;;  %1612 = vmatprep.mubr.bf16.mxu1 %v4491_v43 }
 0x106   : > { %3221 = vmatpush3.bf16.msra.mxu0 %v3835_v41  ;;  %v3857_v41 = vld [vmem:[#allocation2 + $0xb0] sm:$0xff]  }
 0x107   : > { %3222 = vmatprep.subr.bf16.mxu0 %v3836_v56  ;;  %v3858_v56 = vld [vmem:[#allocation2 + $0xc0] sm:$0xff]  }
 0x109   : > { %3375 = vmatmul.mubr.bf16.gmra.mrb[72].mxu0 %v4553_v27  ;;  %1613 = vmatmul.mubr.bf16.gmra.mrb[72].mxu1 %v4299_v17  ;;  %v3844_v17 = vld [vmem:[#allocation5 + $0x1b8] sm:$0xff]  }
 0x10a   : > { %3223 = vmatpush3.bf16.msra.mxu0 %v3837_v9  ;;  %3378 = vmatprep.mubr.bf16.mxu0 %v4556_v60 }
 0x10b   : > { %3224 = vmatprep.subr.bf16.mxu0 %v3839_v26  ;;  %1620 = vmatprep.mubr.bf16.mxu1 %v4501_v61 }
 0x10e   : > { %3225 = vmatpush3.bf16.msra.mxu0 %v3840_v57 }
 0x10f   : > { %3226 = vmatprep.subr.bf16.mxu0 %v3841_v31 }
 0x111   : > { %3379 = vmatmul.mubr.bf16.gmra.mrb[76].mxu0 %v4565_v30  ;;  %1621 = vmatmul.mubr.bf16.gmra.mrb[76].mxu1 %v4327_v42  ;;  %v3847_v42 = vld [vmem:[#allocation5 + $0x210] sm:$0xff]  }
 0x112   : > { %3227 = vmatpush3.bf16.msra.mxu0 %v3842_v2  ;;  %3414 = vmatprep.mubr.bf16.mxu1 %v4445_v37  ;;  %v3855_v37 = vld [vmem:[#allocation2 + $0x90] sm:$0xff]  }
 0x113   : > { %3228 = vmatprep.subr.bf16.mxu0 %v3843_v48  ;;  %2015 = vmatprep.mubr.bf16.mxu0 %v4279_v3  ;;  %v3850_v3 = vld [vmem:[#allocation5 + $0x228] sm:$0xff]  }
 0x116   : > { %3229 = vmatpush3.bf16.msra.mxu0 %v3844_v17 }
 0x119   : > { %2016 = vmatmul.mubr.bf16.vlgmr.msra.gmra.mrb[80].mxu0 %v4251_v47  ;;  %3415 = vmatmul.mubr.bf16.vlgmr.msra.gmra.mrb[80].mxu1 %v4425_v1  ;;  %v3849_v47 = vld [vmem:[#allocation5 + $0x220] sm:$0xff]  }
 0x11a   : > { %2023 = vmatprep.mubr.bf16.mxu0 %v4315_v36  ;;  %3447 = vmatpush3.bf16.msra.mxu1 %v4448_v58  ;;  %v3852_v36 = vld [vmem:[#allocation5 + $0x238] sm:$0xff]  }
 0x11b   : > { %3418 = vmatprep.mubr.bf16.mxu1 %v4525_v24  ;;  %3448 = vmatprep.subr.bf16.mxu1 %v3846_v19 }
 0x11e   : > { %3449 = vmatpush3.bf16.msra.mxu1 %v3846_v19 }
 0x11f   : > { %3450 = vmatprep.subr.bf16.mxu1 %v3847_v42 }
 0x121   : > { %2024 = vmatmul.mubr.bf16.gmra.mrb[84].mxu0 %v4287_v6  ;;  %3419 = vmatmul.mubr.bf16.gmra.mrb[84].mxu1 %v4528_v52  ;;  %v3851_v6 = vld [vmem:[#allocation5 + $0x230] sm:$0xff]  }
 0x122   : > { %2031 = vmatprep.mubr.bf16.mxu0 %v4351_v11  ;;  %3422 = vmatprep.mubr.bf16.mxu1 %v4539_v12 }
 0x123   : > { %3451 = vmatpush3.bf16.msra.mxu1 %v3847_v42 }
 0x124   : > { %3452 = vmatprep.subr.bf16.mxu1 %v3848_v49 }
 0x127   : > { %3453 = vmatpush3.bf16.msra.mxu1 %v3848_v49 }
 0x128   : > { %3454 = vmatprep.subr.bf16.mxu1 %v3849_v47 }
 0x129   : > { %2032 = vmatmul.mubr.bf16.gmra.mrb[88].mxu0 %v4323_v39  ;;  %3423 = vmatmul.mubr.bf16.gmra.mrb[88].mxu1 %v4542_v34 }
 0x12a   : > { %2039 = vmatprep.mubr.bf16.mxu0 %v4385_v62  ;;  %3426 = vmatprep.mubr.bf16.mxu1 %v4553_v27 }
 0x12b   : > { %3455 = vmatpush3.bf16.msra.mxu1 %v3849_v47 }
 0x12c   : > { %3456 = vmatprep.subr.bf16.mxu1 %v3850_v3 }
 0x12f   : > { %3457 = vmatpush3.bf16.msra.mxu1 %v3850_v3  ;;  %v4643_v3 = vld [vmem:[#allocation2 + $0x110] sm:$0xff]  }
 0x130   : > { %3458 = vmatprep.subr.bf16.mxu1 %v3851_v6 }
 0x131   : > { %2040 = vmatmul.mubr.bf16.gmra.mrb[92].mxu0 %v4359_v14  ;;  %3427 = vmatmul.mubr.bf16.gmra.mrb[92].mxu1 %v4556_v60 }
 0x132   : > { %2047 = vmatprep.mubr.bf16.mxu0 %v4402_v46  ;;  %3430 = vmatprep.mubr.bf16.mxu1 %v4565_v30 }
 0x133   : > { %3459 = vmatpush3.bf16.msra.mxu1 %v3851_v6 }
 0x134   : > { %3460 = vmatprep.subr.bf16.mxu1 %v3852_v36 }
 0x137   : > { %3461 = vmatpush3.bf16.msra.mxu1 %v3852_v36 }
 0x139   : > { %2048 = vmatmul.mubr.bf16.gmra.mrb[96].mxu0 %v4375_v44  ;;  %3431 = vmatmul.mubr.bf16.gmra.mrb[0].mxu1 %v4236_v40 }
 0x13a   : > { %2055 = vmatprep.mubr.bf16.mxu0 %v4408_v59  ;;  %3434 = vmatprep.mubr.bf16.mxu1 %v4247_v45 }
 0x141   : > { %2056 = vmatmul.mubr.bf16.gmra.mrb[100].mxu0 %v4377_v50  ;;  %3435 = vmatmul.mubr.bf16.gmra.mrb[4].mxu1 %v4273_v63 }
 0x142   : > { %2063 = vmatprep.mubr.bf16.mxu0 %v4421_v55  ;;  %3438 = vmatprep.mubr.bf16.mxu1 %v4283_v4 }
 0x149   : > { %2064 = vmatmul.mubr.bf16.gmra.mrb[104].mxu0 %v4390_v25  ;;  %3439 = vmatmul.mubr.bf16.gmra.mrb[8].mxu1 %v4309_v32 }
 0x14a   : > { %2071 = vmatprep.mubr.bf16.mxu0 %v4434_v22  ;;  %3442 = vmatprep.mubr.bf16.mxu1 %v4319_v10  ;;  %v3856_v22 = vld [vmem:[#allocation2 + $0xa0] sm:$0xff]  }
 0x14c   : > { %v2958_v39 = vpop.f32.mrb[0].mxu0 }
 0x14d   : > { %v2959_v11 = vpop.f32.mrb[1].mxu0 }
 0x14e   : > { %v4596_v14 = vadd.f32 %v2959_v11, %v2958_v39  ;;  %v2961_v62 = vpop.f32.mrb[2].mxu0  ;;  %v661_v39 = vshll.u32 %v4643_v3, 16 }
 0x14f   : > { %v2962_v44 = vpop.f32.mrb[3].mxu0 }
 0x150   : > { %v4598_v46 = vadd.f32 %v2962_v44, %v2961_v62 }
 0x151   : > { %2072 = vmatmul.mubr.bf16.gmra.mrb[108].mxu0 %v3855_v37  ;;  %3443 = vmatmul.mubr.bf16.gmra.mrb[12].mxu1 %v4345_v0 }
 0x152   : > { %2079 = vmatprep.mubr.bf16.mxu0 %v4451_v13  ;;  %3462 = vmatprep.mubr.bf16.mxu1 %v4525_v24 }
 0x154   : > { %v2964_v50 = vpop.f32.mrb[4].mxu0 }
 0x155   : > { %v2965_v59 = vpop.f32.mrb[5].mxu0 }
 0x156   : > { %v4604_v55 = vadd.f32 %v2965_v59, %v2964_v50  ;;  %v2967_v1 = vpop.f32.mrb[6].mxu0 }
 0x157   : > { %v2968_v58 = vpop.f32.mrb[7].mxu0 }
 0x158   : > { %v4607_v21 = vadd.f32 %v2968_v58, %v2967_v1 }
 0x159   : > { %2080 = vmatmul.mubr.bf16.gmra.mrb[112].mxu0 %v3856_v22  ;;  %3463 = vmatmul.mubr.bf16.vlgmr.msra.gmra.mrb[80].mxu1 %v4528_v52  ;;  %v663_v22 = vrot.slane %v661_v39, 1 }
 0x15a   : > { %2087 = vmatprep.mubr.bf16.mxu0 %v4461_v29  ;;  %3466 = vmatprep.mubr.bf16.mxu1 %v4539_v12 }
 0x15c   : > { %v2970_v25 = vpop.f32.mrb[8].mxu0 }
 0x15d   : > { %v2971_v8 = vpop.f32.mrb[9].mxu0 }
 0x15e   : > { %v4612_v7 = vadd.f32 %v2971_v8, %v2970_v25  ;;  %v2973_v28 = vpop.f32.mrb[10].mxu0 }
 0x15f   : > { %v2974_v54 = vpop.f32.mrb[11].mxu0 }
 0x160   : > { %v4616_v38 = vadd.f32 %v2974_v54, %v2973_v28  ;;  %v3861_v54 = vld [vmem:[#allocation2 + $0xf0] sm:$0xff]  }
 0x161   : > { %2088 = vmatmul.mubr.bf16.gmra.mrb[116].mxu0 %v3857_v41  ;;  %3467 = vmatmul.mubr.bf16.gmra.mrb[84].mxu1 %v4542_v34 }
 0x162   : > { %2095 = vmatprep.mubr.bf16.mxu0 %v4471_v33  ;;  %3470 = vmatprep.mubr.bf16.mxu1 %v4553_v27 }
 0x164   : > { %v2976_v13 = vpop.f32.mrb[12].mxu0 }
 0x165   : > { %v2977_v24 = vpop.f32.mrb[13].mxu0 }
 0x166   : > { %v4621_v52 = vadd.f32 %v2977_v24, %v2976_v13  ;;  %v2979_v35 = vpop.f32.mrb[14].mxu0 }
 0x167   : > { %v2980_v18 = vpop.f32.mrb[15].mxu0 }
 0x168   : > { %v4623_v29 = vadd.f32 %v2980_v18, %v2979_v35 }
 0x169   : > { %2096 = vmatmul.mubr.bf16.gmra.mrb[120].mxu0 %v3858_v56  ;;  %3471 = vmatmul.mubr.bf16.gmra.mrb[88].mxu1 %v4556_v60  ;;  %v3859_v60 = vld [vmem:[#allocation2 + $0xd0] sm:$0xff]  }
 0x16a   : > { %2103 = vmatprep.mubr.bf16.mxu0 %v4481_v23  ;;  %3474 = vmatprep.mubr.bf16.mxu1 %v4565_v30 }
 0x16c   : > { %v2982_v12 = vpop.f32.mrb[16].mxu0  ;;  %v3094_v33 = vpop.f32.mrb[16].mxu1 }
 0x16d   : > { %v2983_v34 = vpop.f32.mrb[17].mxu0  ;;  %v3095_v27 = vpop.f32.mrb[17].mxu1 }
 0x16e   : > { %v4628_v51 = vadd.f32 %v2983_v34, %v2982_v12  ;;  %v2985_v20 = vpop.f32.mrb[18].mxu0  ;;  %v4630_v26 = vadd.f32 %v3095_v27, %v3094_v33  ;;  %v3097_v57 = vpop.f32.mrb[18].mxu1 }
 0x16f   : > { %v2986_v9 = vpop.f32.mrb[19].mxu0  ;;  %v3098_v5 = vpop.f32.mrb[19].mxu1 }
 0x170   : > { %v4632_v15 = vadd.f32 %v2986_v9, %v2985_v20  ;;  %v4634_v31 = vadd.f32 %v3098_v5, %v3097_v57  ;;  %v740_v5 = vrot.slane %v4643_v3, 1 }
 0x171   : > { %2104 = vmatmul.mubr.bf16.gmra.mrb[124].mxu0 %v3859_v60  ;;  %3475 = vmatmul.mubr.bf16.gmra.mrb[92].mxu1 %v4236_v40 }
 0x172   : > { %2111 = vmatprep.mubr.bf16.mxu0 %v4491_v43  ;;  %3478 = vmatprep.mubr.bf16.mxu1 %v4247_v45  ;;  %v3860_v43 = vld [vmem:[#allocation2 + $0xe0] sm:$0xff]   ;;  %v3854_v45 = vld [vmem:[#allocation2 + $0x118] ss:$0 sps:$4 sm:$0xff]  }
 0x173   : > { %v741_v60 = vrot.slane %v3854_v45, 1 }
 0x174   : > { %v2988_v23 = vpop.f32.mrb[20].mxu0  ;;  %v3100_v2 = vpop.f32.mrb[20].mxu1 }
 0x175   : > { %v2989_v30 = vpop.f32.mrb[21].mxu0  ;;  %v3101_v19 = vpop.f32.mrb[21].mxu1  ;;  %v742_v39 = vsel %vm688_vm1, %v740_v5, %v741_v60 }
 0x176   : > { %v4639_v48 = vadd.f32 %v2989_v30, %v2988_v23  ;;  %v2991_v17 = vpop.f32.mrb[22].mxu0  ;;  %v4641_v49 = vadd.f32 %v3101_v19, %v3100_v2  ;;  %v3103_v47 = vpop.f32.mrb[22].mxu1 }
 0x177   : > { %v2992_v42 = vpop.f32.mrb[23].mxu0  ;;  %v3104_v40 = vpop.f32.mrb[23].mxu1 }
 0x178   : > { %v4645_v6 = vadd.f32 %v2992_v42, %v2991_v17  ;;  %v4647_v36 = vadd.f32 %v3104_v40, %v3103_v47 }
 0x179   : > { %2112 = vmatmul.mubr.bf16.gmra.mrb[128].mxu0 %v3860_v43  ;;  %3479 = vmatmul.mubr.bf16.gmra.mrb[0].mxu1 %v4273_v63  ;;  %v659_v63 = vshrl.u32 %v4643_v3, 16 }
 0x17a   : > { %2119 = vmatprep.mubr.bf16.mxu0 %v4501_v61  ;;  %3482 = vmatprep.mubr.bf16.mxu1 %v4283_v4  ;;  %v666_v61 = vshll.u32 %v3854_v45, 16 }
 0x17b   : > { %v664_v41 = vor.u32 %v663_v22, %v659_v63 }
 0x17c   : > { %v2994_v11 = vpop.f32.mrb[24].mxu0  ;;  %v3106_v44 = vpop.f32.mrb[24].mxu1  ;;  %v668_v13 = vrot.slane %v666_v61, 1 }
 0x17d   : > { %v2995_v62 = vpop.f32.mrb[25].mxu0  ;;  %v3107_v1 = vpop.f32.mrb[25].mxu1 }
 0x17e   : > { %v4653_v50 = vadd.f32 %v2995_v62, %v2994_v11  ;;  %v2997_v59 = vpop.f32.mrb[26].mxu0  ;;  %v4655_v58 = vadd.f32 %v3107_v1, %v3106_v44  ;;  %v3109_v25 = vpop.f32.mrb[26].mxu1  ;;  %v669_v9 = vsel %vm453_vm0, %v664_v41, %v668_v13 }
 0x17f   : > { %v2998_v37 = vpop.f32.mrb[27].mxu0  ;;  %v3110_v4 = vpop.f32.mrb[27].mxu1 }
 0x180   : > { %v4658_v8 = vadd.f32 %v2998_v37, %v2997_v59  ;;  %v4660_v28 = vadd.f32 %v3110_v4, %v3109_v25 }
 0x181   : > { %2120 = vmatmul.mubr.bf16.gmra.mrb[132].mxu0 %v3861_v54  ;;  %3483 = vmatmul.mubr.bf16.gmra.mrb[4].mxu1 %v4309_v32 }
 0x182   : > { %2127 = vmatprep.mubr.bf16.mxu0 %v4510_v53  ;;  %3486 = vmatprep.mubr.bf16.mxu1 %v4319_v10  ;;  %v3862_v10 = vld [vmem:[#allocation2 + $0x100] sm:$0xff]  }
 0x184   : > { %v3000_v24 = vpop.f32.mrb[28].mxu0  ;;  %v3112_v18 = vpop.f32.mrb[28].mxu1 }
 0x185   : > { %v3001_v35 = vpop.f32.mrb[29].mxu0  ;;  %v3113_v34 = vpop.f32.mrb[29].mxu1 }
 0x186   : > { %v4665_v56 = vadd.f32 %v3001_v35, %v3000_v24  ;;  %v3003_v12 = vpop.f32.mrb[30].mxu0  ;;  %v4667_v20 = vadd.f32 %v3113_v34, %v3112_v18  ;;  %v3115_v27 = vpop.f32.mrb[30].mxu1 }
 0x187   : > { %v3004_v33 = vpop.f32.mrb[31].mxu0  ;;  %v3116_v53 = vpop.f32.mrb[31].mxu1 }
 0x188   : > { %v4670_v32 = vadd.f32 %v3004_v33, %v3003_v12  ;;  %v4672_v57 = vadd.f32 %v3116_v53, %v3115_v27 }
 0x189   : > { %2128 = vmatmul.mubr.bf16.gmra.mrb[136].mxu0 %v3862_v10  ;;  %3487 = vmatmul.mubr.bf16.gmra.mrb[8].mxu1 %v4345_v0 }
 0x18a   : > { %2135 = vmatprep.mubr.bf16.mxu0 %v669_v9  ;;  %3490 = vmatprep.mubr.bf16.mxu1 %v4355_v16 }
 0x18c   : > { %v3006_v23 = vpop.f32.mrb[32].mxu0  ;;  %v3118_v2 = vpop.f32.mrb[32].mxu1 }
 0x18d   : > { %v3007_v30 = vpop.f32.mrb[33].mxu0  ;;  %v3119_v42 = vpop.f32.mrb[33].mxu1 }
 0x18e   : > { %v3008_v17 = vadd.f32 %v3007_v30, %v3006_v23  ;;  %v3009_v19 = vpop.f32.mrb[34].mxu0  ;;  %v4677_v40 = vadd.f32 %v3119_v42, %v3118_v2  ;;  %v3121_v43 = vpop.f32.mrb[34].mxu1 }
 0x18f   : > { %v3010_v47 = vpop.f32.mrb[35].mxu0  ;;  %v3122_v0 = vpop.f32.mrb[35].mxu1 }
 0x190   : > { %v3011_v11 = vadd.f32 %v3010_v47, %v3009_v19  ;;  %v4680_v62 = vadd.f32 %v3122_v0, %v3121_v43 }
 0x191   : > { %2136 = vmatmul.mubr.bf16.gmra.mrb[140].mxu0 %v4643_v3  ;;  %3491 = vmatmul.mubr.bf16.gmra.mrb[12].mxu1 %v742_v39 }
 0x194   : > { %v3012_v16 = vpop.f32.mrb[36].mxu0  ;;  %v3124_v44 = vpop.f32.mrb[36].mxu1 }
 0x195   : > { %v3013_v45 = vpop.f32.mrb[37].mxu0  ;;  %v3125_v37 = vpop.f32.mrb[37].mxu1 }
 0x196   : > { %v3014_v59 = vadd.f32 %v3013_v45, %v3012_v16  ;;  %v3015_v1 = vpop.f32.mrb[38].mxu0  ;;  %v4683_v63 = vadd.f32 %v3125_v37, %v3124_v44  ;;  %v3127_v22 = vpop.f32.mrb[38].mxu1 }
 0x197   : > { %v3016_v25 = vpop.f32.mrb[39].mxu0  ;;  %v3128_v4 = vpop.f32.mrb[39].mxu1 }
 0x198   : > { %v3017_v61 = vadd.f32 %v3016_v25, %v3015_v1  ;;  %v4685_v54 = vadd.f32 %v3128_v4, %v3127_v22 }
 0x19c   : > { %v3018_v41 = vpop.f32.mrb[40].mxu0  ;;  %v3130_v24 = vpop.f32.mrb[40].mxu1 }
 0x19d   : > { %v3019_v13 = vpop.f32.mrb[41].mxu0  ;;  %v3131_v18 = vpop.f32.mrb[41].mxu1 }
 0x19e   : > { %v3020_v35 = vadd.f32 %v3019_v13, %v3018_v41  ;;  %v3021_v3 = vpop.f32.mrb[42].mxu0  ;;  %v4687_v34 = vadd.f32 %v3131_v18, %v3130_v24  ;;  %v3133_v33 = vpop.f32.mrb[42].mxu1 }
 0x19f   : > { %v3022_v12 = vpop.f32.mrb[43].mxu0  ;;  %v3134_v9 = vpop.f32.mrb[43].mxu1 }
 0x1a0   : > { %v3023_v27 = vadd.f32 %v3022_v12, %v3021_v3  ;;  %v4689_v53 = vadd.f32 %v3134_v9, %v3133_v33 }
 0x1a4   : > { %v3024_v10 = vpop.f32.mrb[44].mxu0  ;;  %v3136_v60 = vpop.f32.mrb[44].mxu1 }
 0x1a5   : > { %v3025_v5 = vpop.f32.mrb[45].mxu0  ;;  %v3137_v2 = vpop.f32.mrb[45].mxu1 }
 0x1a6   : > { %v3026_v23 = vadd.f32 %v3025_v5, %v3024_v10  ;;  %v3027_v30 = vpop.f32.mrb[46].mxu0  ;;  %v4691_v42 = vadd.f32 %v3137_v2, %v3136_v60  ;;  %v3139_v47 = vpop.f32.mrb[46].mxu1 }
 0x1a7   : > { %v3028_v19 = vpop.f32.mrb[47].mxu0  ;;  %v3140_v39 = vpop.f32.mrb[47].mxu1 }
 0x1a8   : > { %v3029_v43 = vadd.f32 %v3028_v19, %v3027_v30  ;;  %v4693_v0 = vadd.f32 %v3140_v39, %v3139_v47 }
 0x1ac   : > { %v3030_v16 = vpop.f32.mrb[48].mxu0  ;;  %v3142_v45 = vpop.f32.mrb[48].mxu1 }
 0x1ad   : > { %v3031_v44 = vpop.f32.mrb[49].mxu0  ;;  %v3143_v37 = vpop.f32.mrb[49].mxu1 }
 0x1ae   : > { %v4695_v1 = vadd.f32 %v3031_v44, %v3030_v16  ;;  %v3033_v25 = vpop.f32.mrb[50].mxu0  ;;  %v3144_v22 = vadd.f32 %v3143_v37, %v3142_v45  ;;  %v3145_v4 = vpop.f32.mrb[50].mxu1 }
 0x1af   : > { %v3034_v41 = vpop.f32.mrb[51].mxu0  ;;  %v3146_v24 = vpop.f32.mrb[51].mxu1 }
 0x1b0   : > { %v4697_v13 = vadd.f32 %v3034_v41, %v3033_v25  ;;  %v4699_v3 = vadd.f32 %v3144_v22, %v3008_v17  ;;  %v3147_v18 = vadd.f32 %v3146_v24, %v3145_v4 }
 0x1b2   : > { %v4701_v12 = vadd.f32 %v3147_v18, %v3011_v11 }
 0x1b4   : > { %v3036_v33 = vpop.f32.mrb[52].mxu0  ;;  %v3148_v9 = vpop.f32.mrb[52].mxu1 }
 0x1b5   : > { %v3037_v10 = vpop.f32.mrb[53].mxu0  ;;  %v3149_v60 = vpop.f32.mrb[53].mxu1 }
 0x1b6   : > { %v4703_v5 = vadd.f32 %v3037_v10, %v3036_v33  ;;  %v3039_v30 = vpop.f32.mrb[54].mxu0  ;;  %v3150_v2 = vadd.f32 %v3149_v60, %v3148_v9  ;;  %v3151_v19 = vpop.f32.mrb[54].mxu1 }
 0x1b7   : > { %v3040_v47 = vpop.f32.mrb[55].mxu0  ;;  %v3152_v16 = vpop.f32.mrb[55].mxu1 }
 0x1b8   : > { %v4705_v39 = vadd.f32 %v3040_v47, %v3039_v30  ;;  %v4707_v45 = vadd.f32 %v3150_v2, %v3014_v59  ;;  %v3153_v17 = vadd.f32 %v3152_v16, %v3151_v19 }
 0x1ba   : > { %v4709_v44 = vadd.f32 %v3153_v17, %v3017_v61 }
 0x1bc   : > { %v3042_v11 = vpop.f32.mrb[56].mxu0  ;;  %v3154_v37 = vpop.f32.mrb[56].mxu1 }
 0x1bd   : > { %v3043_v25 = vpop.f32.mrb[57].mxu0  ;;  %v3155_v4 = vpop.f32.mrb[57].mxu1 }
 0x1be   : > { %v4711_v22 = vadd.f32 %v3043_v25, %v3042_v11  ;;  %v3045_v41 = vpop.f32.mrb[58].mxu0  ;;  %v3156_v24 = vadd.f32 %v3155_v4, %v3154_v37  ;;  %v3157_v18 = vpop.f32.mrb[58].mxu1 }
 0x1bf   : > { %v3046_v33 = vpop.f32.mrb[59].mxu0  ;;  %v3158_v10 = vpop.f32.mrb[59].mxu1 }
 0x1c0   : > { %v4713_v9 = vadd.f32 %v3046_v33, %v3045_v41  ;;  %v4715_v60 = vadd.f32 %v3156_v24, %v3020_v35  ;;  %v3159_v59 = vadd.f32 %v3158_v10, %v3157_v18 }
 0x1c2   : > { %v4717_v30 = vadd.f32 %v3159_v59, %v3023_v27 }
 0x1c4   : > { %5032 = vst [vmem:[#allocation11_spill] sm:$0xff] %v4717_v30  ;;  %v3048_v61 = vpop.f32.mrb[60].mxu0  ;;  %v3160_v2 = vpop.f32.mrb[60].mxu1 }
 0x1c5   : > { %v3049_v19 = vpop.f32.mrb[61].mxu0  ;;  %v3161_v16 = vpop.f32.mrb[61].mxu1 }
 0x1c6   : > { %v4719_v47 = vadd.f32 %v3049_v19, %v3048_v61  ;;  %v3051_v17 = vpop.f32.mrb[62].mxu0  ;;  %v3162_v11 = vadd.f32 %v3161_v16, %v3160_v2  ;;  %v3163_v25 = vpop.f32.mrb[62].mxu1 }
 0x1c7   : > { %v3052_v37 = vpop.f32.mrb[63].mxu0  ;;  %v3164_v41 = vpop.f32.mrb[63].mxu1 }
 0x1c8   : > { %v4721_v4 = vadd.f32 %v3052_v37, %v3051_v17  ;;  %v4723_v33 = vadd.f32 %v3162_v11, %v3026_v23  ;;  %v3165_v35 = vadd.f32 %v3164_v41, %v3163_v25 }
 0x1ca   : > { %v4725_v24 = vadd.f32 %v3165_v35, %v3029_v43 }
 0x1cc   : > { %v3368_v27 = vpop.f32.mrb[64].mxu0  ;;  %v3166_v10 = vpop.f32.mrb[64].mxu1 }
 0x1cd   : > { %v1206_v18 = vadd.f32 %v3368_v27, %v4604_v55  ;;  %v1197_v59 = vpop.f32.mrb[65].mxu0  ;;  %v3167_v19 = vpop.f32.mrb[65].mxu1 }
 0x1ce   : > { %v1198_v61 = vadd.f32 %v4596_v14, %v1197_v59  ;;  %v3369_v30 = vpop.f32.mrb[66].mxu0  ;;  %v3168_v16 = vadd.f32 %v3167_v19, %v3166_v10  ;;  %v3169_v23 = vpop.f32.mrb[66].mxu1 }
 0x1cf   : > { %v4730_v2 = vadd.f32 %v4641_v49, %v1206_v18  ;;  %v1209_v17 = vadd.f32 %v3369_v30, %v4607_v21  ;;  %v1200_v11 = vpop.f32.mrb[67].mxu0  ;;  %v3170_v55 = vpop.f32.mrb[67].mxu1 }
 0x1d0   : > { %v4734_v43 = vadd.f32 %v4630_v26, %v1198_v61  ;;  %v1201_v25 = vadd.f32 %v4598_v46, %v1200_v11  ;;  %v4738_v37 = vadd.f32 %v3168_v16, %v4695_v1  ;;  %v3171_v41 = vadd.f32 %v3170_v55, %v3169_v23 }
 0x1d1   : > { %v4741_v14 = vadd.f32 %v4647_v36, %v1209_v17 }
 0x1d2   : > { %v4744_v49 = vadd.f32 %v4634_v31, %v1201_v25  ;;  %v4747_v21 = vadd.f32 %v3171_v41, %v4697_v13 }
 0x1d4   : > { %v3372_v30 = vpop.f32.mrb[68].mxu0  ;;  %v3172_v35 = vpop.f32.mrb[68].mxu1 }
 0x1d5   : > { %v1222_v26 = vadd.f32 %v3372_v30, %v4621_v52  ;;  %v1213_v27 = vpop.f32.mrb[69].mxu0  ;;  %v3173_v18 = vpop.f32.mrb[69].mxu1 }
 0x1d6   : > { %v1214_v46 = vadd.f32 %v4612_v7, %v1213_v27  ;;  %v3373_v1 = vpop.f32.mrb[70].mxu0  ;;  %v3174_v36 = vadd.f32 %v3173_v18, %v3172_v35  ;;  %v3175_v31 = vpop.f32.mrb[70].mxu1 }
 0x1d7   : > { %v4752_v10 = vadd.f32 %v4667_v20, %v1222_v26  ;;  %v1225_v59 = vadd.f32 %v3373_v1, %v4623_v29  ;;  %v1216_v61 = vpop.f32.mrb[71].mxu0  ;;  %v3176_v52 = vpop.f32.mrb[71].mxu1 }
 0x1d8   : > { %v4756_v13 = vadd.f32 %v4655_v58, %v1214_v46  ;;  %v1217_v19 = vadd.f32 %v4616_v38, %v1216_v61  ;;  %v4760_v16 = vadd.f32 %v3174_v36, %v4703_v5  ;;  %v3177_v17 = vadd.f32 %v3176_v52, %v3175_v31 }
 0x1d9   : > { %v4763_v7 = vadd.f32 %v4672_v57, %v1225_v59 }
 0x1da   : > { %v4766_v20 = vadd.f32 %v4660_v28, %v1217_v19  ;;  %v4769_v29 = vadd.f32 %v3177_v17, %v4705_v39 }
 0x1dc   : > { %v3376_v23 = vpop.f32.mrb[72].mxu0  ;;  %v3178_v11 = vpop.f32.mrb[72].mxu1 }
 0x1dd   : > { %v1238_v58 = vadd.f32 %v3376_v23, %v4639_v48  ;;  %v1229_v25 = vpop.f32.mrb[73].mxu0  ;;  %v3179_v55 = vpop.f32.mrb[73].mxu1 }
 0x1de   : > { %v1230_v38 = vadd.f32 %v4628_v51, %v1229_v25  ;;  %v3377_v5 = vpop.f32.mrb[74].mxu0  ;;  %v3180_v57 = vadd.f32 %v3179_v55, %v3178_v11  ;;  %v3181_v28 = vpop.f32.mrb[74].mxu1 }
 0x1df   : > { %v4774_v41 = vadd.f32 %v4683_v63, %v1238_v58  ;;  %v1241_v30 = vadd.f32 %v3377_v5, %v4645_v6  ;;  %v1232_v26 = vpop.f32.mrb[75].mxu0  ;;  %v3182_v48 = vpop.f32.mrb[75].mxu1 }
 0x1e0   : > { %v4778_v39 = vadd.f32 %v4677_v40, %v1230_v38  ;;  %v1233_v35 = vadd.f32 %v4632_v15, %v1232_v26  ;;  %v4782_v27 = vadd.f32 %v3180_v57, %v4711_v22  ;;  %v3183_v46 = vadd.f32 %v3182_v48, %v3181_v28 }
 0x1e1   : > { %v4785_v51 = vadd.f32 %v4685_v54, %v1241_v30 }
 0x1e2   : > { %v1538_v63 = vadd.f32 %v4680_v62, %v1233_v35  ;;  %v4789_v18 = vadd.f32 %v3183_v46, %v4713_v9 }
 0x1e4   : > { %v3380_v6 = vpop.f32.mrb[76].mxu0  ;;  %v3184_v40 = vpop.f32.mrb[76].mxu1 }
 0x1e5   : > { %v1254_v1 = vadd.f32 %v3380_v6, %v4665_v56  ;;  %v1245_v36 = vpop.f32.mrb[77].mxu0  ;;  %v3185_v59 = vpop.f32.mrb[77].mxu1 }
 0x1e6   : > { %v1246_v15 = vadd.f32 %v4653_v50, %v1245_v36  ;;  %v3381_v31 = vpop.f32.mrb[78].mxu0  ;;  %v3186_v54 = vadd.f32 %v3185_v59, %v3184_v40  ;;  %v3187_v19 = vpop.f32.mrb[78].mxu1 }
 0x1e7   : > { %v4794_v22 = vadd.f32 %v4691_v42, %v1254_v1  ;;  %v1257_v61 = vadd.f32 %v3381_v31, %v4670_v32  ;;  %v1248_v62 = vpop.f32.mrb[79].mxu0  ;;  %v3188_v17 = vpop.f32.mrb[79].mxu1 }
 0x1e8   : > { %v1551_v9 = vadd.f32 %v4687_v34, %v1246_v15  ;;  %v1249_v52 = vadd.f32 %v4658_v8, %v1248_v62  ;;  %v4800_v56 = vadd.f32 %v3186_v54, %v4719_v47  ;;  %v3189_v23 = vadd.f32 %v3188_v17, %v3187_v19 }
 0x1e9   : > { %v4803_v50 = vadd.f32 %v4693_v0, %v1257_v61 }
 0x1ea   : > { %v1554_v42 = vadd.f32 %v4689_v53, %v1249_v52  ;;  %v4807_v58 = vadd.f32 %v3189_v23, %v4721_v4 }
 0x1ec   : > { %v3230_v32 = vpop.f32.mrb[80].mxu0 }
 0x1ed   : > { %v3231_v11 = vpop.f32.mrb[81].mxu0 }
 0x1ee   : > { %v3232_v25 = vadd.f32 %v3231_v11, %v3230_v32  ;;  %v3233_v38 = vpop.f32.mrb[82].mxu0 }
 0x1ef   : > { %v3234_v34 = vpop.f32.mrb[83].mxu0 }
 0x1f0   : > { %v3235_v55 = vadd.f32 %v3234_v34, %v3233_v38  ;;  %v4810_v8 = vadd.f32 %v3232_v25, %v4734_v43 }
 0x1f2   : > { %v4813_v47 = vadd.f32 %v3235_v55, %v4744_v49 }
 0x1f4   : > { %v3236_v0 = vpop.f32.mrb[84].mxu0 }
 0x1f5   : > { %v3237_v5 = vpop.f32.mrb[85].mxu0 }
 0x1f6   : > { %v3238_v57 = vadd.f32 %v3237_v5, %v3236_v0  ;;  %v3239_v30 = vpop.f32.mrb[86].mxu0 }
 0x1f7   : > { %v3240_v53 = vpop.f32.mrb[87].mxu0 }
 0x1f8   : > { %v3241_v28 = vadd.f32 %v3240_v53, %v3239_v30  ;;  %v3512_v4 = vadd.f32 %v3238_v57, %v4730_v2 }
 0x1fa   : > { %v3520_v26 = vadd.f32 %v3241_v28, %v4741_v14 }
 0x1fc   : > { %v3242_v35 = vpop.f32.mrb[88].mxu0 }
 0x1fd   : > { %v3243_v48 = vpop.f32.mrb[89].mxu0 }
 0x1fe   : > { %v3244_v46 = vadd.f32 %v3243_v48, %v3242_v35  ;;  %v3245_v6 = vpop.f32.mrb[90].mxu0 }
 0x1ff   : > { %v3246_v1 = vpop.f32.mrb[91].mxu0 }
 0x200   : > { %v3247_v43 = vadd.f32 %v3246_v1, %v3245_v6  ;;  %v4818_v40 = vadd.f32 %v3244_v46, %v4756_v13 }
 0x202   : > { %v4821_v49 = vadd.f32 %v3247_v43, %v4766_v20 }
 0x204   : > { %v3248_v36 = vpop.f32.mrb[92].mxu0 }
 0x205   : > { %v3249_v15 = vpop.f32.mrb[93].mxu0 }
 0x206   : > { %v3250_v59 = vadd.f32 %v3249_v15, %v3248_v36  ;;  %v3251_v31 = vpop.f32.mrb[94].mxu0 }
 0x207   : > { %v3252_v54 = vpop.f32.mrb[95].mxu0 }
 0x208   : > { %v3253_v2 = vadd.f32 %v3252_v54, %v3251_v31  ;;  %v4824_v14 = vadd.f32 %v3250_v59, %v4752_v10 }
 0x20a   : > { %v4827_v61 = vadd.f32 %v3253_v2, %v4763_v7 }
 0x20c   : > { %v3254_v19 = vpop.f32.mrb[96].mxu0 }
 0x20d   : > { %v3255_v62 = vpop.f32.mrb[97].mxu0 }
 0x20e   : > { %v3256_v52 = vadd.f32 %v3255_v62, %v3254_v19  ;;  %v3257_v13 = vpop.f32.mrb[98].mxu0  ;;  %v4854_v19 = vld [vmem:[%s5012_s2] ss:$0 sm:$0xff] }
 0x20f   : > { %v3258_v17 = vpop.f32.mrb[99].mxu0 }
 0x210   : > { %v3259_v23 = vadd.f32 %v3258_v17, %v3257_v13  ;;  %v4830_v20 = vadd.f32 %v3256_v52, %v4778_v39 }
 0x212   : > { %v4832_v32 = vadd.f32 %v3259_v23, %v1538_v63 }
 0x214   : > { %v3260_v11 = vpop.f32.mrb[100].mxu0 }
 0x215   : > { %v3261_v25 = vpop.f32.mrb[101].mxu0 }
 0x216   : > { %v3262_v38 = vadd.f32 %v3261_v25, %v3260_v11  ;;  %v3263_v34 = vpop.f32.mrb[102].mxu0 }
 0x217   : > { %v3264_v10 = vpop.f32.mrb[103].mxu0 }
 0x218   : > { %v3265_v55 = vadd.f32 %v3264_v10, %v3263_v34  ;;  %v4835_v7 = vadd.f32 %v3262_v38, %v4774_v41 }
 0x21a   : > { %v4838_v0 = vadd.f32 %v3265_v55, %v4785_v51 }
 0x21c   : > { %v3266_v5 = vpop.f32.mrb[104].mxu0 }
 0x21d   : > { %v3267_v57 = vpop.f32.mrb[105].mxu0 }
 0x21e   : > { %v3268_v30 = vadd.f32 %v3267_v57, %v3266_v5  ;;  %v3269_v53 = vpop.f32.mrb[106].mxu0 }
 0x21f   : > { %v3270_v39 = vpop.f32.mrb[107].mxu0 }
 0x220   : > { %v3271_v63 = vadd.f32 %v3270_v39, %v3269_v53  ;;  %v4840_v28 = vadd.f32 %v3268_v30, %v1551_v9 }
 0x222   : > { %v4842_v35 = vadd.f32 %v3271_v63, %v1554_v42 }
 0x224   : > { %v3272_v48 = vpop.f32.mrb[108].mxu0 }
 0x225   : > { %v3273_v46 = vpop.f32.mrb[109].mxu0 }
 0x226   : > { %v3274_v6 = vadd.f32 %v3273_v46, %v3272_v48  ;;  %v3275_v1 = vpop.f32.mrb[110].mxu0 }
 0x227   : > { %v3276_v41 = vpop.f32.mrb[111].mxu0 }
 0x228   : > { %v3277_v43 = vadd.f32 %v3276_v41, %v3275_v1  ;;  %v4845_v51 = vadd.f32 %v3274_v6, %v4794_v22 }
 0x22a   : > { %v4848_v36 = vadd.f32 %v3277_v43, %v4803_v50 }
 0x22c   : > { %v3278_v15 = vpop.f32.mrb[112].mxu0  ;;  %v3464_v59 = vpop.f32.mrb[80].mxu1 }
 0x22d   : > { %v3279_v31 = vpop.f32.mrb[113].mxu0  ;;  %v3513_v9 = vadd.f32 %v3512_v4, %v3464_v59  ;;  %v2178_v54 = vpop.f32.mrb[81].mxu1 }
 0x22e   : > { %v3280_v42 = vadd.f32 %v3279_v31, %v3278_v15  ;;  %v3281_v2 = vpop.f32.mrb[114].mxu0  ;;  %v3517_v62 = vadd.f32 %v4810_v8, %v2178_v54  ;;  %v3465_v22 = vpop.f32.mrb[82].mxu1 }
 0x22f   : > { %v3282_v52 = vpop.f32.mrb[115].mxu0  ;;  %v3521_v50 = vadd.f32 %v3520_v26, %v3465_v22  ;;  %v2181_v17 = vpop.f32.mrb[83].mxu1  ;;  %v2346_v11 = vadd.f32 %v3513_v9, %v4854_v19 }
 0x230   : > { %v3283_v13 = vadd.f32 %v3282_v52, %v3281_v2  ;;  %v4860_v23 = vadd.f32 %v4699_v3, %v3280_v42  ;;  %v3525_v4 = vadd.f32 %v4813_v47, %v2181_v17  ;;  %v2344_v8 = vadd.f32 %v3517_v62, %v4854_v19 }
 0x231   : > { %v2347_v25 = vadd.f32 %v3521_v50, %v4854_v19 }
 0x232   : > { %v4866_v38 = vadd.f32 %v4701_v12, %v3283_v13  ;;  %v2345_v34 = vadd.f32 %v3525_v4, %v4854_v19 }
 0x233   : > { %v2855_v10 = vpack.c.bf16 %v2347_v25, %v2346_v11 }
 0x234   : > { %v3284_v26 = vpop.f32.mrb[116].mxu0  ;;  %v2850_v55 = vpack.c.bf16 %v2345_v34, %v2344_v8  ;;  %v3468_v5 = vpop.f32.mrb[84].mxu1  ;;  %v5033_v8 = vld [vmem:[#allocation11_spill] sm:$0xff] }
 0x235   : > { %v3285_v57 = vpop.f32.mrb[117].mxu0  ;;  %2927 = vst [vmem:[%s4870_s11 + $0x8] sm:$0xff] %v2855_v10   ;;  %v3529_v3 = vadd.f32 %v4824_v14, %v3468_v5  ;;  %v2194_v30 = vpop.f32.mrb[85].mxu1 }
 0x236   : > { %v3286_v47 = vadd.f32 %v3285_v57, %v3284_v26  ;;  %v3287_v12 = vpop.f32.mrb[118].mxu0  ;;  %2851 = vst [vmem:[%s4870_s11] sm:$0xff] %v2850_v55   ;;  %v3533_v53 = vadd.f32 %v4818_v40, %v2194_v30  ;;  %v3469_v39 = vpop.f32.mrb[86].mxu1 }
 0x237   : > { %v3288_v63 = vpop.f32.mrb[119].mxu0  ;;  %v3537_v48 = vadd.f32 %v4827_v61, %v3469_v39  ;;  %v2197_v6 = vpop.f32.mrb[87].mxu1  ;;  %v2350_v14 = vadd.f32 %v3529_v3, %v4854_v19 }
 0x238   : > { %v3289_v46 = vadd.f32 %v3288_v63, %v3287_v12  ;;  %v3575_v1 = vadd.f32 %v4707_v45, %v3286_v47  ;;  %v3541_v41 = vadd.f32 %v4821_v49, %v2197_v6  ;;  %v2348_v40 = vadd.f32 %v3533_v53, %v4854_v19 }
 0x239   : > { %v2351_v43 = vadd.f32 %v3537_v48, %v4854_v19 }
 0x23a   : > { %v4882_v15 = vadd.f32 %v4709_v44, %v3289_v46  ;;  %v2349_v59 = vadd.f32 %v3541_v41, %v4854_v19 }
 0x23b   : > { %v2865_v31 = vpack.c.bf16 %v2351_v43, %v2350_v14 }
 0x23c   : > { %v3290_v61 = vpop.f32.mrb[120].mxu0  ;;  %v2860_v9 = vpack.c.bf16 %v2349_v59, %v2348_v40  ;;  %v3472_v42 = vpop.f32.mrb[88].mxu1 }
 0x23d   : > { %v3291_v54 = vpop.f32.mrb[121].mxu0  ;;  %2929 = vst [vmem:[%s4870_s11 + $0x18] sm:$0xff] %v2865_v31   ;;  %v3545_v45 = vadd.f32 %v4835_v7, %v3472_v42  ;;  %v2210_v2 = vpop.f32.mrb[89].mxu1 }
 0x23e   : > { %v3292_v49 = vadd.f32 %v3291_v54, %v3290_v61  ;;  %v3293_v62 = vpop.f32.mrb[122].mxu0  ;;  %2928 = vst [vmem:[%s4870_s11 + $0x10] sm:$0xff] %v2860_v9   ;;  %v3549_v22 = vadd.f32 %v4830_v20, %v2210_v2  ;;  %v3473_v44 = vpop.f32.mrb[90].mxu1 }
 0x23f   : > { %v3294_v52 = vpop.f32.mrb[123].mxu0  ;;  %v3553_v50 = vadd.f32 %v4838_v0, %v3473_v44  ;;  %v2213_v17 = vpop.f32.mrb[91].mxu1  ;;  %v2354_v7 = vadd.f32 %v3545_v45, %v4854_v19 }
 0x240   : > { %v3295_v13 = vadd.f32 %v3294_v52, %v3293_v62  ;;  %v4892_v4 = vadd.f32 %v4715_v60, %v3292_v49  ;;  %v3557_v11 = vadd.f32 %v4832_v32, %v2213_v17  ;;  %v2352_v20 = vadd.f32 %v3549_v22, %v4854_v19 }
 0x241   : > { %v2355_v25 = vadd.f32 %v3553_v50, %v4854_v19 }
 0x242   : > { %v4898_v34 = vadd.f32 %v5033_v8, %v3295_v13  ;;  %v2353_v10 = vadd.f32 %v3557_v11, %v4854_v19 }
 0x243   : > { %v2875_v0 = vpack.c.bf16 %v2355_v25, %v2354_v7 }
 0x244   : > { %v3296_v26 = vpop.f32.mrb[124].mxu0  ;;  %v2870_v55 = vpack.c.bf16 %v2353_v10, %v2352_v20  ;;  %v3476_v5 = vpop.f32.mrb[92].mxu1 }
 0x245   : > { %v3297_v60 = vpop.f32.mrb[125].mxu0  ;;  %2931 = vst [vmem:[%s4870_s11 + $0x28] sm:$0xff] %v2875_v0   ;;  %v3561_v32 = vadd.f32 %v4845_v51, %v3476_v5  ;;  %v2226_v3 = vpop.f32.mrb[93].mxu1 }
 0x246   : > { %v3298_v57 = vadd.f32 %v3297_v60, %v3296_v26  ;;  %v3299_v47 = vpop.f32.mrb[126].mxu0  ;;  %2930 = vst [vmem:[%s4870_s11 + $0x20] sm:$0xff] %v2870_v55   ;;  %v3565_v30 = vadd.f32 %v4840_v28, %v2226_v3  ;;  %v3477_v12 = vpop.f32.mrb[94].mxu1 }
 0x247   : > { %v3300_v53 = vpop.f32.mrb[127].mxu0  ;;  %v3569_v39 = vadd.f32 %v4848_v36, %v3477_v12  ;;  %v2229_v48 = vpop.f32.mrb[95].mxu1  ;;  %v2358_v51 = vadd.f32 %v3561_v32, %v4854_v19 }
 0x248   : > { %v3301_v63 = vadd.f32 %v3300_v53, %v3299_v47  ;;  %v3587_v46 = vadd.f32 %v4723_v33, %v3298_v57  ;;  %v3573_v6 = vadd.f32 %v4842_v35, %v2229_v48  ;;  %v2356_v28 = vadd.f32 %v3565_v30, %v4854_v19 }
 0x249   : > { %v2359_v41 = vadd.f32 %v3569_v39, %v4854_v19 }
 0x24a   : > { %v3593_v14 = vadd.f32 %v4725_v24, %v3301_v63  ;;  %v2357_v43 = vadd.f32 %v3573_v6, %v4854_v19 }
 0x24b   : > { %v2885_v40 = vpack.c.bf16 %v2359_v41, %v2358_v51 }
 0x24c   : > { %v3302_v59 = vpop.f32.mrb[128].mxu0  ;;  %v2880_v36 = vpack.c.bf16 %v2357_v43, %v2356_v28  ;;  %v3480_v31 = vpop.f32.mrb[0].mxu1 }
 0x24d   : > { %v3303_v61 = vpop.f32.mrb[129].mxu0  ;;  %2933 = vst [vmem:[%s4870_s11 + $0x38] sm:$0xff] %v2885_v40   ;;  %v3576_v33 = vadd.f32 %v3575_v1, %v3480_v31  ;;  %v2242_v35 = vpop.f32.mrb[1].mxu1 }
 0x24e   : > { %v3304_v9 = vadd.f32 %v3303_v61, %v3302_v59  ;;  %v3305_v42 = vpop.f32.mrb[130].mxu0  ;;  %2932 = vst [vmem:[%s4870_s11 + $0x30] sm:$0xff] %v2880_v36   ;;  %v3579_v54 = vadd.f32 %v4860_v23, %v2242_v35  ;;  %v3481_v45 = vpop.f32.mrb[2].mxu1 }
 0x24f   : > { %v3306_v49 = vpop.f32.mrb[131].mxu0  ;;  %v3582_v24 = vadd.f32 %v4882_v15, %v3481_v45  ;;  %v2245_v62 = vpop.f32.mrb[3].mxu1  ;;  %v2362_v1 = vadd.f32 %v3576_v33, %v4854_v19 }
 0x250   : > { %v3307_v2 = vadd.f32 %v3306_v49, %v3305_v42  ;;  %v3602_v22 = vadd.f32 %v4738_v37, %v3304_v9  ;;  %v3585_v44 = vadd.f32 %v4866_v38, %v2245_v62  ;;  %v2360_v23 = vadd.f32 %v3579_v54, %v4854_v19 }
 0x251   : > { %v2363_v52 = vadd.f32 %v3582_v24, %v4854_v19 }
 0x252   : > { %v3608_v50 = vadd.f32 %v4747_v21, %v3307_v2  ;;  %v2361_v13 = vadd.f32 %v3585_v44, %v4854_v19 }
 0x253   : > { %v2895_v17 = vpack.c.bf16 %v2363_v52, %v2362_v1 }
 0x254   : > { %v3308_v11 = vpop.f32.mrb[132].mxu0  ;;  %v2890_v15 = vpack.c.bf16 %v2361_v13, %v2360_v23  ;;  %v3484_v7 = vpop.f32.mrb[4].mxu1 }
 0x255   : > { %v3309_v25 = vpop.f32.mrb[133].mxu0  ;;  %2935 = vst [vmem:[%s4870_s11 + $0x48] sm:$0xff] %v2895_v17   ;;  %v3588_v37 = vadd.f32 %v3587_v46, %v3484_v7  ;;  %v2258_v38 = vpop.f32.mrb[5].mxu1 }
 0x256   : > { %v3310_v8 = vadd.f32 %v3309_v25, %v3308_v11  ;;  %v3311_v20 = vpop.f32.mrb[134].mxu0  ;;  %2934 = vst [vmem:[%s4870_s11 + $0x40] sm:$0xff] %v2890_v15   ;;  %v3591_v10 = vadd.f32 %v4892_v4, %v2258_v38  ;;  %v3485_v0 = vpop.f32.mrb[6].mxu1 }
 0x257   : > { %v3312_v26 = vpop.f32.mrb[135].mxu0  ;;  %v3594_v21 = vadd.f32 %v3593_v14, %v3485_v0  ;;  %v2261_v5 = vpop.f32.mrb[7].mxu1  ;;  %v2366_v57 = vadd.f32 %v3588_v37, %v4854_v19 }
 0x258   : > { %v3313_v55 = vadd.f32 %v3312_v26, %v3311_v20  ;;  %v3599_v60 = vadd.f32 %v4760_v16, %v3310_v8  ;;  %v3597_v32 = vadd.f32 %v4898_v34, %v2261_v5  ;;  %v2364_v30 = vadd.f32 %v3591_v10, %v4854_v19 }
 0x259   : > { %v2367_v3 = vadd.f32 %v3594_v21, %v4854_v19 }
 0x25a   : > { %v3605_v47 = vadd.f32 %v4769_v29, %v3313_v55  ;;  %v2365_v4 = vadd.f32 %v3597_v32, %v4854_v19 }
 0x25b   : > { %v2905_v12 = vpack.c.bf16 %v2367_v3, %v2366_v57 }
 0x25c   : > { %v3314_v53 = vpop.f32.mrb[136].mxu0  ;;  %v2900_v39 = vpack.c.bf16 %v2365_v4, %v2364_v30  ;;  %v3488_v63 = vpop.f32.mrb[8].mxu1 }
 0x25d   : > { %v3315_v48 = vpop.f32.mrb[137].mxu0  ;;  %2937 = vst [vmem:[%s4870_s11 + $0x58] sm:$0xff] %v2905_v12   ;;  %v3600_v16 = vadd.f32 %v3599_v60, %v3488_v63  ;;  %v2274_v34 = vpop.f32.mrb[9].mxu1 }
 0x25e   : > { %v3316_v46 = vadd.f32 %v3315_v48, %v3314_v53  ;;  %v3317_v6 = vpop.f32.mrb[138].mxu0  ;;  %2936 = vst [vmem:[%s4870_s11 + $0x50] sm:$0xff] %v2900_v39   ;;  %v3603_v51 = vadd.f32 %v3602_v22, %v2274_v34  ;;  %v3489_v41 = vpop.f32.mrb[10].mxu1 }
 0x25f   : > { %v3318_v14 = vpop.f32.mrb[139].mxu0  ;;  %v3606_v29 = vadd.f32 %v3605_v47, %v3489_v41  ;;  %v2277_v43 = vpop.f32.mrb[11].mxu1  ;;  %v2370_v36 = vadd.f32 %v3600_v16, %v4854_v19 }
 0x260   : > { %v3319_v28 = vadd.f32 %v3318_v14, %v3317_v6  ;;  %v3614_v40 = vadd.f32 %v4782_v27, %v3316_v46  ;;  %v3609_v59 = vadd.f32 %v3608_v50, %v2277_v43  ;;  %v2368_v33 = vadd.f32 %v3603_v51, %v4854_v19 }
 0x261   : > { %v2371_v31 = vadd.f32 %v3606_v29, %v4854_v19 }
 0x262   : > { %v3620_v61 = vadd.f32 %v4789_v18, %v3319_v28  ;;  %v2369_v9 = vadd.f32 %v3609_v59, %v4854_v19 }
 0x263   : > { %v2915_v35 = vpack.c.bf16 %v2371_v31, %v2370_v36 }
 0x264   : > { %v3320_v42 = vpop.f32.mrb[140].mxu0  ;;  %v2910_v54 = vpack.c.bf16 %v2369_v9, %v2368_v33  ;;  %v3492_v45 = vpop.f32.mrb[12].mxu1 }
 0x265   : > { %v3321_v49 = vpop.f32.mrb[141].mxu0  ;;  %2939 = vst [vmem:[%s4870_s11 + $0x68] sm:$0xff] %v2915_v35   ;;  %v2290_v27 = vpop.f32.mrb[13].mxu1 }
 0x266   : > { %v3322_v24 = vadd.f32 %v3321_v49, %v3320_v42  ;;  %v3323_v2 = vpop.f32.mrb[142].mxu0  ;;  %2938 = vst [vmem:[%s4870_s11 + $0x60] sm:$0xff] %v2910_v54   ;;  %v3615_v62 = vadd.f32 %v3614_v40, %v2290_v27  ;;  %v3493_v22 = vpop.f32.mrb[14].mxu1 }
 0x267   : > { %v3324_v18 = vpop.f32.mrb[143].mxu0  ;;  %v2293_v52 = vpop.f32.mrb[15].mxu1 }
 0x268   : > { %v3611_v44 = vadd.f32 %v4800_v56, %v3322_v24  ;;  %v3325_v1 = vadd.f32 %v3324_v18, %v3323_v2  ;;  %v3621_v50 = vadd.f32 %v3620_v61, %v2293_v52  ;;  %v2372_v17 = vadd.f32 %v3615_v62, %v4854_v19 }
 0x26a   : > { %v3612_v23 = vadd.f32 %v3611_v44, %v3492_v45  ;;  %v3617_v13 = vadd.f32 %v4807_v58, %v3325_v1  ;;  %v2373_v11 = vadd.f32 %v3621_v50, %v4854_v19 }
 0x26c   : > { %v3618_v15 = vadd.f32 %v3617_v13, %v3493_v22  ;;  %v2920_v7 = vpack.c.bf16 %v2373_v11, %v2372_v17  ;;  %v2374_v25 = vadd.f32 %v3612_v23, %v4854_v19 }
 0x26e   : > { %v2375_v56 = vadd.f32 %v3618_v15, %v4854_v19  ;;  %2940 = vst [vmem:[%s4870_s11 + $0x70] sm:$0xff] %v2920_v7  }
 0x270   : > { %v2925_v58 = vpack.c.bf16 %v2375_v56, %v2374_v25 }
 0x272   : > { %2941 = vst [vmem:[%s4870_s11 + $0x78] sm:$0xff] %v2925_v58  }
 0x273   : > { %3934 = shalt.err (!%p3931_p3)
}
 0x274   : > { %s3935_s5 = scalar_lea.hbm %s4957_s21, 2048  ;;  %s3939_s22 = scalar_lea.hbm %s5013_s3, 4096 }
 0x275   : > { %p3936_p6 = scmp.ne.s32.totalorder %s4957_s21, %s3935_s5  ;;  %p3940_p2 = scmp.lt.u32.totalorder %s4957_s21, %s5013_s3 }
 0x276   : > { %p3941_p4 = scmp.lt.u32.totalorder %s3939_s22, %s3935_s5  ;;  %p3943_p8 = scmp.lt.u32.totalorder %s3935_s5, %s4957_s21 }
 0x277   : > { %p3937_p10 = pnand %p3936_p6, %p5034_p12 }
 0x278   : > { %p3942_p9 = por %p3941_p4, %p3940_p2 }
 0x279   : > { %p3938_p11 = pneg %p3937_p10 }
 0x27a   : > { %p3944_p1 = por %p3943_p8, %p3942_p9 }
 0x27c   : > { %p3945_p5 = pnand %p3944_p1, %p3938_p11 }
 0x27e   : > { %3948 = shalt.err (!%p3945_p5)
}
 0x27f   : > { %s4014_s10 = smov 64   ;;  %s4015_s11 = smov 4  }
 0x280   : > { %3677 = dma.vmem_to_hbm [thread:$0]  (%p5034_p12), %s4959_s9, 2048, %s4957_s21, %s4964_s15, %s4014_s10, %s4014_s10, %s4015_s11  }
 0x281 PF: > { %p3692_p0 = scmp.ge.s32.totalorder %s4007_s17, 2  ;;  %s2569_s6 = sand.u32 1, %s3987_s12  }
 0x282   : > { %p5035_p7 = scmp.ne.s32.totalorder %s5024_s26, 0  ;;  %s2570_s18 = scalar_lea.sflag [#allocation4], %s2569_s6 }
 0x284   : > { %p3687_p13 = pnand %p3692_p0, %p5035_p7 }
 0x286   : > { %3982 = dma.done.wait (!%p3687_p13), %s2570_s18, 2048  }
 0x287   : > { %3984 = vsyncadd (!%p3687_p13), %s2570_s18, 4294965248  ;;  %s18_s17 = sadd.s32 1, %s4007_s17   ;;  %s5036_s12 = smov %s3991_s13 }
 0x288   : > { %p15_p3 = scmp.ge.s32.totalorder %s18_s17, 4   ;;  %s5037_s13 = smov %s3995_s14 }
 0x289   : > { %s5038_s14 = smov %s4098_s27  ;;  %s5039_s15 = smov %s4003_s16 }
 0x28a   : > { %s5040_s16 = smov %s5042_s20  ;;  %17 = sbr.rel (!%p15_p3) target bundleno = 6 (0x6), region = 81 }
 0x291   :  { %2575 = vsyncpa [#allocation3], 1 }
 0x292   :  { %2577 = vsyncpa [#allocation3 + $0x1], 1 }
 0x293   :  { %2578 = vsyncpa [#allocation6], 1 }
 0x294   :  { %2579 = vsyncpa [#allocation4], 1 }
 0x295   :  { %2581 = vsyncpa [#allocation4 + $0x1], 1 }

// kernel: tpu_custom_call.1
= control target key start
LH: loop header
LB: loop body
LE: loop exit
PB: predicated region body
PF: predicated region fallthrough
CT: control target
= control target key end

     0   :  { %8 = vsyncpa [#allocation3], 0  ;;  %s5097_s0 = inlined_call_operand.hbm [shape: bf16[2,18,32,128], index: 0, kind: input, shape index: {}]   ;;  %s5098_s1 = inlined_call_operand.hbm [shape: bf16[3,384,128], index: 1, kind: input, shape index: {}]   ;;  %s5099_s2 = inlined_call_operand.vmem [shape: f32[1,128], index: 2, kind: input, shape index: {}]   ;;  %s5100_s3 = inlined_call_operand.hbm [shape: bf16[2,16,16,128], index: 3, kind: output, shape index: {}]  }
   0x1   :  { %10 = vsyncpa [#allocation3 + $0x1], 0 }
   0x2   :  { %11 = vsyncpa [#allocation6], 0 }
   0x3   :  { %12 = vsyncpa [#allocation4], 0 }
   0x4   :  { %14 = vsyncpa [#allocation4 + $0x1], 0  ;;  %s4066_s12 = smov 0   ;;  %s4068_s13 = smov 0  }
   0x5   :  { %s4070_s14 = smov 0   ;;  %s4072_s15 = smov 0  }
   0x6   :  { %s4074_s16 = smov 0   ;;  %s4076_s17 = smov 0  }
   0x7 LB: > { %s2685_s18 = sadd.s32 4294967295, %s4037_s17   ;;  %s2686_s19 = sadd.s32 4294967294, %s4037_s17   ;;  %s4037_s17 = sphi %s4076_s17, %s20_s17   ;;  %s4033_s16 = sphi %s4074_s16, %s5125_s16   ;;  %s4029_s15 = sphi %s4072_s15, %s5124_s15   ;;  %s4025_s14 = sphi %s4070_s14, %s5123_s14   ;;  %s4021_s13 = sphi %s4068_s13, %s5122_s13   ;;  %s4017_s12 = sphi %s4066_s12, %s5121_s12  }
   0x8   : > { %p59_p0 = scmp.ne.s32.totalorder %s4021_s13, %s4017_s12  ;;  %p4100_p1 = scmp.eq.s32.totalorder %s2685_s18, 0 }
   0x9   : > { %p4104_p2 = scmp.eq.s32.totalorder %s2685_s18, 1  ;;  %p145_p3 = scmp.eq.s32.totalorder %s2686_s19, 1 }
   0xa   : > { %s5105_s20 = scalar_select %p4100_p1, 1, 0 }
   0xb   : > { %s5106_s21 = scalar_select %p4104_p2, 1, 0 }
   0xc   : > { %p4110_p4 = por %p4100_p1, %p59_p0  ;;  %p2687_p5 = scmp.ge.s32.totalorder %s4037_s17, 1 }
   0xd   : > { %p4115_p6 = por %p145_p3, %p59_p0  ;;  %p152_p7 = scmp.lt.s32.totalorder %s4037_s17, 3 }
   0xe   : > { %s5107_s22 = scalar_select %p4110_p4, 1, 0 }
   0xf   : > { %s5108_s23 = scalar_select %p4115_p6, 1, 0 }
  0x10   : > { %p4120_p8 = pnand %p2687_p5, %p152_p7  ;;  %s4039_s25 = smov [#allocation5]  }
  0x11   : > { %s166_s26 = sshll.u32 %s4039_s25, 4  ;;  %s39_s28 = sadd.s32 1, %s4033_s16  ;;  %s167_s26 = int_to_ptr.vmem [resolvable:$true] %s166_s26 }
  0x12   : > { %s5109_s24 = scalar_select %p4120_p8, 1, 0 }
  0x13   : > { %p3708_p9 = pneg %p4120_p8  ;;  %s3893_s4 = scalar_lea.hbm %s5098_s1, 9216 }
  0x14   : > { %p3894_p12 = scmp.ne.s32.totalorder %s5098_s1, %s3893_s4  ;;  %p3900_p5 = scmp.lt.u32.totalorder %s3893_s4, %s5098_s1 }
  0x15   : > { %p4129_p11 = pnand %p3708_p9, %p4100_p1 }
  0x17   : > { %p3895_p13 = pneg %p4129_p11 }
  0x19   : > { %p3896_p0 = pnand %p3895_p13, %p3894_p12 }
  0x1b   : > { %p3897_p3 = pneg %p3896_p0 }
  0x1d   : > { %p3902_p7 = pnand %p3900_p5, %p3897_p3 }
  0x1f   : > { %3905 = shalt.err (!%p3902_p7)
}
  0x20   : > { %s3906_s9 = scalar_lea.vmem %s167_s26, 9216  ;;  %p3914_p1 = scmp.lt.s32.totalorder %s167_s26, %s167_s26 }
  0x21   : > { %p3907_p9 = scmp.ne.s32.totalorder %s167_s26, %s3906_s9  ;;  %p3915_p4 = scmp.lt.s32.totalorder %s3906_s9, %s3906_s9 }
  0x23   : > { %p3909_p10 = pnand %p3907_p9, %p3895_p13  ;;  %p3916_p8 = por %p3915_p4, %p3914_p1 }
  0x25   : > { %p3910_p6 = pneg %p3909_p10 }
  0x27   : > { %p3917_p2 = pnand %p3916_p8, %p3910_p6 }
  0x29   : > { %3920 = shalt.err (!%p3917_p2)
}
  0x2a   : > { %s4040_s10 = smov 64   ;;  %s4041_s11 = smov 4  }
  0x2b   : > { %3711 = dma.hbm_to_vmem [thread:$0]  (!%p4129_p11), %s5098_s1, 9216, %s167_s26, [#allocation6], %s4040_s10, %s4040_s10, %s4041_s11  }
  0x2c   : > { %p41_p1 = scmp.ge.s32.totalorder %s39_s28, 2  ;;  %s46_s25 = sadd.s32 1, %s4025_s14 }
  0x2d   : > { %p53_p2 = scmp.ne.s32.totalorder %s4025_s14, %s4021_s13  ;;  %p54_p4 = scmp.eq.s32.totalorder %s4037_s17, 0 }
  0x2e   : > { %s5127_s28 = smov (%p41_p1, %s39_s28), 0  ;;  %p5111_p8 = scmp.ne.s32.totalorder %s5106_s21, 0 }
  0x2f   : > { %p55_p6 = por %p54_p4, %p53_p2  ;;  %s43_s27 = ssub.s32 %s4033_s16, %s5127_s28 }
  0x30   : > { %p4161_p10 = por %p5111_p8, %p53_p2  ;;  %p3721_p12 = scmp.lt.s32.totalorder %s4037_s17, 2 }
  0x31   : > { %p44_p13 = scmp.eq.s32.totalorder %s43_s27, 0  ;;  %s186_s30 = sand.u32 1, %s4025_s14  }
  0x32   : > { %s3697_s4 = smul.u32 288, %s186_s30  ;;  %p4173_p11 = pnand %p3721_p12, %p55_p6 }
  0x33   : > { %s4170_s5 = scalar_select %p44_p13, %s4025_s14, %s46_s25  }
  0x34   : > { %s3698_s26 = smul.u32 4608, %s4033_s16  ;;  %s190_s6 = scalar_lea.vmem [#allocation2], %s3697_s4 }
  0x35   : > { %s197_s7 = sshll.u32 %s190_s6, 4  ;;  %s4184_s19 = scalar_lea.sflag [#allocation3], %s186_s30  ;;  %s4182_s7 = int_to_ptr.vmem [resolvable:$true] %s197_s7 }
  0x36   : > { %s4180_s18 = scalar_lea.hbm %s5097_s0, %s3698_s26  ;;  %p3923_p3 = pneg %p4173_p11 }
  0x37   : > { %s3921_s25 = scalar_lea.hbm %s4180_s18, 4608  ;;  %s3926_s26 = scalar_lea.hbm %s5097_s0, 9216 }
  0x38   : > { %p3922_p0 = scmp.ne.s32.totalorder %s4180_s18, %s3921_s25  ;;  %p3927_p9 = scmp.lt.u32.totalorder %s4180_s18, %s5097_s0 }
  0x39   : > { %p3928_p1 = scmp.lt.u32.totalorder %s3926_s26, %s3921_s25  ;;  %p3930_p4 = scmp.lt.u32.totalorder %s3921_s25, %s4180_s18 }
  0x3a   : > { %p3924_p5 = pnand %p3923_p3, %p3922_p0 }
  0x3b   : > { %p3929_p2 = por %p3928_p1, %p3927_p9 }
  0x3c   : > { %p3925_p7 = pneg %p3924_p5 }
  0x3d   : > { %p3931_p6 = por %p3930_p4, %p3929_p2 }
  0x3f   : > { %p3932_p8 = pnand %p3931_p6, %p3925_p7 }
  0x41   : > { %3935 = shalt.err (!%p3932_p8)
}
  0x42   : > { %s3936_s30 = scalar_lea.vmem %s4182_s7, 4608  ;;  %s4042_s21 = smov [#allocation2]  }
  0x43   : > { %p3937_p12 = scmp.ne.s32.totalorder %s4182_s7, %s3936_s30  ;;  %s3941_s27 = sshll.u32 %s4042_s21, 4  ;;  %s3942_s27 = int_to_ptr.vmem [resolvable:$false] %s3941_s27 }
  0x44   : > { %s3943_s4 = scalar_lea.vmem %s3942_s27, 9216  ;;  %p3944_p5 = scmp.lt.s32.totalorder %s4182_s7, %s3942_s27 }
  0x45   : > { %p3939_p13 = pnand %p3937_p12, %p3923_p3  ;;  %p3945_p9 = scmp.lt.s32.totalorder %s3943_s4, %s3936_s30 }
  0x47   : > { %p3940_p0 = pneg %p3939_p13  ;;  %p3946_p1 = por %p3945_p9, %p3944_p5 }
  0x49   : > { %p3947_p2 = pnand %p3946_p1, %p3940_p0 }
  0x4b   : > { %3950 = shalt.err (!%p3947_p2)
}
  0x4c   : > { %3715 = dma.hbm_to_vmem [thread:$0]  (!%p4173_p11), %s4180_s18, 4608, %s4182_s7, %s4184_s19, %s4040_s10, %s4040_s10, %s4041_s11  }
  0x4d   : > { %p5114_p3 = scmp.ne.s32.totalorder %s5109_s24, 0 }
  0x4f   : > { %209 = sbr.rel (%p5114_p3) target bundleno = 648 (0x288), region = 32 }
  0x56   : > { %s4218_s25 = sand.u32 1, %s4021_s13   ;;  %p5115_p7 = scmp.ne.s32.totalorder %s5107_s22, 0 }
  0x57   : > { %s3699_s26 = smul.u32 288, %s4218_s25  ;;  %s212_s6 = scalar_lea.sflag [#allocation3], %s4218_s25 }
  0x59   : > { %s4222_s9 = scalar_lea.vmem [#allocation2], %s3699_s26 }
  0x5a   : > { %4004 = dma.done.wait (%p5115_p7), %s212_s6, 4608  }
  0x5b   : > { %4006 = vsyncadd (%p5115_p7), %s212_s6, 4294962688  ;;  %p5116_p11 = scmp.ne.s32.totalorder %s5105_s20, 0 }
  0x5d   : > { %4008 = dma.done.wait (%p5116_p11), [#allocation6], 9216  }
  0x5e   : > { %4010 = vsyncadd (%p5116_p11), [#allocation6], 4294958080  ;;  %v3777_v0 = vld [vmem:[#allocation5 + $0x100] sm:$0xff]   ;;  %v3780_v3 = vld [vmem:[#allocation5 + $0x108] sm:$0xff]   ;;  %vm470_vm0 = vsmask.f32 7424 }
  0x5f   : > { %v4232_v1 = vld [vmem:[#allocation5 + $0x140] sm:$0xff]   ;;  %2969 = vmatprep.subr.bf16.mxu0 %v3777_v0  ;;  %v4236_v4 = vld [vmem:[#allocation5 + $0x148] sm:$0xff]   ;;  %v3783_v6 = vld [vmem:[#allocation5 + $0x110] sm:$0xff]   ;;  %vm705_vm1 = vcmask 1046528   ;;  %s2694_s24 = sshll.u32 %s4218_s25, 7  ;;  %s2873_s11 = sshll.u32 %s4029_s15, 11 }
  0x60   : > { %v3779_v2 = vld [vmem:[#allocation5 + $0xc0] sm:$0xff]   ;;  %3521 = vmatprep.subr.bf16.mxu1 %v4232_v1  ;;  %v3782_v5 = vld [vmem:[#allocation5 + $0xc8] sm:$0xff]   ;;  %v4239_v7 = vld [vmem:[#allocation5 + $0x150] sm:$0xff]   ;;  %s4958_s10 = scalar_lea.vmem [#allocation7], %s2694_s24  ;;  %s5045_s19 = scalar_lea.hbm %s5100_s3, %s2873_s11 }
  0x61   : > { %2970 = vmatpush3.bf16.msra.mxu0 %v3779_v2  ;;  %3529 = vmatpush3.bf16.msra.mxu1 %v4232_v1  ;;  %v3785_v8 = vld [vmem:[#allocation5 + $0xd0] sm:$0xff]   ;;  %v3786_v9 = vld [vmem:[#allocation5 + $0x118] sm:$0xff]   ;;  %v3789_v12 = vld [vmem:[#allocation5 + $0x120] sm:$0xff]   ;;  %s2571_s7 = sshll.u32 %s4958_s10, 4  ;;  %s2554_s15 = scalar_lea.sflag [#allocation4], %s4218_s25  ;;  %s5047_s7 = int_to_ptr.vmem [resolvable:$true] %s2571_s7 }
  0x62   : > { %2971 = vmatprep.subr.bf16.mxu0 %v3780_v3  ;;  %3522 = vmatprep.subr.bf16.mxu1 %v4236_v4  ;;  %v4243_v10 = vld [vmem:[#allocation5 + $0x158] sm:$0xff]   ;;  %v4247_v13 = vld [vmem:[#allocation5 + $0x160] sm:$0xff]   ;;  %v3792_v15 = vld [vmem:[#allocation5 + $0x128] sm:$0xff]   ;;  %s3951_s30 = scalar_lea.vmem %s5047_s7, 2048  ;;  %s4043_s21 = smov [#allocation7]  }
  0x63   : > { %v3788_v11 = vld [vmem:[#allocation5 + $0xd8] sm:$0xff]   ;;  %v3791_v14 = vld [vmem:[#allocation5 + $0xe0] sm:$0xff]   ;;  %v4251_v16 = vld [vmem:[#allocation5 + $0x168] sm:$0xff]   ;;  %p3952_p4 = scmp.ne.s32.totalorder %s5047_s7, %s3951_s30  ;;  %s3955_s27 = sshll.u32 %s4043_s21, 4  ;;  %s3956_s27 = int_to_ptr.vmem [resolvable:$false] %s3955_s27 }
  0x64   : > { %v3794_v17 = vld [vmem:[#allocation5 + $0xe8] sm:$0xff]   ;;  %v3795_v18 = vld [vmem:[#allocation5 + $0x130] sm:$0xff]   ;;  %v3798_v21 = vld [vmem:[#allocation5 + $0x138] sm:$0xff]   ;;  %s3957_s4 = scalar_lea.vmem %s3956_s27, 4096  ;;  %p3958_p12 = scmp.lt.s32.totalorder %s5047_s7, %s3956_s27 }
  0x65   : > { %2972 = vmatpush3.bf16.msra.mxu0 %v3782_v5  ;;  %3530 = vmatpush3.bf16.msra.mxu1 %v4236_v4  ;;  %v4255_v19 = vld [vmem:[#allocation5 + $0x170] sm:$0xff]   ;;  %v4257_v22 = vld [vmem:[#allocation5 + $0x178] sm:$0xff]   ;;  %v4277_v31 = vld [vmem:[%s4222_s9 + $0xa0] sm:$0xff]   ;;  %p3953_p6 = pnand %p3952_p4, %p4161_p10  ;;  %p3959_p13 = scmp.lt.s32.totalorder %s3957_s4, %s3951_s30 }
  0x66   : > { %2973 = vmatprep.subr.bf16.mxu0 %v3783_v6  ;;  %3523 = vmatprep.subr.bf16.mxu1 %v4239_v7  ;;  %v3797_v20 = vld [vmem:[#allocation5 + $0xf0] sm:$0xff]   ;;  %v4265_v24 = vld [vmem:[%s4222_s9 + $0x18] ss:$0 sps:$4 sm:$0xff]   ;;  %v3807_v33 = vld [vmem:[#allocation5 + $0x40] sm:$0xff]   ;;  %v736_v37 = vrot.slane %v4277_v31, 1 }
  0x67   : > { %v4262_v23 = vld [vmem:[%s4222_s9 + $0x10] sm:$0xff]   ;;  %v3800_v25 = vld [vmem:[#allocation5 + $0xf8] sm:$0xff]   ;;  %v491_v29 = vshll.u32 %v4265_v24, 16  ;;  %v4285_v38 = vld [vmem:[%s4222_s9 + $0xa8] ss:$0 sps:$4 sm:$0xff]   ;;  %p3954_p8 = pneg %p3953_p6  ;;  %p3960_p0 = por %p3959_p13, %p3958_p12 }
  0x68   : > { %v4268_v26 = vld [vmem:[%s4222_s9 + $0x90] sm:$0xff]   ;;  %v484_v27 = vshrl.u32 %v4262_v23, 16  ;;  %v486_v28 = vshll.u32 %v4262_v23, 16  ;;  %v4274_v30 = vld [vmem:[%s4222_s9 + $0x98] ss:$0 sps:$4 sm:$0xff]   ;;  %v737_v41 = vrot.slane %v4285_v38, 1 }
  0x69   : > { %2974 = vmatpush3.bf16.msra.mxu0 %v3785_v8  ;;  %3531 = vmatpush3.bf16.msra.mxu1 %v4239_v7  ;;  %v733_v32 = vrot.slane %v4268_v26, 1  ;;  %v493_v35 = vrot.slane %v491_v29, 1  ;;  %v734_v36 = vrot.slane %v4274_v30, 1  ;;  %v3808_v42 = vld [vmem:[#allocation5] sm:$0xff]   ;;  %v3809_v44 = vld [vmem:[#allocation5 + $0x48] sm:$0xff]   ;;  %v4311_v49 = vld [vmem:[%s4222_s9 + $0xb0] sm:$0xff]   ;;  %p3961_p5 = pnand %p3960_p0, %p3954_p8 }
  0x6a   : > { %2975 = vmatprep.subr.bf16.mxu0 %v3786_v9  ;;  %3524 = vmatprep.subr.bf16.mxu1 %v4243_v10  ;;  %v488_v34 = vrot.slane %v486_v28, 1  ;;  %v4299_v45 = vsel %vm705_vm1, %v736_v37, %v737_v41  ;;  %v3810_v46 = vld [vmem:[#allocation5 + $0x8] sm:$0xff]   ;;  %v4304_v47 = vld [vmem:[%s4222_s9 + $0x20] sm:$0xff]   ;;  %v4317_v53 = vld [vmem:[%s4222_s9 + $0xb8] ss:$0 sps:$4 sm:$0xff]   ;;  %v739_v55 = vrot.slane %v4311_v49, 1 }
  0x6b   : > { %v4288_v40 = vsel %vm705_vm1, %v733_v32, %v734_v36  ;;  %v4307_v48 = vld [vmem:[%s4222_s9 + $0x28] ss:$0 sps:$4 sm:$0xff]   ;;  %v496_v50 = vshrl.u32 %v4304_v47, 16  ;;  %v498_v51 = vshll.u32 %v4304_v47, 16  ;;  %v4320_v54 = vld [vmem:[%s4222_s9 + $0xc0] sm:$0xff]   ;;  %v3817_v56 = vld [vmem:[#allocation5 + $0x50] sm:$0xff]  }
  0x6c   : > { %v489_v39 = vor.u32 %v488_v34, %v484_v27  ;;  %3409 = vmatprep.mubr.bf16.mxu1 %v4288_v40  ;;  %v503_v52 = vshll.u32 %v4307_v48, 16  ;;  %v740_v59 = vrot.slane %v4317_v53, 1  ;;  %v742_v60 = vrot.slane %v4320_v54, 1  ;;  %v4327_v61 = vld [vmem:[%s4222_s9 + $0xc8] ss:$0 sps:$4 sm:$0xff]   ;;  %v3818_v0 = vld [vmem:[#allocation5 + $0x10] sm:$0xff]  }
  0x6d   : > { %2976 = vmatpush3.bf16.msra.mxu0 %v3788_v11  ;;  %3532 = vmatpush3.bf16.msra.mxu1 %v4243_v10  ;;  %v500_v57 = vrot.slane %v498_v51, 1  ;;  %v3819_v2 = vld [vmem:[#allocation5 + $0x58] sm:$0xff]   ;;  %v4346_v6 = vld [vmem:[%s4222_s9 + $0x30] sm:$0xff]   ;;  %v4369_v28 = vld [vmem:[%s4222_s9 + $0xe8] ss:$0 sps:$4 sm:$0xff]  }
  0x6e   : > { %2977 = vmatprep.subr.bf16.mxu0 %v3789_v12  ;;  %3525 = vmatprep.subr.bf16.mxu1 %v4247_v13  ;;  %v4293_v43 = vsel %vm470_vm0, %v489_v39, %v493_v35  ;;  %v505_v58 = vrot.slane %v503_v52, 1  ;;  %v4331_v63 = vsel %vm705_vm1, %v739_v55, %v740_v59  ;;  %v4349_v8 = vld [vmem:[%s4222_s9 + $0x38] ss:$0 sps:$4 sm:$0xff]   ;;  %v4352_v9 = vld [vmem:[%s4222_s9 + $0xd0] sm:$0xff]   ;;  %v508_v11 = vshrl.u32 %v4346_v6, 16  ;;  %v3829_v35 = vld [vmem:[#allocation5 + $0x68] sm:$0xff]  }
  0x6f   : > { %1051 = vmatprep.mubr.bf16.mxu0 %v4293_v43  ;;  %v501_v62 = vor.u32 %v500_v57, %v496_v50  ;;  %v510_v12 = vshll.u32 %v4346_v6, 16  ;;  %v749_v34 = vrot.slane %v4369_v28, 1  ;;  %v4388_v39 = vld [vmem:[%s4222_s9 + $0x40] sm:$0xff]   ;;  %v4391_v41 = vld [vmem:[%s4222_s9 + $0x48] ss:$0 sps:$4 sm:$0xff]  }
  0x70   : > { %v527_v50 = vshll.u32 %v4391_v41, 16  ;;  %v4401_v51 = vld [vmem:[%s4222_s9 + $0xf8] ss:$0 sps:$4 sm:$0xff]   ;;  %v4404_v52 = vld [vmem:[%s4222_s9 + $0x100] sm:$0xff]  }
  0x71   : > { %2978 = vmatpush3.bf16.msra.mxu0 %v3791_v14  ;;  %3533 = vmatpush3.bf16.msra.mxu1 %v4247_v13  ;;  %v4337_v3 = vsel %vm470_vm0, %v501_v62, %v505_v58  ;;  %v515_v14 = vshll.u32 %v4349_v8, 16  ;;  %v754_v59 = vrot.slane %v4404_v52, 1 }
  0x72   : > { %2979 = vmatprep.subr.bf16.mxu0 %v3792_v15  ;;  %3526 = vmatprep.subr.bf16.mxu1 %v4251_v16  ;;  %v4359_v15 = vld [vmem:[%s4222_s9 + $0xd8] ss:$0 sps:$4 sm:$0xff]   ;;  %v529_v58 = vrot.slane %v527_v50, 1  ;;  %v4453_v50 = vld [vmem:[%s4222_s9 + $0x70] sm:$0xff]  }
  0x75   : > { %2980 = vmatpush3.bf16.msra.mxu0 %v3794_v17  ;;  %3534 = vmatpush3.bf16.msra.mxu1 %v4251_v16  ;;  %v4362_v17 = vld [vmem:[%s4222_s9 + $0xe0] sm:$0xff]  }
  0x76   : > { %2981 = vmatprep.subr.bf16.mxu0 %v3795_v18  ;;  %3527 = vmatprep.subr.bf16.mxu1 %v4255_v19  ;;  %v745_v18 = vrot.slane %v4352_v9, 1  ;;  %v748_v27 = vrot.slane %v4362_v17, 1 }
  0x78   : > { %v4383_v37 = vsel %vm705_vm1, %v748_v27, %v749_v34  ;;  %v4443_v27 = vld [vmem:[%s4222_s9 + $0x8] ss:$0 sps:$4 sm:$0xff]  }
  0x79   : > { %2982 = vmatpush3.bf16.msra.mxu0 %v3797_v20  ;;  %3535 = vmatpush3.bf16.msra.mxu1 %v4255_v19  ;;  %v3827_v20 = vld [vmem:[#allocation5 + $0x60] sm:$0xff]  }
  0x7a   : > { %2983 = vmatprep.subr.bf16.mxu0 %v3798_v21  ;;  %3528 = vmatprep.subr.bf16.mxu1 %v4257_v22  ;;  %v512_v21 = vrot.slane %v510_v12, 1 }
  0x7c   : > { %v513_v29 = vor.u32 %v512_v21, %v508_v11 }
  0x7d   : > { %2984 = vmatpush3.bf16.msra.mxu0 %v3800_v25  ;;  %3536 = vmatpush3.bf16.msra.mxu1 %v4257_v22  ;;  %v517_v25 = vrot.slane %v515_v14, 1  ;;  %v4430_v14 = vld [vmem:[%s4222_s9 + $0x50] sm:$0xff]  }
  0x7e   : > { %3377 = vmatprep.subr.bf16.mxu0 %v4232_v1  ;;  %3105 = vmatprep.subr.bf16.mxu1 %v3807_v33  ;;  %v3828_v33 = vld [vmem:[#allocation5 + $0x20] sm:$0xff]   ;;  %v532_v21 = vshrl.u32 %v4430_v14, 16 }
  0x7f   : > { %v4379_v36 = vsel %vm470_vm0, %v513_v29, %v517_v25  ;;  %v534_v25 = vshll.u32 %v4430_v14, 16  ;;  %v3845_v29 = vld [vmem:[#allocation5 + $0x80] sm:$0xff]  }
  0x80   : > { %1052 = vmatmul.mubr.bf16.vlgmr.msra.gmra.mrb[0].mxu0 %v4262_v23  ;;  %3410 = vmatmul.mubr.bf16.vlgmr.msra.gmra.mrb[0].mxu1 %v4299_v45 }
  0x81   : > { %3378 = vmatpush3.bf16.msra.mxu0 %v4232_v1  ;;  %3106 = vmatpush3.bf16.msra.mxu1 %v3808_v42  ;;  %v743_v1 = vrot.slane %v4327_v61, 1  ;;  %v4394_v42 = vld [vmem:[%s4222_s9 + $0xf0] sm:$0xff]  }
  0x82   : > { %3107 = vmatprep.subr.bf16.mxu1 %v3809_v44  ;;  %3379 = vmatprep.subr.bf16.mxu0 %v4236_v4  ;;  %v520_v44 = vshrl.u32 %v4388_v39, 16  ;;  %v751_v55 = vrot.slane %v4394_v42, 1 }
  0x83   : > { %3413 = vmatprep.mubr.bf16.mxu1 %v4331_v63  ;;  %1059 = vmatprep.mubr.bf16.mxu0 %v4337_v3  ;;  %v4341_v5 = vsel %vm705_vm1, %v742_v60, %v743_v1  ;;  %v4411_v60 = vld [vmem:[%s4222_s9 + $0x108] ss:$0 sps:$4 sm:$0xff]   ;;  %v3838_v1 = vld [vmem:[#allocation5 + $0x30] sm:$0xff]  }
  0x85   : > { %3108 = vmatpush3.bf16.msra.mxu1 %v3810_v46  ;;  %3380 = vmatpush3.bf16.msra.mxu0 %v4236_v4  ;;  %v3820_v4 = vld [vmem:[#allocation5 + $0x18] sm:$0xff]   ;;  %v522_v46 = vshll.u32 %v4388_v39, 16 }
  0x86   : > { %3109 = vmatprep.subr.bf16.mxu1 %v3817_v56  ;;  %3381 = vmatprep.subr.bf16.mxu0 %v4239_v7  ;;  %v3837_v56 = vld [vmem:[#allocation5 + $0x70] sm:$0xff]  }
  0x87   : > { %v524_v57 = vrot.slane %v522_v46, 1 }
  0x88   : > { %1060 = vmatmul.mubr.bf16.gmra.mrb[4].mxu0 %v4304_v47  ;;  %3414 = vmatmul.mubr.bf16.gmra.mrb[4].mxu1 %v4341_v5 }
  0x89   : > { %3110 = vmatpush3.bf16.msra.mxu1 %v3818_v0  ;;  %3382 = vmatpush3.bf16.msra.mxu0 %v4239_v7  ;;  %v746_v7 = vrot.slane %v4359_v15, 1  ;;  %v525_v62 = vor.u32 %v524_v57, %v520_v44  ;;  %v4450_v44 = vld [vmem:[%s4222_s9 + $0x60] sm:$0xff]   ;;  %v4457_v57 = vld [vmem:[%s4222_s9 + $0x68] ss:$0 sps:$4 sm:$0xff]  }
  0x8a   : > { %3111 = vmatprep.subr.bf16.mxu1 %v3819_v2  ;;  %3383 = vmatprep.subr.bf16.mxu0 %v4243_v10  ;;  %v755_v2 = vrot.slane %v4411_v60, 1 }
  0x8b   : > { %v4373_v32 = vsel %vm705_vm1, %v745_v18, %v746_v7  ;;  %1067 = vmatprep.mubr.bf16.mxu0 %v4379_v36  ;;  %v4421_v11 = vsel %vm470_vm0, %v525_v62, %v529_v58  ;;  %v4433_v18 = vld [vmem:[%s4222_s9 + $0x58] ss:$0 sps:$4 sm:$0xff]   ;;  %v544_v58 = vshrl.u32 %v4450_v44, 16 }
  0x8c   : > { %3417 = vmatprep.mubr.bf16.mxu1 %v4373_v32  ;;  %v4425_v12 = vsel %vm705_vm1, %v754_v59, %v755_v2  ;;  %v539_v7 = vshll.u32 %v4433_v18, 16  ;;  %v551_v2 = vshll.u32 %v4457_v57, 16 }
  0x8d   : > { %3112 = vmatpush3.bf16.msra.mxu1 %v3820_v4  ;;  %3384 = vmatpush3.bf16.msra.mxu0 %v4243_v10  ;;  %v3830_v10 = vld [vmem:[#allocation5 + $0x28] sm:$0xff]   ;;  %v3839_v4 = vld [vmem:[#allocation5 + $0x78] sm:$0xff]  }
  0x8e   : > { %3113 = vmatprep.subr.bf16.mxu1 %v3827_v20  ;;  %3385 = vmatprep.subr.bf16.mxu0 %v4247_v13  ;;  %v4436_v20 = vld [vmem:[%s4222_s9] sm:$0xff]  }
  0x8f   : > { %v474_v34 = vshll.u32 %v4436_v20, 16 }
  0x90   : > { %1068 = vmatmul.mubr.bf16.gmra.mrb[8].mxu0 %v4346_v6  ;;  %3418 = vmatmul.mubr.bf16.gmra.mrb[8].mxu1 %v4383_v37 }
  0x91   : > { %3114 = vmatpush3.bf16.msra.mxu1 %v3828_v33  ;;  %3386 = vmatpush3.bf16.msra.mxu0 %v4247_v13  ;;  %v752_v13 = vrot.slane %v4401_v51, 1  ;;  %v472_v33 = vshrl.u32 %v4436_v20, 16  ;;  %v476_v46 = vrot.slane %v474_v34, 1  ;;  %v553_v34 = vrot.slane %v551_v2, 1 }
  0x92   : > { %3115 = vmatprep.subr.bf16.mxu1 %v3829_v35  ;;  %3387 = vmatprep.subr.bf16.mxu0 %v4251_v16  ;;  %v536_v35 = vrot.slane %v534_v25, 1  ;;  %v556_v25 = vshrl.u32 %v4453_v50, 16 }
  0x93   : > { %v4415_v0 = vsel %vm705_vm1, %v751_v55, %v752_v13  ;;  %1075 = vmatprep.mubr.bf16.mxu0 %v4421_v11  ;;  %v546_v13 = vshll.u32 %v4450_v44, 16  ;;  %v477_v59 = vor.u32 %v476_v46, %v472_v33 }
  0x94   : > { %3421 = vmatprep.mubr.bf16.mxu1 %v4415_v0  ;;  %v537_v55 = vor.u32 %v536_v35, %v532_v21 }
  0x95   : > { %3116 = vmatpush3.bf16.msra.mxu1 %v3830_v10  ;;  %3388 = vmatpush3.bf16.msra.mxu0 %v4251_v16  ;;  %v3840_v16 = vld [vmem:[#allocation5 + $0x38] sm:$0xff]   ;;  %v479_v10 = vshll.u32 %v4443_v27, 16 }
  0x96   : > { %3117 = vmatprep.subr.bf16.mxu1 %v3837_v56  ;;  %3389 = vmatprep.subr.bf16.mxu0 %v4255_v19 }
  0x97   : > { %v481_v56 = vrot.slane %v479_v10, 1  ;;  %v4479_v10 = vld [vmem:[%s4222_s9 + $0x88] ss:$0 sps:$4 sm:$0xff]  }
  0x98   : > { %1076 = vmatmul.mubr.bf16.gmra.mrb[12].mxu0 %v4388_v39  ;;  %3422 = vmatmul.mubr.bf16.gmra.mrb[12].mxu1 %v4425_v12  ;;  %v575_v2 = vshll.u32 %v4479_v10, 16 }
  0x99   : > { %3118 = vmatpush3.bf16.msra.mxu1 %v3838_v1  ;;  %3390 = vmatpush3.bf16.msra.mxu0 %v4255_v19  ;;  %v541_v19 = vrot.slane %v539_v7, 1  ;;  %v548_v1 = vrot.slane %v546_v13, 1  ;;  %v482_v21 = vsel %vm470_vm0, %v477_v59, %v481_v56  ;;  %v558_v7 = vshll.u32 %v4453_v50, 16  ;;  %v3853_v13 = vld [vmem:[#allocation5 + $0x90] sm:$0xff]  }
  0x9a   : > { %3119 = vmatprep.subr.bf16.mxu1 %v3839_v4  ;;  %3391 = vmatprep.subr.bf16.mxu0 %v4257_v22  ;;  %v4466_v4 = vld [vmem:[%s4222_s9 + $0x78] ss:$0 sps:$4 sm:$0xff]  }
  0x9b   : > { %v4462_v62 = vsel %vm470_vm0, %v537_v55, %v541_v19  ;;  %1517 = vmatprep.mubr.bf16.mxu1 %v482_v21  ;;  %v549_v33 = vor.u32 %v548_v1, %v544_v58  ;;  %v563_v35 = vshll.u32 %v4466_v4, 16  ;;  %v560_v19 = vrot.slane %v558_v7, 1  ;;  %v3854_v21 = vld [vmem:[#allocation5 + $0x98] sm:$0xff]  }
  0x9c   : > { %1083 = vmatprep.mubr.bf16.mxu0 %v4462_v62  ;;  %v577_v7 = vrot.slane %v575_v2, 1  ;;  %v599_v2 = vshll.u32 %v4285_v38, 16 }
  0x9d   : > { %3120 = vmatpush3.bf16.msra.mxu1 %v3840_v16  ;;  %3392 = vmatpush3.bf16.msra.mxu0 %v4257_v22  ;;  %v3850_v16 = vld [vmem:[#allocation5 + $0x88] sm:$0xff]   ;;  %v4469_v22 = vld [vmem:[%s4222_s9 + $0x80] sm:$0xff]   ;;  %v4482_v46 = vsel %vm470_vm0, %v549_v33, %v553_v34  ;;  %v565_v55 = vrot.slane %v563_v35, 1  ;;  %v561_v58 = vor.u32 %v560_v19, %v556_v25  ;;  %v709_v34 = vrot.slane %v4262_v23, 1 }
  0x9e   : > { %3425 = vmatprep.subr.bf16.mxu1 %v3845_v29  ;;  %v570_v56 = vshll.u32 %v4469_v22, 16  ;;  %v568_v1 = vshrl.u32 %v4469_v22, 16  ;;  %v3855_v33 = vld [vmem:[#allocation5 + $0xa0] sm:$0xff]   ;;  %v710_v35 = vrot.slane %v4265_v24, 1  ;;  %v580_v19 = vshrl.u32 %v4268_v26, 16 }
  0x9f   : > { %v4488_v59 = vsel %vm470_vm0, %v561_v58, %v565_v55  ;;  %v587_v58 = vshll.u32 %v4274_v30, 16  ;;  %v3859_v30 = vld [vmem:[#allocation5 + $0xb0] sm:$0xff]  }
  0xa0   : > { %1084 = vmatmul.mubr.bf16.gmra.mrb[16].mxu0 %v4430_v14  ;;  %1518 = vmatmul.mubr.bf16.vlgmr.msra.gmra.mrb[16].mxu1 %v4436_v20 }
  0xa1   : > { %3426 = vmatpush3.bf16.msra.mxu1 %v3845_v29  ;;  %1525 = vmatprep.mubr.bf16.mxu1 %v4293_v43  ;;  %v572_v29 = vrot.slane %v570_v56, 1  ;;  %v3857_v43 = vld [vmem:[#allocation5 + $0x1c0] sm:$0xff]   ;;  %v589_v24 = vrot.slane %v587_v58, 1 }
  0xa2   : > { %1091 = vmatprep.mubr.bf16.mxu0 %v4482_v46  ;;  %3427 = vmatprep.subr.bf16.mxu1 %v3850_v16  ;;  %v4528_v58 = vld [vmem:[#allocation5 + $0x200] sm:$0xff]  }
  0xa3   : > { %v573_v25 = vor.u32 %v572_v29, %v568_v1  ;;  %3241 = vmatprep.subr.bf16.mxu0 %v3857_v43  ;;  %v4505_v1 = vsel %vm705_vm1, %v709_v34, %v710_v35  ;;  %v594_v29 = vshll.u32 %v4277_v31, 16  ;;  %v592_v43 = vshrl.u32 %v4277_v31, 16 }
  0xa4   : > { %v606_v34 = vshll.u32 %v4311_v49, 16  ;;  %v707_v35 = vrot.slane %v4443_v27, 1 }
  0xa5   : > { %3428 = vmatpush3.bf16.msra.mxu1 %v3850_v16  ;;  %v582_v16 = vshll.u32 %v4268_v26, 16  ;;  %v4501_v55 = vsel %vm470_vm0, %v573_v25, %v577_v7  ;;  %v596_v25 = vrot.slane %v594_v29, 1  ;;  %v3868_v7 = vld [vmem:[#allocation5 + $0xb8] sm:$0xff]  }
  0xa6   : > { %3429 = vmatprep.subr.bf16.mxu1 %v3853_v13 }
  0xa7   : > { %v584_v56 = vrot.slane %v582_v16, 1  ;;  %v601_v16 = vrot.slane %v599_v2, 1  ;;  %v597_v38 = vor.u32 %v596_v25, %v592_v43  ;;  %v623_v43 = vshll.u32 %v4327_v61, 16 }
  0xa8   : > { %1092 = vmatmul.mubr.bf16.gmra.mrb[20].mxu0 %v4450_v44  ;;  %1526 = vmatmul.mubr.bf16.gmra.mrb[20].mxu1 %v4262_v23  ;;  %v635_v61 = vshll.u32 %v4359_v15, 16  ;;  %v647_v15 = vshll.u32 %v4369_v28, 16  ;;  %v659_v28 = vshll.u32 %v4401_v51, 16  ;;  %v671_v51 = vshll.u32 %v4411_v60, 16 }
  0xa9   : > { %1099 = vmatprep.mubr.bf16.mxu0 %v4488_v59  ;;  %1533 = vmatprep.mubr.bf16.mxu1 %v4337_v3  ;;  %v585_v23 = vor.u32 %v584_v56, %v580_v19  ;;  %v611_v56 = vshll.u32 %v4317_v53, 16  ;;  %v618_v53 = vshll.u32 %v4320_v54, 16  ;;  %v713_v60 = vrot.slane %v4307_v48, 1  ;;  %v3861_v48 = vld [vmem:[#allocation5 + $0x188] sm:$0xff]  }
  0xaa   : > { %3430 = vmatpush3.bf16.msra.mxu1 %v3853_v13  ;;  %v3856_v13 = vld [vmem:[#allocation5 + $0xa8] sm:$0xff]  }
  0xab   : > { %3431 = vmatprep.subr.bf16.mxu1 %v3854_v21  ;;  %v613_v27 = vrot.slane %v611_v56, 1  ;;  %v620_v2 = vrot.slane %v618_v53, 1  ;;  %v637_v56 = vrot.slane %v635_v61, 1 }
  0xae   : > { %3432 = vmatpush3.bf16.msra.mxu1 %v3854_v21  ;;  %v4514_v21 = vsel %vm470_vm0, %v585_v23, %v589_v24  ;;  %v608_v23 = vrot.slane %v606_v34, 1 }
  0xaf   : > { %3433 = vmatprep.subr.bf16.mxu1 %v3855_v33 }
  0xb0   : > { %1100 = vmatmul.mubr.bf16.gmra.mrb[24].mxu0 %v4453_v50  ;;  %1534 = vmatmul.mubr.bf16.gmra.mrb[24].mxu1 %v4304_v47 }
  0xb1   : > { %1107 = vmatprep.mubr.bf16.mxu0 %v4501_v55  ;;  %1541 = vmatprep.mubr.bf16.mxu1 %v4379_v36 }
  0xb2   : > { %3434 = vmatpush3.bf16.msra.mxu1 %v3855_v33  ;;  %v706_v33 = vrot.slane %v4436_v20, 1  ;;  %v604_v20 = vshrl.u32 %v4311_v49, 16 }
  0xb3   : > { %3435 = vmatprep.subr.bf16.mxu1 %v3856_v13 }
  0xb4   : > { %v4525_v19 = vsel %vm705_vm1, %v706_v33, %v707_v35  ;;  %v609_v24 = vor.u32 %v608_v23, %v604_v20  ;;  %v642_v20 = vshll.u32 %v4362_v17, 16 }
  0xb6   : > { %3436 = vmatpush3.bf16.msra.mxu1 %v3856_v13  ;;  %v4531_v13 = vsel %vm470_vm0, %v597_v38, %v601_v16  ;;  %v4541_v29 = vsel %vm470_vm0, %v609_v24, %v613_v27  ;;  %v630_v16 = vshll.u32 %v4352_v9, 16  ;;  %v628_v38 = vshrl.u32 %v4352_v9, 16 }
  0xb7   : > { %3437 = vmatprep.subr.bf16.mxu1 %v3859_v30  ;;  %v640_v27 = vshrl.u32 %v4362_v17, 16  ;;  %v644_v53 = vrot.slane %v642_v20, 1 }
  0xb8   : > { %1108 = vmatmul.mubr.bf16.gmra.mrb[28].mxu0 %v4469_v22  ;;  %1542 = vmatmul.mubr.bf16.gmra.mrb[28].mxu1 %v4346_v6  ;;  %v632_v34 = vrot.slane %v630_v16, 1 }
  0xb9   : > { %1115 = vmatprep.mubr.bf16.mxu0 %v4514_v21  ;;  %1549 = vmatprep.mubr.bf16.mxu1 %v4421_v11  ;;  %v645_v24 = vor.u32 %v644_v53, %v640_v27  ;;  %v673_v27 = vrot.slane %v671_v51, 1  ;;  %v727_v51 = vrot.slane %v4453_v50, 1 }
  0xba   : > { %3438 = vmatpush3.bf16.msra.mxu1 %v3859_v30  ;;  %v616_v30 = vshrl.u32 %v4320_v54, 16  ;;  %v633_v35 = vor.u32 %v632_v34, %v628_v38  ;;  %v661_v38 = vrot.slane %v659_v28, 1  ;;  %v666_v34 = vshll.u32 %v4404_v52, 16 }
  0xbb   : > { %3439 = vmatprep.subr.bf16.mxu1 %v3868_v7  ;;  %v722_v28 = vrot.slane %v4433_v18, 1  ;;  %v725_v18 = vrot.slane %v4457_v57, 1  ;;  %v3870_v57 = vld [vmem:[#allocation5 + $0x1a8] sm:$0xff]  }
  0xbc   : > { %v621_v25 = vor.u32 %v620_v2, %v616_v30  ;;  %v4561_v23 = vsel %vm470_vm0, %v633_v35, %v637_v56  ;;  %v649_v30 = vrot.slane %v647_v15, 1  ;;  %v654_v2 = vshll.u32 %v4394_v42, 16 }
  0xbd   : > { %v664_v35 = vshrl.u32 %v4404_v52, 16  ;;  %v668_v56 = vrot.slane %v666_v34, 1  ;;  %v715_v15 = vrot.slane %v4346_v6, 1 }
  0xbe   : > { %3440 = vmatpush3.bf16.msra.mxu1 %v3868_v7  ;;  %v625_v7 = vrot.slane %v623_v43, 1  ;;  %v4571_v43 = vsel %vm470_vm0, %v645_v24, %v649_v30  ;;  %v3858_v30 = vld [vmem:[#allocation5 + $0x180] sm:$0xff]  }
  0xbf   : > { %3473 = vmatprep.subr.bf16.mxu1 %v4528_v58  ;;  %v669_v20 = vor.u32 %v668_v56, %v664_v35  ;;  %v724_v35 = vrot.slane %v4450_v44, 1  ;;  %v3866_v56 = vld [vmem:[#allocation5 + $0x1e0] sm:$0xff]  }
  0xc0   : > { %1116 = vmatmul.mubr.bf16.gmra.mrb[32].mxu0 %v4268_v26  ;;  %1550 = vmatmul.mubr.bf16.gmra.mrb[32].mxu1 %v4388_v39  ;;  %v4551_v33 = vsel %vm470_vm0, %v621_v25, %v625_v7  ;;  %v652_v25 = vshrl.u32 %v4394_v42, 16  ;;  %v656_v7 = vrot.slane %v654_v2, 1  ;;  %v3860_v2 = vld [vmem:[#allocation5 + $0x1c8] sm:$0xff]  }
  0xc1   : > { %1123 = vmatprep.mubr.bf16.mxu0 %v4531_v13  ;;  %1557 = vmatprep.mubr.bf16.mxu1 %v4462_v62  ;;  %v4590_v53 = vsel %vm470_vm0, %v669_v20, %v673_v27  ;;  %v728_v20 = vrot.slane %v4466_v4, 1  ;;  %v4633_v27 = vsel %vm705_vm1, %v724_v35, %v725_v18  ;;  %v731_v4 = vrot.slane %v4479_v10, 1  ;;  %v3876_v10 = vld [vmem:[#allocation5 + $0x208] sm:$0xff]  }
  0xc2   : > { %v657_v16 = vor.u32 %v656_v7, %v652_v25  ;;  %v719_v25 = vrot.slane %v4391_v41, 1  ;;  %v721_v7 = vrot.slane %v4430_v14, 1  ;;  %v3865_v41 = vld [vmem:[#allocation5 + $0x198] sm:$0xff]  }
  0xc4   : > { %v4581_v61 = vsel %vm470_vm0, %v657_v16, %v661_v38  ;;  %v3864_v38 = vld [vmem:[#allocation5 + $0x1d8] sm:$0xff]   ;;  %v4622_v34 = vsel %vm705_vm1, %v721_v7, %v722_v28 }
  0xc8   : > { %1124 = vmatmul.mubr.bf16.gmra.mrb[36].mxu0 %v4277_v31  ;;  %1558 = vmatmul.mubr.bf16.gmra.mrb[36].mxu1 %v4430_v14 }
  0xc9   : > { %1131 = vmatprep.mubr.bf16.mxu0 %v4541_v29  ;;  %1565 = vmatprep.mubr.bf16.mxu1 %v4482_v46 }
  0xd0   : > { %1132 = vmatmul.mubr.bf16.gmra.mrb[40].mxu0 %v4311_v49  ;;  %1566 = vmatmul.mubr.bf16.gmra.mrb[40].mxu1 %v4450_v44 }
  0xd1   : > { %1139 = vmatprep.mubr.bf16.mxu0 %v4551_v33  ;;  %1573 = vmatprep.mubr.bf16.mxu1 %v4488_v59 }
  0xd8   : > { %1140 = vmatmul.mubr.bf16.gmra.mrb[44].mxu0 %v4320_v54  ;;  %1574 = vmatmul.mubr.bf16.gmra.mrb[44].mxu1 %v4453_v50 }
  0xd9   : > { %1147 = vmatprep.mubr.bf16.mxu0 %v4561_v23  ;;  %1581 = vmatprep.mubr.bf16.mxu1 %v4501_v55 }
  0xe0   : > { %1148 = vmatmul.mubr.bf16.gmra.mrb[48].mxu0 %v4352_v9  ;;  %1582 = vmatmul.mubr.bf16.gmra.mrb[48].mxu1 %v4469_v22 }
  0xe1   : > { %1155 = vmatprep.mubr.bf16.mxu0 %v4571_v43  ;;  %1589 = vmatprep.mubr.bf16.mxu1 %v4514_v21 }
  0xe8   : > { %1156 = vmatmul.mubr.bf16.gmra.mrb[52].mxu0 %v4362_v17  ;;  %1590 = vmatmul.mubr.bf16.gmra.mrb[52].mxu1 %v4268_v26  ;;  %v712_v26 = vrot.slane %v4304_v47, 1 }
  0xe9   : > { %1163 = vmatprep.mubr.bf16.mxu0 %v4581_v61  ;;  %1597 = vmatprep.mubr.bf16.mxu1 %v4531_v13 }
  0xea   : > { %v4605_v24 = vsel %vm705_vm1, %v712_v26, %v713_v60  ;;  %v3869_v26 = vld [vmem:[#allocation5 + $0x1e8] sm:$0xff]   ;;  %v4636_v60 = vsel %vm705_vm1, %v727_v51, %v728_v20 }
  0xf0   : > { %1164 = vmatmul.mubr.bf16.gmra.mrb[56].mxu0 %v4394_v42  ;;  %1598 = vmatmul.mubr.bf16.gmra.mrb[56].mxu1 %v4277_v31  ;;  %v716_v31 = vrot.slane %v4349_v8, 1  ;;  %v3862_v8 = vld [vmem:[#allocation5 + $0x1d0] sm:$0xff]  }
  0xf1   : > { %1171 = vmatprep.mubr.bf16.mxu0 %v4590_v53  ;;  %1605 = vmatprep.mubr.bf16.mxu1 %v4541_v29 }
  0xf8   : > { %1172 = vmatmul.mubr.bf16.gmra.mrb[60].mxu0 %v4404_v52  ;;  %1606 = vmatmul.mubr.bf16.gmra.mrb[60].mxu1 %v4311_v49  ;;  %v4608_v52 = vsel %vm705_vm1, %v715_v15, %v716_v31  ;;  %v718_v49 = vrot.slane %v4388_v39, 1  ;;  %v730_v15 = vrot.slane %v4469_v22, 1  ;;  %v3871_v31 = vld [vmem:[#allocation5 + $0x1f0] sm:$0xff]  }
  0xf9   : > { %3393 = vmatprep.mubr.bf16.mxu0 %v4505_v1  ;;  %1613 = vmatprep.mubr.bf16.mxu1 %v4551_v33 }
  0xfa   : > { %v4619_v16 = vsel %vm705_vm1, %v718_v49, %v719_v25  ;;  %v3878_v49 = vld [vmem:[#allocation5 + $0x218] sm:$0xff]  }
 0x100   : > { %3394 = vmatmul.mubr.bf16.vlgmr.msra.gmra.mrb[64].mxu0 %v4605_v24  ;;  %1614 = vmatmul.mubr.bf16.gmra.mrb[64].mxu1 %v4320_v54  ;;  %v3863_v54 = vld [vmem:[#allocation5 + $0x190] sm:$0xff]  }
 0x101   : > { %3242 = vmatpush3.bf16.msra.mxu0 %v3858_v30  ;;  %3397 = vmatprep.mubr.bf16.mxu0 %v4608_v52  ;;  %v4645_v30 = vsel %vm705_vm1, %v730_v15, %v731_v4 }
 0x102   : > { %3243 = vmatprep.subr.bf16.mxu0 %v3860_v2  ;;  %1621 = vmatprep.mubr.bf16.mxu1 %v4561_v23  ;;  %v3872_v2 = vld [vmem:[#allocation5 + $0x1b0] sm:$0xff]  }
 0x105   : > { %3244 = vmatpush3.bf16.msra.mxu0 %v3861_v48  ;;  %v3873_v48 = vld [vmem:[#allocation5 + $0x1f8] sm:$0xff]  }
 0x106   : > { %3245 = vmatprep.subr.bf16.mxu0 %v3862_v8 }
 0x108   : > { %3398 = vmatmul.mubr.bf16.gmra.mrb[68].mxu0 %v4619_v16  ;;  %1622 = vmatmul.mubr.bf16.gmra.mrb[68].mxu1 %v4352_v9  ;;  %v3867_v9 = vld [vmem:[#allocation5 + $0x1a0] sm:$0xff]  }
 0x109   : > { %3246 = vmatpush3.bf16.msra.mxu0 %v3863_v54  ;;  %3401 = vmatprep.mubr.bf16.mxu0 %v4622_v34 }
 0x10a   : > { %3247 = vmatprep.subr.bf16.mxu0 %v3864_v38  ;;  %1629 = vmatprep.mubr.bf16.mxu1 %v4571_v43 }
 0x10d   : > { %3248 = vmatpush3.bf16.msra.mxu0 %v3865_v41 }
 0x10e   : > { %3249 = vmatprep.subr.bf16.mxu0 %v3866_v56  ;;  %v3888_v56 = vld [vmem:[%s4222_s9 + $0xc0] sm:$0xff]  }
 0x110   : > { %3402 = vmatmul.mubr.bf16.gmra.mrb[72].mxu0 %v4633_v27  ;;  %1630 = vmatmul.mubr.bf16.gmra.mrb[72].mxu1 %v4362_v17  ;;  %v3874_v17 = vld [vmem:[#allocation5 + $0x1b8] sm:$0xff]  }
 0x111   : > { %3250 = vmatpush3.bf16.msra.mxu0 %v3867_v9  ;;  %3405 = vmatprep.mubr.bf16.mxu0 %v4636_v60 }
 0x112   : > { %3251 = vmatprep.subr.bf16.mxu0 %v3869_v26  ;;  %1637 = vmatprep.mubr.bf16.mxu1 %v4581_v61 }
 0x115   : > { %3252 = vmatpush3.bf16.msra.mxu0 %v3870_v57 }
 0x116   : > { %3253 = vmatprep.subr.bf16.mxu0 %v3871_v31 }
 0x118   : > { %3406 = vmatmul.mubr.bf16.gmra.mrb[76].mxu0 %v4645_v30  ;;  %1638 = vmatmul.mubr.bf16.gmra.mrb[76].mxu1 %v4394_v42  ;;  %v3877_v42 = vld [vmem:[#allocation5 + $0x210] sm:$0xff]  }
 0x119   : > { %3254 = vmatpush3.bf16.msra.mxu0 %v3872_v2  ;;  %3441 = vmatprep.mubr.bf16.mxu1 %v4525_v19  ;;  %v3885_v19 = vld [vmem:[%s4222_s9 + $0x90] sm:$0xff]  }
 0x11a   : > { %3255 = vmatprep.subr.bf16.mxu0 %v3873_v48  ;;  %2032 = vmatprep.mubr.bf16.mxu0 %v4337_v3  ;;  %v3880_v3 = vld [vmem:[#allocation5 + $0x228] sm:$0xff]  }
 0x11d   : > { %3256 = vmatpush3.bf16.msra.mxu0 %v3874_v17 }
 0x120   : > { %2033 = vmatmul.mubr.bf16.vlgmr.msra.gmra.mrb[80].mxu0 %v4304_v47  ;;  %3442 = vmatmul.mubr.bf16.vlgmr.msra.gmra.mrb[80].mxu1 %v4505_v1  ;;  %v3879_v47 = vld [vmem:[#allocation5 + $0x220] sm:$0xff]  }
 0x121   : > { %2040 = vmatprep.mubr.bf16.mxu0 %v4379_v36  ;;  %3474 = vmatpush3.bf16.msra.mxu1 %v4528_v58  ;;  %v3882_v36 = vld [vmem:[#allocation5 + $0x238] sm:$0xff]  }
 0x122   : > { %3445 = vmatprep.mubr.bf16.mxu1 %v4605_v24  ;;  %3475 = vmatprep.subr.bf16.mxu1 %v3876_v10 }
 0x125   : > { %3476 = vmatpush3.bf16.msra.mxu1 %v3876_v10 }
 0x126   : > { %3477 = vmatprep.subr.bf16.mxu1 %v3877_v42 }
 0x128   : > { %2041 = vmatmul.mubr.bf16.gmra.mrb[84].mxu0 %v4346_v6  ;;  %3446 = vmatmul.mubr.bf16.gmra.mrb[84].mxu1 %v4608_v52  ;;  %v3881_v6 = vld [vmem:[#allocation5 + $0x230] sm:$0xff]  }
 0x129   : > { %2048 = vmatprep.mubr.bf16.mxu0 %v4421_v11  ;;  %3449 = vmatprep.mubr.bf16.mxu1 %v4619_v16 }
 0x12a   : > { %3478 = vmatpush3.bf16.msra.mxu1 %v3877_v42 }
 0x12b   : > { %3479 = vmatprep.subr.bf16.mxu1 %v3878_v49 }
 0x12e   : > { %3480 = vmatpush3.bf16.msra.mxu1 %v3878_v49 }
 0x12f   : > { %3481 = vmatprep.subr.bf16.mxu1 %v3879_v47 }
 0x130   : > { %2049 = vmatmul.mubr.bf16.gmra.mrb[88].mxu0 %v4388_v39  ;;  %3450 = vmatmul.mubr.bf16.gmra.mrb[88].mxu1 %v4622_v34 }
 0x131   : > { %2056 = vmatprep.mubr.bf16.mxu0 %v4462_v62  ;;  %3453 = vmatprep.mubr.bf16.mxu1 %v4633_v27 }
 0x132   : > { %3482 = vmatpush3.bf16.msra.mxu1 %v3879_v47 }
 0x133   : > { %3483 = vmatprep.subr.bf16.mxu1 %v3880_v3 }
 0x136   : > { %3484 = vmatpush3.bf16.msra.mxu1 %v3880_v3  ;;  %v4729_v3 = vld [vmem:[%s4222_s9 + $0x110] sm:$0xff]  }
 0x137   : > { %3485 = vmatprep.subr.bf16.mxu1 %v3881_v6 }
 0x138   : > { %2057 = vmatmul.mubr.bf16.gmra.mrb[92].mxu0 %v4430_v14  ;;  %3454 = vmatmul.mubr.bf16.gmra.mrb[92].mxu1 %v4636_v60 }
 0x139   : > { %2064 = vmatprep.mubr.bf16.mxu0 %v4482_v46  ;;  %3457 = vmatprep.mubr.bf16.mxu1 %v4645_v30 }
 0x13a   : > { %3486 = vmatpush3.bf16.msra.mxu1 %v3881_v6 }
 0x13b   : > { %3487 = vmatprep.subr.bf16.mxu1 %v3882_v36 }
 0x13e   : > { %3488 = vmatpush3.bf16.msra.mxu1 %v3882_v36  ;;  %v3884_v36 = vld [vmem:[%s4222_s9 + $0x118] ss:$0 sps:$4 sm:$0xff]  }
 0x140   : > { %2065 = vmatmul.mubr.bf16.gmra.mrb[96].mxu0 %v4450_v44  ;;  %3458 = vmatmul.mubr.bf16.gmra.mrb[0].mxu1 %v4288_v40 }
 0x141   : > { %2072 = vmatprep.mubr.bf16.mxu0 %v4488_v59  ;;  %3461 = vmatprep.mubr.bf16.mxu1 %v4299_v45 }
 0x148   : > { %2073 = vmatmul.mubr.bf16.gmra.mrb[100].mxu0 %v4453_v50  ;;  %3462 = vmatmul.mubr.bf16.gmra.mrb[4].mxu1 %v4331_v63 }
 0x149   : > { %2080 = vmatprep.mubr.bf16.mxu0 %v4501_v55  ;;  %3465 = vmatprep.mubr.bf16.mxu1 %v4341_v5 }
 0x150   : > { %2081 = vmatmul.mubr.bf16.gmra.mrb[104].mxu0 %v4469_v22  ;;  %3466 = vmatmul.mubr.bf16.gmra.mrb[8].mxu1 %v4373_v32 }
 0x151   : > { %2088 = vmatprep.mubr.bf16.mxu0 %v4514_v21  ;;  %3469 = vmatprep.mubr.bf16.mxu1 %v4383_v37  ;;  %v3886_v21 = vld [vmem:[%s4222_s9 + $0xa0] sm:$0xff]  }
 0x153   : > { %v2985_v39 = vpop.f32.mrb[0].mxu0 }
 0x154   : > { %v2986_v11 = vpop.f32.mrb[1].mxu0 }
 0x155   : > { %v4676_v14 = vadd.f32 %v2986_v11, %v2985_v39  ;;  %v2988_v44 = vpop.f32.mrb[2].mxu0  ;;  %v678_v39 = vshll.u32 %v4729_v3, 16 }
 0x156   : > { %v2989_v62 = vpop.f32.mrb[3].mxu0 }
 0x157   : > { %v4678_v46 = vadd.f32 %v2989_v62, %v2988_v44 }
 0x158   : > { %2089 = vmatmul.mubr.bf16.gmra.mrb[108].mxu0 %v3885_v19  ;;  %3470 = vmatmul.mubr.bf16.gmra.mrb[12].mxu1 %v4415_v0 }
 0x159   : > { %2096 = vmatprep.mubr.bf16.mxu0 %v4531_v13  ;;  %3489 = vmatprep.mubr.bf16.mxu1 %v4605_v24  ;;  %v3887_v13 = vld [vmem:[%s4222_s9 + $0xb0] sm:$0xff]  }
 0x15b   : > { %v2991_v50 = vpop.f32.mrb[4].mxu0 }
 0x15c   : > { %v2992_v59 = vpop.f32.mrb[5].mxu0 }
 0x15d   : > { %v4684_v55 = vadd.f32 %v2992_v59, %v2991_v50  ;;  %v2994_v1 = vpop.f32.mrb[6].mxu0 }
 0x15e   : > { %v2995_v58 = vpop.f32.mrb[7].mxu0 }
 0x15f   : > { %v4688_v25 = vadd.f32 %v2995_v58, %v2994_v1 }
 0x160   : > { %2097 = vmatmul.mubr.bf16.gmra.mrb[112].mxu0 %v3886_v21  ;;  %3490 = vmatmul.mubr.bf16.vlgmr.msra.gmra.mrb[80].mxu1 %v4608_v52  ;;  %v683_v21 = vshll.u32 %v3884_v36, 16 }
 0x161   : > { %2104 = vmatprep.mubr.bf16.mxu0 %v4541_v29  ;;  %3493 = vmatprep.mubr.bf16.mxu1 %v4619_v16 }
 0x163   : > { %v2997_v22 = vpop.f32.mrb[8].mxu0 }
 0x164   : > { %v2998_v8 = vpop.f32.mrb[9].mxu0 }
 0x165   : > { %v4694_v7 = vadd.f32 %v2998_v8, %v2997_v22  ;;  %v3000_v28 = vpop.f32.mrb[10].mxu0 }
 0x166   : > { %v3001_v54 = vpop.f32.mrb[11].mxu0 }
 0x167   : > { %v4698_v38 = vadd.f32 %v3001_v54, %v3000_v28  ;;  %v3891_v54 = vld [vmem:[%s4222_s9 + $0xf0] sm:$0xff]  }
 0x168   : > { %2105 = vmatmul.mubr.bf16.gmra.mrb[116].mxu0 %v3887_v13  ;;  %3494 = vmatmul.mubr.bf16.gmra.mrb[84].mxu1 %v4622_v34 }
 0x169   : > { %2112 = vmatprep.mubr.bf16.mxu0 %v4551_v33  ;;  %3497 = vmatprep.mubr.bf16.mxu1 %v4633_v27 }
 0x16b   : > { %v3003_v24 = vpop.f32.mrb[12].mxu0 }
 0x16c   : > { %v3004_v41 = vpop.f32.mrb[13].mxu0 }
 0x16d   : > { %v4704_v52 = vadd.f32 %v3004_v41, %v3003_v24  ;;  %v3006_v35 = vpop.f32.mrb[14].mxu0  ;;  %v685_v24 = vrot.slane %v683_v21, 1 }
 0x16e   : > { %v3007_v18 = vpop.f32.mrb[15].mxu0 }
 0x16f   : > { %v4706_v29 = vadd.f32 %v3007_v18, %v3006_v35 }
 0x170   : > { %2113 = vmatmul.mubr.bf16.gmra.mrb[120].mxu0 %v3888_v56  ;;  %3498 = vmatmul.mubr.bf16.gmra.mrb[88].mxu1 %v4636_v60 }
 0x171   : > { %2120 = vmatprep.mubr.bf16.mxu0 %v4561_v23  ;;  %3501 = vmatprep.mubr.bf16.mxu1 %v4645_v30  ;;  %v3889_v23 = vld [vmem:[%s4222_s9 + $0xd0] sm:$0xff]  }
 0x173   : > { %v3009_v16 = vpop.f32.mrb[16].mxu0  ;;  %v3121_v34 = vpop.f32.mrb[16].mxu1 }
 0x174   : > { %v3010_v33 = vpop.f32.mrb[17].mxu0  ;;  %v3122_v27 = vpop.f32.mrb[17].mxu1 }
 0x175   : > { %v4712_v51 = vadd.f32 %v3010_v33, %v3009_v16  ;;  %v3012_v20 = vpop.f32.mrb[18].mxu0  ;;  %v4714_v26 = vadd.f32 %v3122_v27, %v3121_v34  ;;  %v3124_v57 = vpop.f32.mrb[18].mxu1 }
 0x176   : > { %v3013_v9 = vpop.f32.mrb[19].mxu0  ;;  %v3125_v4 = vpop.f32.mrb[19].mxu1 }
 0x177   : > { %v4716_v15 = vadd.f32 %v3013_v9, %v3012_v20  ;;  %v4718_v60 = vadd.f32 %v3125_v4, %v3124_v57  ;;  %v3892_v57 = vld [vmem:[%s4222_s9 + $0x100] sm:$0xff]   ;;  %v757_v4 = vrot.slane %v4729_v3, 1 }
 0x178   : > { %2121 = vmatmul.mubr.bf16.gmra.mrb[124].mxu0 %v3889_v23  ;;  %3502 = vmatmul.mubr.bf16.gmra.mrb[92].mxu1 %v4288_v40  ;;  %v758_v23 = vrot.slane %v3884_v36, 1 }
 0x179   : > { %2128 = vmatprep.mubr.bf16.mxu0 %v4571_v43  ;;  %3505 = vmatprep.mubr.bf16.mxu1 %v4299_v45  ;;  %v3890_v45 = vld [vmem:[%s4222_s9 + $0xe0] sm:$0xff]  }
 0x17b   : > { %v3015_v31 = vpop.f32.mrb[20].mxu0  ;;  %v3127_v2 = vpop.f32.mrb[20].mxu1 }
 0x17c   : > { %v3016_v30 = vpop.f32.mrb[21].mxu0  ;;  %v3128_v10 = vpop.f32.mrb[21].mxu1 }
 0x17d   : > { %v4724_v48 = vadd.f32 %v3016_v30, %v3015_v31  ;;  %v3018_v17 = vpop.f32.mrb[22].mxu0  ;;  %v4726_v49 = vadd.f32 %v3128_v10, %v3127_v2  ;;  %v3130_v47 = vpop.f32.mrb[22].mxu1 }
 0x17e   : > { %v3019_v42 = vpop.f32.mrb[23].mxu0  ;;  %v3131_v6 = vpop.f32.mrb[23].mxu1 }
 0x17f   : > { %v4731_v40 = vadd.f32 %v3019_v42, %v3018_v17  ;;  %v4733_v43 = vadd.f32 %v3131_v6, %v3130_v47 }
 0x180   : > { %2129 = vmatmul.mubr.bf16.gmra.mrb[128].mxu0 %v3890_v45  ;;  %3506 = vmatmul.mubr.bf16.gmra.mrb[0].mxu1 %v4331_v63  ;;  %v676_v63 = vshrl.u32 %v4729_v3, 16 }
 0x181   : > { %2136 = vmatprep.mubr.bf16.mxu0 %v4581_v61  ;;  %3509 = vmatprep.mubr.bf16.mxu1 %v4341_v5  ;;  %v680_v61 = vrot.slane %v678_v39, 1  ;;  %v759_v39 = vsel %vm705_vm1, %v757_v4, %v758_v23 }
 0x183   : > { %v3021_v11 = vpop.f32.mrb[24].mxu0  ;;  %v3133_v62 = vpop.f32.mrb[24].mxu1  ;;  %v681_v13 = vor.u32 %v680_v61, %v676_v63 }
 0x184   : > { %v3022_v44 = vpop.f32.mrb[25].mxu0  ;;  %v3134_v1 = vpop.f32.mrb[25].mxu1 }
 0x185   : > { %v4741_v50 = vadd.f32 %v3022_v44, %v3021_v11  ;;  %v3024_v59 = vpop.f32.mrb[26].mxu0  ;;  %v4743_v58 = vadd.f32 %v3134_v1, %v3133_v62  ;;  %v3136_v22 = vpop.f32.mrb[26].mxu1 }
 0x186   : > { %v3025_v19 = vpop.f32.mrb[27].mxu0  ;;  %v3137_v8 = vpop.f32.mrb[27].mxu1 }
 0x187   : > { %v4746_v5 = vadd.f32 %v3025_v19, %v3024_v59  ;;  %v4748_v28 = vadd.f32 %v3137_v8, %v3136_v22 }
 0x188   : > { %2137 = vmatmul.mubr.bf16.gmra.mrb[132].mxu0 %v3891_v54  ;;  %3510 = vmatmul.mubr.bf16.gmra.mrb[4].mxu1 %v4373_v32  ;;  %v686_v32 = vsel %vm470_vm0, %v681_v13, %v685_v24 }
 0x189   : > { %2144 = vmatprep.mubr.bf16.mxu0 %v4590_v53  ;;  %3513 = vmatprep.mubr.bf16.mxu1 %v4383_v37 }
 0x18b   : > { %v3027_v41 = vpop.f32.mrb[28].mxu0  ;;  %v3139_v18 = vpop.f32.mrb[28].mxu1 }
 0x18c   : > { %v3028_v35 = vpop.f32.mrb[29].mxu0  ;;  %v3140_v33 = vpop.f32.mrb[29].mxu1 }
 0x18d   : > { %v4754_v56 = vadd.f32 %v3028_v35, %v3027_v41  ;;  %v3030_v16 = vpop.f32.mrb[30].mxu0  ;;  %v4756_v20 = vadd.f32 %v3140_v33, %v3139_v18  ;;  %v3142_v27 = vpop.f32.mrb[30].mxu1 }
 0x18e   : > { %v3031_v34 = vpop.f32.mrb[31].mxu0  ;;  %v3143_v53 = vpop.f32.mrb[31].mxu1 }
 0x18f   : > { %v4759_v9 = vadd.f32 %v3031_v34, %v3030_v16  ;;  %v4761_v37 = vadd.f32 %v3143_v53, %v3142_v27 }
 0x190   : > { %2145 = vmatmul.mubr.bf16.gmra.mrb[136].mxu0 %v3892_v57  ;;  %3514 = vmatmul.mubr.bf16.gmra.mrb[8].mxu1 %v4415_v0 }
 0x191   : > { %2152 = vmatprep.mubr.bf16.mxu0 %v686_v32  ;;  %3517 = vmatprep.mubr.bf16.mxu1 %v4425_v12 }
 0x193   : > { %v3033_v31 = vpop.f32.mrb[32].mxu0  ;;  %v3145_v2 = vpop.f32.mrb[32].mxu1 }
 0x194   : > { %v3034_v30 = vpop.f32.mrb[33].mxu0  ;;  %v3146_v42 = vpop.f32.mrb[33].mxu1 }
 0x195   : > { %v3035_v17 = vadd.f32 %v3034_v30, %v3033_v31  ;;  %v3036_v10 = vpop.f32.mrb[34].mxu0  ;;  %v4767_v6 = vadd.f32 %v3146_v42, %v3145_v2  ;;  %v3148_v45 = vpop.f32.mrb[34].mxu1 }
 0x196   : > { %v3037_v47 = vpop.f32.mrb[35].mxu0  ;;  %v3149_v0 = vpop.f32.mrb[35].mxu1 }
 0x197   : > { %v3038_v11 = vadd.f32 %v3037_v47, %v3036_v10  ;;  %v4770_v44 = vadd.f32 %v3149_v0, %v3148_v45 }
 0x198   : > { %2153 = vmatmul.mubr.bf16.gmra.mrb[140].mxu0 %v4729_v3  ;;  %3518 = vmatmul.mubr.bf16.gmra.mrb[12].mxu1 %v759_v39 }
 0x19b   : > { %v3039_v12 = vpop.f32.mrb[36].mxu0  ;;  %v3151_v62 = vpop.f32.mrb[36].mxu1 }
 0x19c   : > { %v3040_v36 = vpop.f32.mrb[37].mxu0  ;;  %v3152_v19 = vpop.f32.mrb[37].mxu1 }
 0x19d   : > { %v3041_v59 = vadd.f32 %v3040_v36, %v3039_v12  ;;  %v3042_v1 = vpop.f32.mrb[38].mxu0  ;;  %v4773_v63 = vadd.f32 %v3152_v19, %v3151_v62  ;;  %v3154_v61 = vpop.f32.mrb[38].mxu1 }
 0x19e   : > { %v3043_v22 = vpop.f32.mrb[39].mxu0  ;;  %v3155_v8 = vpop.f32.mrb[39].mxu1 }
 0x19f   : > { %v3044_v21 = vadd.f32 %v3043_v22, %v3042_v1  ;;  %v4775_v54 = vadd.f32 %v3155_v8, %v3154_v61 }
 0x1a3   : > { %v3045_v13 = vpop.f32.mrb[40].mxu0  ;;  %v3157_v41 = vpop.f32.mrb[40].mxu1 }
 0x1a4   : > { %v3046_v24 = vpop.f32.mrb[41].mxu0  ;;  %v3158_v18 = vpop.f32.mrb[41].mxu1 }
 0x1a5   : > { %v3047_v35 = vadd.f32 %v3046_v24, %v3045_v13  ;;  %v3048_v3 = vpop.f32.mrb[42].mxu0  ;;  %v4777_v33 = vadd.f32 %v3158_v18, %v3157_v41  ;;  %v3160_v34 = vpop.f32.mrb[42].mxu1 }
 0x1a6   : > { %v3049_v16 = vpop.f32.mrb[43].mxu0  ;;  %v3161_v32 = vpop.f32.mrb[43].mxu1 }
 0x1a7   : > { %v3050_v27 = vadd.f32 %v3049_v16, %v3048_v3  ;;  %v4779_v53 = vadd.f32 %v3161_v32, %v3160_v34 }
 0x1ab   : > { %v3051_v57 = vpop.f32.mrb[44].mxu0  ;;  %v3163_v23 = vpop.f32.mrb[44].mxu1 }
 0x1ac   : > { %v3052_v4 = vpop.f32.mrb[45].mxu0  ;;  %v3164_v2 = vpop.f32.mrb[45].mxu1 }
 0x1ad   : > { %v3053_v31 = vadd.f32 %v3052_v4, %v3051_v57  ;;  %v3054_v30 = vpop.f32.mrb[46].mxu0  ;;  %v4781_v42 = vadd.f32 %v3164_v2, %v3163_v23  ;;  %v3166_v47 = vpop.f32.mrb[46].mxu1 }
 0x1ae   : > { %v3055_v10 = vpop.f32.mrb[47].mxu0  ;;  %v3167_v39 = vpop.f32.mrb[47].mxu1 }
 0x1af   : > { %v3056_v45 = vadd.f32 %v3055_v10, %v3054_v30  ;;  %v4783_v0 = vadd.f32 %v3167_v39, %v3166_v47 }
 0x1b3   : > { %v3057_v12 = vpop.f32.mrb[48].mxu0  ;;  %v3169_v36 = vpop.f32.mrb[48].mxu1 }
 0x1b4   : > { %v3058_v62 = vpop.f32.mrb[49].mxu0  ;;  %v3170_v19 = vpop.f32.mrb[49].mxu1 }
 0x1b5   : > { %v4785_v1 = vadd.f32 %v3058_v62, %v3057_v12  ;;  %v3060_v22 = vpop.f32.mrb[50].mxu0  ;;  %v3171_v61 = vadd.f32 %v3170_v19, %v3169_v36  ;;  %v3172_v8 = vpop.f32.mrb[50].mxu1 }
 0x1b6   : > { %v3061_v13 = vpop.f32.mrb[51].mxu0  ;;  %v3173_v41 = vpop.f32.mrb[51].mxu1 }
 0x1b7   : > { %v4787_v24 = vadd.f32 %v3061_v13, %v3060_v22  ;;  %v4789_v3 = vadd.f32 %v3171_v61, %v3035_v17  ;;  %v3174_v18 = vadd.f32 %v3173_v41, %v3172_v8 }
 0x1b9   : > { %v4791_v16 = vadd.f32 %v3174_v18, %v3038_v11 }
 0x1bb   : > { %v3063_v34 = vpop.f32.mrb[52].mxu0  ;;  %v3175_v32 = vpop.f32.mrb[52].mxu1 }
 0x1bc   : > { %v3064_v57 = vpop.f32.mrb[53].mxu0  ;;  %v3176_v23 = vpop.f32.mrb[53].mxu1 }
 0x1bd   : > { %v4793_v4 = vadd.f32 %v3064_v57, %v3063_v34  ;;  %v3066_v30 = vpop.f32.mrb[54].mxu0  ;;  %v3177_v2 = vadd.f32 %v3176_v23, %v3175_v32  ;;  %v3178_v10 = vpop.f32.mrb[54].mxu1 }
 0x1be   : > { %v3067_v47 = vpop.f32.mrb[55].mxu0  ;;  %v3179_v12 = vpop.f32.mrb[55].mxu1 }
 0x1bf   : > { %v4795_v39 = vadd.f32 %v3067_v47, %v3066_v30  ;;  %v4797_v36 = vadd.f32 %v3177_v2, %v3041_v59  ;;  %v3180_v17 = vadd.f32 %v3179_v12, %v3178_v10 }
 0x1c1   : > { %v4799_v62 = vadd.f32 %v3180_v17, %v3044_v21 }
 0x1c3   : > { %v3069_v11 = vpop.f32.mrb[56].mxu0  ;;  %v3181_v19 = vpop.f32.mrb[56].mxu1 }
 0x1c4   : > { %v3070_v22 = vpop.f32.mrb[57].mxu0  ;;  %v3182_v8 = vpop.f32.mrb[57].mxu1 }
 0x1c5   : > { %v4801_v61 = vadd.f32 %v3070_v22, %v3069_v11  ;;  %v3072_v13 = vpop.f32.mrb[58].mxu0  ;;  %v3183_v41 = vadd.f32 %v3182_v8, %v3181_v19  ;;  %v3184_v18 = vpop.f32.mrb[58].mxu1 }
 0x1c6   : > { %v3073_v34 = vpop.f32.mrb[59].mxu0  ;;  %v3185_v57 = vpop.f32.mrb[59].mxu1 }
 0x1c7   : > { %v4803_v32 = vadd.f32 %v3073_v34, %v3072_v13  ;;  %v4805_v23 = vadd.f32 %v3183_v41, %v3047_v35  ;;  %v3186_v59 = vadd.f32 %v3185_v57, %v3184_v18 }
 0x1c9   : > { %v4807_v30 = vadd.f32 %v3186_v59, %v3050_v27 }
 0x1cb   : > { %5117 = vst [vmem:[#allocation11_spill] sm:$0xff] %v4807_v30  ;;  %v3075_v21 = vpop.f32.mrb[60].mxu0  ;;  %v3187_v2 = vpop.f32.mrb[60].mxu1 }
 0x1cc   : > { %v3076_v10 = vpop.f32.mrb[61].mxu0  ;;  %v3188_v12 = vpop.f32.mrb[61].mxu1 }
 0x1cd   : > { %v4809_v47 = vadd.f32 %v3076_v10, %v3075_v21  ;;  %v3078_v17 = vpop.f32.mrb[62].mxu0  ;;  %v3189_v11 = vadd.f32 %v3188_v12, %v3187_v2  ;;  %v3190_v22 = vpop.f32.mrb[62].mxu1 }
 0x1ce   : > { %v3079_v19 = vpop.f32.mrb[63].mxu0  ;;  %v3191_v13 = vpop.f32.mrb[63].mxu1 }
 0x1cf   : > { %v4811_v8 = vadd.f32 %v3079_v19, %v3078_v17  ;;  %v4813_v34 = vadd.f32 %v3189_v11, %v3053_v31  ;;  %v3192_v35 = vadd.f32 %v3191_v13, %v3190_v22 }
 0x1d1   : > { %v4815_v41 = vadd.f32 %v3192_v35, %v3056_v45 }
 0x1d3   : > { %v3395_v27 = vpop.f32.mrb[64].mxu0  ;;  %v3193_v57 = vpop.f32.mrb[64].mxu1 }
 0x1d4   : > { %v1223_v18 = vadd.f32 %v3395_v27, %v4684_v55  ;;  %v1214_v59 = vpop.f32.mrb[65].mxu0  ;;  %v3194_v10 = vpop.f32.mrb[65].mxu1 }
 0x1d5   : > { %v1215_v21 = vadd.f32 %v4676_v14, %v1214_v59  ;;  %v3396_v30 = vpop.f32.mrb[66].mxu0  ;;  %v3195_v12 = vadd.f32 %v3194_v10, %v3193_v57  ;;  %v3196_v31 = vpop.f32.mrb[66].mxu1 }
 0x1d6   : > { %v4820_v2 = vadd.f32 %v4726_v49, %v1223_v18  ;;  %v1226_v17 = vadd.f32 %v3396_v30, %v4688_v25  ;;  %v1217_v11 = vpop.f32.mrb[67].mxu0  ;;  %v3197_v55 = vpop.f32.mrb[67].mxu1 }
 0x1d7   : > { %v4824_v45 = vadd.f32 %v4714_v26, %v1215_v21  ;;  %v1218_v22 = vadd.f32 %v4678_v46, %v1217_v11  ;;  %v4828_v19 = vadd.f32 %v3195_v12, %v4785_v1  ;;  %v3198_v13 = vadd.f32 %v3197_v55, %v3196_v31 }
 0x1d8   : > { %v4831_v14 = vadd.f32 %v4733_v43, %v1226_v17 }
 0x1d9   : > { %v4834_v49 = vadd.f32 %v4718_v60, %v1218_v22  ;;  %v4837_v25 = vadd.f32 %v3198_v13, %v4787_v24 }
 0x1db   : > { %v3399_v30 = vpop.f32.mrb[68].mxu0  ;;  %v3199_v35 = vpop.f32.mrb[68].mxu1 }
 0x1dc   : > { %v1239_v26 = vadd.f32 %v3399_v30, %v4704_v52  ;;  %v1230_v27 = vpop.f32.mrb[69].mxu0  ;;  %v3200_v18 = vpop.f32.mrb[69].mxu1 }
 0x1dd   : > { %v1231_v46 = vadd.f32 %v4694_v7, %v1230_v27  ;;  %v3400_v1 = vpop.f32.mrb[70].mxu0  ;;  %v3201_v43 = vadd.f32 %v3200_v18, %v3199_v35  ;;  %v3202_v60 = vpop.f32.mrb[70].mxu1 }
 0x1de   : > { %v4842_v57 = vadd.f32 %v4756_v20, %v1239_v26  ;;  %v1242_v59 = vadd.f32 %v3400_v1, %v4706_v29  ;;  %v1233_v21 = vpop.f32.mrb[71].mxu0  ;;  %v3203_v52 = vpop.f32.mrb[71].mxu1 }
 0x1df   : > { %v4846_v24 = vadd.f32 %v4743_v58, %v1231_v46  ;;  %v1234_v10 = vadd.f32 %v4698_v38, %v1233_v21  ;;  %v4850_v12 = vadd.f32 %v3201_v43, %v4793_v4  ;;  %v3204_v17 = vadd.f32 %v3203_v52, %v3202_v60 }
 0x1e0   : > { %v4853_v7 = vadd.f32 %v4761_v37, %v1242_v59 }
 0x1e1   : > { %v4856_v20 = vadd.f32 %v4748_v28, %v1234_v10  ;;  %v4859_v29 = vadd.f32 %v3204_v17, %v4795_v39 }
 0x1e3   : > { %v3403_v31 = vpop.f32.mrb[72].mxu0  ;;  %v3205_v11 = vpop.f32.mrb[72].mxu1 }
 0x1e4   : > { %v1255_v58 = vadd.f32 %v3403_v31, %v4724_v48  ;;  %v1246_v22 = vpop.f32.mrb[73].mxu0  ;;  %v3206_v55 = vpop.f32.mrb[73].mxu1 }
 0x1e5   : > { %v1247_v38 = vadd.f32 %v4712_v51, %v1246_v22  ;;  %v3404_v4 = vpop.f32.mrb[74].mxu0  ;;  %v3207_v37 = vadd.f32 %v3206_v55, %v3205_v11  ;;  %v3208_v28 = vpop.f32.mrb[74].mxu1 }
 0x1e6   : > { %v4864_v13 = vadd.f32 %v4773_v63, %v1255_v58  ;;  %v1258_v30 = vadd.f32 %v3404_v4, %v4731_v40  ;;  %v1249_v26 = vpop.f32.mrb[75].mxu0  ;;  %v3209_v48 = vpop.f32.mrb[75].mxu1 }
 0x1e7   : > { %v4868_v39 = vadd.f32 %v4767_v6, %v1247_v38  ;;  %v1250_v35 = vadd.f32 %v4716_v15, %v1249_v26  ;;  %v4872_v27 = vadd.f32 %v3207_v37, %v4801_v61  ;;  %v3210_v46 = vadd.f32 %v3209_v48, %v3208_v28 }
 0x1e8   : > { %v4875_v51 = vadd.f32 %v4775_v54, %v1258_v30 }
 0x1e9   : > { %v1555_v63 = vadd.f32 %v4770_v44, %v1250_v35  ;;  %v4879_v18 = vadd.f32 %v3210_v46, %v4803_v32 }
 0x1eb   : > { %v3407_v40 = vpop.f32.mrb[76].mxu0  ;;  %v3211_v6 = vpop.f32.mrb[76].mxu1 }
 0x1ec   : > { %v1271_v1 = vadd.f32 %v3407_v40, %v4754_v56  ;;  %v1262_v43 = vpop.f32.mrb[77].mxu0  ;;  %v3212_v59 = vpop.f32.mrb[77].mxu1 }
 0x1ed   : > { %v1263_v15 = vadd.f32 %v4741_v50, %v1262_v43  ;;  %v3408_v60 = vpop.f32.mrb[78].mxu0  ;;  %v3213_v54 = vadd.f32 %v3212_v59, %v3211_v6  ;;  %v3214_v10 = vpop.f32.mrb[78].mxu1 }
 0x1ee   : > { %v4884_v61 = vadd.f32 %v4781_v42, %v1271_v1  ;;  %v1274_v21 = vadd.f32 %v3408_v60, %v4759_v9  ;;  %v1265_v44 = vpop.f32.mrb[79].mxu0  ;;  %v3215_v17 = vpop.f32.mrb[79].mxu1 }
 0x1ef   : > { %v1568_v32 = vadd.f32 %v4777_v33, %v1263_v15  ;;  %v1266_v52 = vadd.f32 %v4746_v5, %v1265_v44  ;;  %v4890_v56 = vadd.f32 %v3213_v54, %v4809_v47  ;;  %v3216_v31 = vadd.f32 %v3215_v17, %v3214_v10 }
 0x1f0   : > { %v4893_v50 = vadd.f32 %v4783_v0, %v1274_v21 }
 0x1f1   : > { %v1571_v42 = vadd.f32 %v4779_v53, %v1266_v52  ;;  %v4897_v58 = vadd.f32 %v3216_v31, %v4811_v8 }
 0x1f3   : > { %v3257_v9 = vpop.f32.mrb[80].mxu0 }
 0x1f4   : > { %v3258_v11 = vpop.f32.mrb[81].mxu0 }
 0x1f5   : > { %v3259_v22 = vadd.f32 %v3258_v11, %v3257_v9  ;;  %v3260_v38 = vpop.f32.mrb[82].mxu0 }
 0x1f6   : > { %v3261_v33 = vpop.f32.mrb[83].mxu0 }
 0x1f7   : > { %v3262_v55 = vadd.f32 %v3261_v33, %v3260_v38  ;;  %v4900_v5 = vadd.f32 %v3259_v22, %v4824_v45 }
 0x1f9   : > { %v4903_v47 = vadd.f32 %v3262_v55, %v4834_v49 }
 0x1fb   : > { %v3263_v0 = vpop.f32.mrb[84].mxu0 }
 0x1fc   : > { %v3264_v4 = vpop.f32.mrb[85].mxu0 }
 0x1fd   : > { %v3265_v37 = vadd.f32 %v3264_v4, %v3263_v0  ;;  %v3266_v30 = vpop.f32.mrb[86].mxu0 }
 0x1fe   : > { %v3267_v53 = vpop.f32.mrb[87].mxu0 }
 0x1ff   : > { %v3268_v28 = vadd.f32 %v3267_v53, %v3266_v30  ;;  %v3539_v8 = vadd.f32 %v3265_v37, %v4820_v2 }
 0x201   : > { %v3547_v26 = vadd.f32 %v3268_v28, %v4831_v14 }
 0x203   : > { %v3269_v35 = vpop.f32.mrb[88].mxu0 }
 0x204   : > { %v3270_v48 = vpop.f32.mrb[89].mxu0 }
 0x205   : > { %v3271_v46 = vadd.f32 %v3270_v48, %v3269_v35  ;;  %v3272_v40 = vpop.f32.mrb[90].mxu0 }
 0x206   : > { %v3273_v1 = vpop.f32.mrb[91].mxu0 }
 0x207   : > { %v3274_v45 = vadd.f32 %v3273_v1, %v3272_v40  ;;  %v4908_v6 = vadd.f32 %v3271_v46, %v4846_v24 }
 0x209   : > { %v4911_v49 = vadd.f32 %v3274_v45, %v4856_v20 }
 0x20b   : > { %v3275_v43 = vpop.f32.mrb[92].mxu0 }
 0x20c   : > { %v3276_v15 = vpop.f32.mrb[93].mxu0 }
 0x20d   : > { %v3277_v59 = vadd.f32 %v3276_v15, %v3275_v43  ;;  %v3278_v60 = vpop.f32.mrb[94].mxu0 }
 0x20e   : > { %v3279_v54 = vpop.f32.mrb[95].mxu0 }
 0x20f   : > { %v3280_v2 = vadd.f32 %v3279_v54, %v3278_v60  ;;  %v4914_v14 = vadd.f32 %v3277_v59, %v4842_v57 }
 0x211   : > { %v4917_v21 = vadd.f32 %v3280_v2, %v4853_v7 }
 0x213   : > { %v3281_v10 = vpop.f32.mrb[96].mxu0 }
 0x214   : > { %v3282_v44 = vpop.f32.mrb[97].mxu0 }
 0x215   : > { %v3283_v52 = vadd.f32 %v3282_v44, %v3281_v10  ;;  %v3284_v24 = vpop.f32.mrb[98].mxu0  ;;  %v4943_v10 = vld [vmem:[%s5099_s2] ss:$0 sm:$0xff] }
 0x216   : > { %v3285_v17 = vpop.f32.mrb[99].mxu0 }
 0x217   : > { %v3286_v31 = vadd.f32 %v3285_v17, %v3284_v24  ;;  %v4920_v20 = vadd.f32 %v3283_v52, %v4868_v39 }
 0x219   : > { %v4922_v9 = vadd.f32 %v3286_v31, %v1555_v63 }
 0x21b   : > { %v3287_v11 = vpop.f32.mrb[100].mxu0 }
 0x21c   : > { %v3288_v22 = vpop.f32.mrb[101].mxu0 }
 0x21d   : > { %v3289_v38 = vadd.f32 %v3288_v22, %v3287_v11  ;;  %v3290_v33 = vpop.f32.mrb[102].mxu0 }
 0x21e   : > { %v3291_v57 = vpop.f32.mrb[103].mxu0 }
 0x21f   : > { %v3292_v55 = vadd.f32 %v3291_v57, %v3290_v33  ;;  %v4925_v7 = vadd.f32 %v3289_v38, %v4864_v13 }
 0x221   : > { %v4928_v0 = vadd.f32 %v3292_v55, %v4875_v51 }
 0x223   : > { %v3293_v4 = vpop.f32.mrb[104].mxu0 }
 0x224   : > { %v3294_v37 = vpop.f32.mrb[105].mxu0 }
 0x225   : > { %v3295_v30 = vadd.f32 %v3294_v37, %v3293_v4  ;;  %v3296_v53 = vpop.f32.mrb[106].mxu0 }
 0x226   : > { %v3297_v39 = vpop.f32.mrb[107].mxu0 }
 0x227   : > { %v3298_v28 = vadd.f32 %v3297_v39, %v3296_v53  ;;  %v4930_v63 = vadd.f32 %v3295_v30, %v1568_v32 }
 0x229   : > { %v4932_v35 = vadd.f32 %v3298_v28, %v1571_v42 }
 0x22b   : > { %v3299_v48 = vpop.f32.mrb[108].mxu0 }
 0x22c   : > { %v3300_v46 = vpop.f32.mrb[109].mxu0 }
 0x22d   : > { %v3301_v40 = vadd.f32 %v3300_v46, %v3299_v48  ;;  %v3302_v1 = vpop.f32.mrb[110].mxu0 }
 0x22e   : > { %v3303_v13 = vpop.f32.mrb[111].mxu0 }
 0x22f   : > { %v3304_v45 = vadd.f32 %v3303_v13, %v3302_v1  ;;  %v4935_v51 = vadd.f32 %v3301_v40, %v4884_v61 }
 0x231   : > { %v4938_v43 = vadd.f32 %v3304_v45, %v4893_v50 }
 0x233   : > { %v3305_v15 = vpop.f32.mrb[112].mxu0  ;;  %v3491_v59 = vpop.f32.mrb[80].mxu1 }
 0x234   : > { %v3306_v60 = vpop.f32.mrb[113].mxu0  ;;  %v3540_v32 = vadd.f32 %v3539_v8, %v3491_v59  ;;  %v2195_v42 = vpop.f32.mrb[81].mxu1 }
 0x235   : > { %v3307_v54 = vadd.f32 %v3306_v60, %v3305_v15  ;;  %v3308_v2 = vpop.f32.mrb[114].mxu0  ;;  %v3544_v44 = vadd.f32 %v4900_v5, %v2195_v42  ;;  %v3492_v52 = vpop.f32.mrb[82].mxu1 }
 0x236   : > { %v3309_v61 = vpop.f32.mrb[115].mxu0  ;;  %v3548_v24 = vadd.f32 %v3547_v26, %v3492_v52  ;;  %v2198_v17 = vpop.f32.mrb[83].mxu1  ;;  %v2363_v11 = vadd.f32 %v3540_v32, %v4943_v10 }
 0x237   : > { %v3310_v50 = vadd.f32 %v3309_v61, %v3308_v2  ;;  %v4948_v31 = vadd.f32 %v4789_v3, %v3307_v54  ;;  %v3552_v8 = vadd.f32 %v4903_v47, %v2198_v17  ;;  %v2361_v5 = vadd.f32 %v3544_v44, %v4943_v10 }
 0x238   : > { %v2364_v22 = vadd.f32 %v3548_v24, %v4943_v10 }
 0x239   : > { %v4954_v38 = vadd.f32 %v4791_v16, %v3310_v50  ;;  %v2362_v33 = vadd.f32 %v3552_v8, %v4943_v10 }
 0x23a   : > { %v2882_v57 = vpack.c.bf16 %v2364_v22, %v2363_v11 }
 0x23b   : > { %v3311_v26 = vpop.f32.mrb[116].mxu0  ;;  %v2877_v55 = vpack.c.bf16 %v2362_v33, %v2361_v5  ;;  %v3495_v4 = vpop.f32.mrb[84].mxu1  ;;  %v5118_v5 = vld [vmem:[#allocation11_spill] sm:$0xff] }
 0x23c   : > { %v3312_v37 = vpop.f32.mrb[117].mxu0  ;;  %2954 = vst [vmem:[%s4958_s10 + $0x8] sm:$0xff] %v2882_v57   ;;  %v3556_v3 = vadd.f32 %v4914_v14, %v3495_v4  ;;  %v2211_v30 = vpop.f32.mrb[85].mxu1 }
 0x23d   : > { %v3313_v47 = vadd.f32 %v3312_v37, %v3311_v26  ;;  %v3314_v16 = vpop.f32.mrb[118].mxu0  ;;  %2878 = vst [vmem:[%s4958_s10] sm:$0xff] %v2877_v55   ;;  %v3560_v53 = vadd.f32 %v4908_v6, %v2211_v30  ;;  %v3496_v39 = vpop.f32.mrb[86].mxu1 }
 0x23e   : > { %v3315_v28 = vpop.f32.mrb[119].mxu0  ;;  %v3564_v48 = vadd.f32 %v4917_v21, %v3496_v39  ;;  %v2214_v40 = vpop.f32.mrb[87].mxu1  ;;  %v2367_v14 = vadd.f32 %v3556_v3, %v4943_v10 }
 0x23f   : > { %v3316_v46 = vadd.f32 %v3315_v28, %v3314_v16  ;;  %v3602_v1 = vadd.f32 %v4797_v36, %v3313_v47  ;;  %v3568_v13 = vadd.f32 %v4911_v49, %v2214_v40  ;;  %v2365_v6 = vadd.f32 %v3560_v53, %v4943_v10 }
 0x240   : > { %v2368_v45 = vadd.f32 %v3564_v48, %v4943_v10 }
 0x241   : > { %v4970_v15 = vadd.f32 %v4799_v62, %v3316_v46  ;;  %v2366_v59 = vadd.f32 %v3568_v13, %v4943_v10 }
 0x242   : > { %v2892_v60 = vpack.c.bf16 %v2368_v45, %v2367_v14 }
 0x243   : > { %v3317_v21 = vpop.f32.mrb[120].mxu0  ;;  %v2887_v32 = vpack.c.bf16 %v2366_v59, %v2365_v6  ;;  %v3499_v54 = vpop.f32.mrb[88].mxu1 }
 0x244   : > { %v3318_v42 = vpop.f32.mrb[121].mxu0  ;;  %2956 = vst [vmem:[%s4958_s10 + $0x18] sm:$0xff] %v2892_v60   ;;  %v3572_v36 = vadd.f32 %v4925_v7, %v3499_v54  ;;  %v2227_v2 = vpop.f32.mrb[89].mxu1 }
 0x245   : > { %v3319_v49 = vadd.f32 %v3318_v42, %v3317_v21  ;;  %v3320_v44 = vpop.f32.mrb[122].mxu0  ;;  %2955 = vst [vmem:[%s4958_s10 + $0x10] sm:$0xff] %v2887_v32   ;;  %v3576_v52 = vadd.f32 %v4920_v20, %v2227_v2  ;;  %v3500_v62 = vpop.f32.mrb[90].mxu1 }
 0x246   : > { %v3321_v61 = vpop.f32.mrb[123].mxu0  ;;  %v3580_v24 = vadd.f32 %v4928_v0, %v3500_v62  ;;  %v2230_v17 = vpop.f32.mrb[91].mxu1  ;;  %v2371_v7 = vadd.f32 %v3572_v36, %v4943_v10 }
 0x247   : > { %v3322_v50 = vadd.f32 %v3321_v61, %v3320_v44  ;;  %v4980_v8 = vadd.f32 %v4805_v23, %v3319_v49  ;;  %v3584_v11 = vadd.f32 %v4922_v9, %v2230_v17  ;;  %v2369_v20 = vadd.f32 %v3576_v52, %v4943_v10 }
 0x248   : > { %v2372_v22 = vadd.f32 %v3580_v24, %v4943_v10 }
 0x249   : > { %v4986_v33 = vadd.f32 %v5118_v5, %v3322_v50  ;;  %v2370_v57 = vadd.f32 %v3584_v11, %v4943_v10 }
 0x24a   : > { %v2902_v0 = vpack.c.bf16 %v2372_v22, %v2371_v7 }
 0x24b   : > { %v3323_v26 = vpop.f32.mrb[124].mxu0  ;;  %v2897_v55 = vpack.c.bf16 %v2370_v57, %v2369_v20  ;;  %v3503_v4 = vpop.f32.mrb[92].mxu1 }
 0x24c   : > { %v3324_v23 = vpop.f32.mrb[125].mxu0  ;;  %2958 = vst [vmem:[%s4958_s10 + $0x28] sm:$0xff] %v2902_v0   ;;  %v3588_v9 = vadd.f32 %v4935_v51, %v3503_v4  ;;  %v2243_v3 = vpop.f32.mrb[93].mxu1 }
 0x24d   : > { %v3325_v37 = vadd.f32 %v3324_v23, %v3323_v26  ;;  %v3326_v47 = vpop.f32.mrb[126].mxu0  ;;  %2957 = vst [vmem:[%s4958_s10 + $0x20] sm:$0xff] %v2897_v55   ;;  %v3592_v30 = vadd.f32 %v4930_v63, %v2243_v3  ;;  %v3504_v16 = vpop.f32.mrb[94].mxu1 }
 0x24e   : > { %v3327_v53 = vpop.f32.mrb[127].mxu0  ;;  %v3596_v39 = vadd.f32 %v4938_v43, %v3504_v16  ;;  %v2246_v48 = vpop.f32.mrb[95].mxu1  ;;  %v2375_v51 = vadd.f32 %v3588_v9, %v4943_v10 }
 0x24f   : > { %v3328_v28 = vadd.f32 %v3327_v53, %v3326_v47  ;;  %v3614_v46 = vadd.f32 %v4813_v34, %v3325_v37  ;;  %v3600_v40 = vadd.f32 %v4932_v35, %v2246_v48  ;;  %v2373_v63 = vadd.f32 %v3592_v30, %v4943_v10 }
 0x250   : > { %v2376_v13 = vadd.f32 %v3596_v39, %v4943_v10 }
 0x251   : > { %v3620_v14 = vadd.f32 %v4815_v41, %v3328_v28  ;;  %v2374_v45 = vadd.f32 %v3600_v40, %v4943_v10 }
 0x252   : > { %v2912_v6 = vpack.c.bf16 %v2376_v13, %v2375_v51 }
 0x253   : > { %v3329_v59 = vpop.f32.mrb[128].mxu0  ;;  %v2907_v43 = vpack.c.bf16 %v2374_v45, %v2373_v63  ;;  %v3507_v60 = vpop.f32.mrb[0].mxu1 }
 0x254   : > { %v3330_v21 = vpop.f32.mrb[129].mxu0  ;;  %2960 = vst [vmem:[%s4958_s10 + $0x38] sm:$0xff] %v2912_v6   ;;  %v3603_v34 = vadd.f32 %v3602_v1, %v3507_v60  ;;  %v2259_v35 = vpop.f32.mrb[1].mxu1 }
 0x255   : > { %v3331_v32 = vadd.f32 %v3330_v21, %v3329_v59  ;;  %v3332_v54 = vpop.f32.mrb[130].mxu0  ;;  %2959 = vst [vmem:[%s4958_s10 + $0x30] sm:$0xff] %v2907_v43   ;;  %v3606_v42 = vadd.f32 %v4948_v31, %v2259_v35  ;;  %v3508_v36 = vpop.f32.mrb[2].mxu1 }
 0x256   : > { %v3333_v49 = vpop.f32.mrb[131].mxu0  ;;  %v3609_v41 = vadd.f32 %v4970_v15, %v3508_v36  ;;  %v2262_v44 = vpop.f32.mrb[3].mxu1  ;;  %v2379_v1 = vadd.f32 %v3603_v34, %v4943_v10 }
 0x257   : > { %v3334_v2 = vadd.f32 %v3333_v49, %v3332_v54  ;;  %v3629_v52 = vadd.f32 %v4828_v19, %v3331_v32  ;;  %v3612_v62 = vadd.f32 %v4954_v38, %v2262_v44  ;;  %v2377_v31 = vadd.f32 %v3606_v42, %v4943_v10 }
 0x258   : > { %v2380_v61 = vadd.f32 %v3609_v41, %v4943_v10 }
 0x259   : > { %v3635_v24 = vadd.f32 %v4837_v25, %v3334_v2  ;;  %v2378_v50 = vadd.f32 %v3612_v62, %v4943_v10 }
 0x25a   : > { %v2922_v17 = vpack.c.bf16 %v2380_v61, %v2379_v1 }
 0x25b   : > { %v3335_v11 = vpop.f32.mrb[132].mxu0  ;;  %v2917_v15 = vpack.c.bf16 %v2378_v50, %v2377_v31  ;;  %v3511_v7 = vpop.f32.mrb[4].mxu1 }
 0x25c   : > { %v3336_v22 = vpop.f32.mrb[133].mxu0  ;;  %2962 = vst [vmem:[%s4958_s10 + $0x48] sm:$0xff] %v2922_v17   ;;  %v3615_v19 = vadd.f32 %v3614_v46, %v3511_v7  ;;  %v2275_v38 = vpop.f32.mrb[5].mxu1 }
 0x25d   : > { %v3337_v5 = vadd.f32 %v3336_v22, %v3335_v11  ;;  %v3338_v20 = vpop.f32.mrb[134].mxu0  ;;  %2961 = vst [vmem:[%s4958_s10 + $0x40] sm:$0xff] %v2917_v15   ;;  %v3618_v57 = vadd.f32 %v4980_v8, %v2275_v38  ;;  %v3512_v0 = vpop.f32.mrb[6].mxu1 }
 0x25e   : > { %v3339_v26 = vpop.f32.mrb[135].mxu0  ;;  %v3621_v25 = vadd.f32 %v3620_v14, %v3512_v0  ;;  %v2278_v4 = vpop.f32.mrb[7].mxu1  ;;  %v2383_v37 = vadd.f32 %v3615_v19, %v4943_v10 }
 0x25f   : > { %v3340_v55 = vadd.f32 %v3339_v26, %v3338_v20  ;;  %v3626_v23 = vadd.f32 %v4850_v12, %v3337_v5  ;;  %v3624_v9 = vadd.f32 %v4986_v33, %v2278_v4  ;;  %v2381_v30 = vadd.f32 %v3618_v57, %v4943_v10 }
 0x260   : > { %v2384_v3 = vadd.f32 %v3621_v25, %v4943_v10 }
 0x261   : > { %v3632_v47 = vadd.f32 %v4859_v29, %v3340_v55  ;;  %v2382_v8 = vadd.f32 %v3624_v9, %v4943_v10 }
 0x262   : > { %v2932_v16 = vpack.c.bf16 %v2384_v3, %v2383_v37 }
 0x263   : > { %v3341_v53 = vpop.f32.mrb[136].mxu0  ;;  %v2927_v39 = vpack.c.bf16 %v2382_v8, %v2381_v30  ;;  %v3515_v28 = vpop.f32.mrb[8].mxu1 }
 0x264   : > { %v3342_v48 = vpop.f32.mrb[137].mxu0  ;;  %2964 = vst [vmem:[%s4958_s10 + $0x58] sm:$0xff] %v2932_v16   ;;  %v3627_v12 = vadd.f32 %v3626_v23, %v3515_v28  ;;  %v2291_v33 = vpop.f32.mrb[9].mxu1 }
 0x265   : > { %v3343_v46 = vadd.f32 %v3342_v48, %v3341_v53  ;;  %v3344_v40 = vpop.f32.mrb[138].mxu0  ;;  %2963 = vst [vmem:[%s4958_s10 + $0x50] sm:$0xff] %v2927_v39   ;;  %v3630_v51 = vadd.f32 %v3629_v52, %v2291_v33  ;;  %v3516_v13 = vpop.f32.mrb[10].mxu1 }
 0x266   : > { %v3345_v14 = vpop.f32.mrb[139].mxu0  ;;  %v3633_v29 = vadd.f32 %v3632_v47, %v3516_v13  ;;  %v2294_v45 = vpop.f32.mrb[11].mxu1  ;;  %v2387_v43 = vadd.f32 %v3627_v12, %v4943_v10 }
 0x267   : > { %v3346_v63 = vadd.f32 %v3345_v14, %v3344_v40  ;;  %v3641_v6 = vadd.f32 %v4872_v27, %v3343_v46  ;;  %v3636_v59 = vadd.f32 %v3635_v24, %v2294_v45  ;;  %v2385_v34 = vadd.f32 %v3630_v51, %v4943_v10 }
 0x268   : > { %v2388_v60 = vadd.f32 %v3633_v29, %v4943_v10 }
 0x269   : > { %v3647_v21 = vadd.f32 %v4879_v18, %v3346_v63  ;;  %v2386_v32 = vadd.f32 %v3636_v59, %v4943_v10 }
 0x26a   : > { %v2942_v35 = vpack.c.bf16 %v2388_v60, %v2387_v43 }
 0x26b   : > { %v3347_v54 = vpop.f32.mrb[140].mxu0  ;;  %v2937_v42 = vpack.c.bf16 %v2386_v32, %v2385_v34  ;;  %v3519_v36 = vpop.f32.mrb[12].mxu1 }
 0x26c   : > { %v3348_v49 = vpop.f32.mrb[141].mxu0  ;;  %2966 = vst [vmem:[%s4958_s10 + $0x68] sm:$0xff] %v2942_v35   ;;  %v2307_v27 = vpop.f32.mrb[13].mxu1 }
 0x26d   : > { %v3349_v41 = vadd.f32 %v3348_v49, %v3347_v54  ;;  %v3350_v2 = vpop.f32.mrb[142].mxu0  ;;  %2965 = vst [vmem:[%s4958_s10 + $0x60] sm:$0xff] %v2937_v42   ;;  %v3642_v44 = vadd.f32 %v3641_v6, %v2307_v27  ;;  %v3520_v52 = vpop.f32.mrb[14].mxu1 }
 0x26e   : > { %v3351_v18 = vpop.f32.mrb[143].mxu0  ;;  %v2310_v61 = vpop.f32.mrb[15].mxu1 }
 0x26f   : > { %v3638_v62 = vadd.f32 %v4890_v56, %v3349_v41  ;;  %v3352_v1 = vadd.f32 %v3351_v18, %v3350_v2  ;;  %v3648_v24 = vadd.f32 %v3647_v21, %v2310_v61  ;;  %v2389_v17 = vadd.f32 %v3642_v44, %v4943_v10 }
 0x271   : > { %v3639_v31 = vadd.f32 %v3638_v62, %v3519_v36  ;;  %v3644_v50 = vadd.f32 %v4897_v58, %v3352_v1  ;;  %v2390_v11 = vadd.f32 %v3648_v24, %v4943_v10 }
 0x273   : > { %v3645_v15 = vadd.f32 %v3644_v50, %v3520_v52  ;;  %v2947_v7 = vpack.c.bf16 %v2390_v11, %v2389_v17  ;;  %v2391_v22 = vadd.f32 %v3639_v31, %v4943_v10 }
 0x275   : > { %v2392_v56 = vadd.f32 %v3645_v15, %v4943_v10  ;;  %2967 = vst [vmem:[%s4958_s10 + $0x70] sm:$0xff] %v2947_v7  }
 0x277   : > { %v2952_v58 = vpack.c.bf16 %v2392_v56, %v2391_v22 }
 0x279   : > { %2968 = vst [vmem:[%s4958_s10 + $0x78] sm:$0xff] %v2952_v58  }
 0x27a   : > { %3964 = shalt.err (!%p3961_p5)
}
 0x27b   : > { %s3965_s26 = scalar_lea.hbm %s5045_s19, 2048  ;;  %s3969_s20 = scalar_lea.hbm %s5100_s3, 4096 }
 0x27c   : > { %p3966_p9 = scmp.ne.s32.totalorder %s5045_s19, %s3965_s26  ;;  %p3970_p3 = scmp.lt.u32.totalorder %s5045_s19, %s5100_s3 }
 0x27d   : > { %p3971_p7 = scmp.lt.u32.totalorder %s3969_s20, %s3965_s26  ;;  %p3973_p4 = scmp.lt.u32.totalorder %s3965_s26, %s5045_s19 }
 0x27e   : > { %p3967_p1 = pnand %p3966_p9, %p4161_p10 }
 0x27f   : > { %p3972_p11 = por %p3971_p7, %p3970_p3 }
 0x280   : > { %p3968_p2 = pneg %p3967_p1 }
 0x281   : > { %p3974_p6 = por %p3973_p4, %p3972_p11 }
 0x283   : > { %p3975_p8 = pnand %p3974_p6, %p3968_p2 }
 0x285   : > { %3978 = shalt.err (!%p3975_p8)
}
 0x286   : > { %s4044_s10 = smov 64   ;;  %s4045_s11 = smov 4  }
 0x287   : > { %3706 = dma.vmem_to_hbm [thread:$0]  (%p4161_p10), %s5047_s7, 2048, %s5045_s19, %s2554_s15, %s4044_s10, %s4044_s10, %s4045_s11  }
 0x288 PF: > { %s2586_s8 = sand.u32 1, %s4017_s12   ;;  %p5119_p12 = scmp.ne.s32.totalorder %s5108_s23, 0 }
 0x289   : > { %p5120_p13 = scmp.ge.s32.totalorder %s4037_s17, 2  ;;  %s2587_s18 = scalar_lea.sflag [#allocation4], %s2586_s8 }
 0x28b   : > { %p3717_p0 = pnand %p5120_p13, %p5119_p12 }
 0x28d   : > { %4012 = dma.done.wait (!%p3717_p0), %s2587_s18, 2048  }
 0x28e   : > { %4014 = vsyncadd (!%p3717_p0), %s2587_s18, 4294965248  ;;  %s20_s17 = sadd.s32 1, %s4037_s17   ;;  %s5121_s12 = smov %s4021_s13 }
 0x28f   : > { %p17_p5 = scmp.ge.s32.totalorder %s20_s17, 4   ;;  %s5122_s13 = smov %s4025_s14 }
 0x290   : > { %s5123_s14 = smov %s4170_s5  ;;  %s5124_s15 = smov %s4033_s16 }
 0x291   : > { %s5125_s16 = smov %s5127_s28  ;;  %19 = sbr.rel (!%p17_p5) target bundleno = 7 (0x7), region = 88 }
 0x298   :  { %2592 = vsyncpa [#allocation3], 1 }
 0x299   :  { %2594 = vsyncpa [#allocation3 + $0x1], 1 }
 0x29a   :  { %2595 = vsyncpa [#allocation6], 1 }
 0x29b   :  { %2596 = vsyncpa [#allocation4], 1 }
 0x29c   :  { %2598 = vsyncpa [#allocation4 + $0x1], 1 }

</bundles_post_ra>
